<compile_context>
chip_gen: v7x
topology: tpu7x:2x2x1
jax: 0.10.0
libtpu: 0.0.40
codegen_flags: <defaults>
</compile_context>

<pallas_src>
import functools

import jax
import jax.numpy as jnp
from jax.experimental import pallas as pl
from jax.experimental.pallas import tpu as pltpu

BN_EPS = 1e-5
EMBED = 64            # encoder output channels == attention embed dim
NUM_HEADS = 4
HEAD_DIM = EMBED // NUM_HEADS
T_OUT = 7             # AdaptiveAvgPool1d target length
ENC_CH = (8, 16, 32, 64)

# Weight-stack slots (all [64,64], zero-padded):
#   0..11  conv taps: layer i (0..3), tap k (0..2) -> slot 3*i+k   (tap 0 = x[t-1])
#   12     attention out-projection  Wo^T
#   13..19 fc1 weight rearranged per timestep t (permute(0,2,1)+flatten folded in)
#   20     fc2 weight^T (cols 32..63 zero)
W_OUTPROJ = 12
W_FC1 = 13
W_FC2 = 20

# Vec-slab rows (width 3*EMBED = 192):
#   0..7   BN gamma/beta for the 4 conv layers (rows 2*i, 2*i+1)
#   8      packed QKV bias (bq|bk|bv)
#   9      out-proj bias ; 10 fc1 bias ; 11 fc2 bias ; 12 fc3 weight ; 13 fc3 bias (lane 0)
V_QKV_BIAS = 8
V_OUT_BIAS = 9
V_FC1_B = 10
V_FC2_B = 11
V_FC3_W = 12
V_FC3_B = 13

# Flip to jnp.bfloat16 on v6e/v7x for 2x MXU throughput (f32 accumulation is kept either way).
MXU_DTYPE = jnp.float32


# --------------------------------------------------------------------------------------
# small in-kernel helpers
# --------------------------------------------------------------------------------------
def _mxu_dot(a, b):
    return jnp.dot(a.astype(MXU_DTYPE), b.astype(MXU_DTYPE),
                   preferred_element_type=jnp.float32)


def _qkt(q, k):
    return jax.lax.dot_general(q.astype(MXU_DTYPE), k.astype(MXU_DTYPE),
                               (((1,), (1,)), ((), ())),
                               preferred_element_type=jnp.float32)


def _segment_ids(shape, dim, seg_len):
    """floor(iota/seg_len) along `dim`, via exact float multiply+floor (no vector int div)."""
    r = jax.lax.broadcasted_iota(jnp.int32, shape, dim)
    return jnp.floor((r.astype(jnp.float32) + 0.5) * (1.0 / seg_len)).astype(jnp.int32)


def _pos_in_segment(rows, seg_len):
    """[rows,1] int32: position of each row inside its length-`seg_len` batch segment."""
    r = jax.lax.broadcasted_iota(jnp.int32, (rows, 1), 0)
    return r - _segment_ids((rows, 1), 0, seg_len) * seg_len


def _conv_bn_relu(h, w_prev, w_cur, w_next, gamma, beta, pos, seg_len):
    """Conv1d(k=3, pad=1) + train-mode BatchNorm1d + ReLU on a [rows, 64] padded slab.

    Time shifts use an XLU sublane roll plus per-segment edge masks (linear cost).
    Conv bias is dropped on purpose: it is exactly cancelled by the BN mean subtraction.
    """
    rows = h.shape[0]
    h_prev = jnp.where(pos == 0, 0.0, pltpu.roll(h, 1, 0))           # h[t-1], 0 at segment start
    h_next = jnp.where(pos == seg_len - 1, 0.0, pltpu.roll(h, rows - 1, 0))  # h[t+1]
    y = _mxu_dot(h_prev, w_prev) + _mxu_dot(h, w_cur) + _mxu_dot(h_next, w_next)
    mean = jnp.mean(y, axis=0, keepdims=True)
    var = jnp.mean(jnp.square(y - mean), axis=0, keepdims=True)
    y = (y - mean) * jax.lax.rsqrt(var + BN_EPS) * gamma + beta
    return jnp.maximum(y, 0.0)


def _maxpool2(h, scr_ref):
    """MaxPool1d(2,2): stage in VMEM scratch, read even/odd rows via strided pl.ds."""
    rows = h.shape[0]
    half = rows // 2
    scr_ref[0:rows, :] = h
    even = scr_ref[pl.ds(0, half, stride=2), :]
    odd = scr_ref[pl.ds(1, half, stride=2), :]
    return jnp.maximum(even, odd)


def _avgpool(h, scr_ref, factor):
    """AdaptiveAvgPool1d(7) for exact multiples: average `factor` consecutive rows."""
    if factor == 1:
        return h
    rows = h.shape[0]
    out_rows = rows // factor
    scr_ref[0:rows, :] = h
    acc = scr_ref[pl.ds(0, out_rows, stride=factor), :]
    for j in range(1, factor):
        acc = acc + scr_ref[pl.ds(j, out_rows, stride=factor), :]
    return acc * (1.0 / factor)


# --------------------------------------------------------------------------------------
# the fused kernel
# --------------------------------------------------------------------------------------
def _cnn1d_attn_kernel(x_ref, qkvw_ref, wstack_ref, vecs_ref, out_ref, scr_ref,
                       *, batch, length):
    def vrow(i):
        return vecs_ref[i:i + 1, 0:EMBED]

    # ------------------------------ encoder ------------------------------
    h = x_ref[...]                                              # [B*L, 64] (lane 0 = signal)
    pos = _pos_in_segment(batch * length, length)
    h = _conv_bn_relu(h, wstack_ref[0], wstack_ref[1], wstack_ref[2],
                      vrow(0), vrow(1), pos, length)            # [B*L, 64] (8 real lanes)
    h = _conv_bn_relu(h, wstack_ref[3], wstack_ref[4], wstack_ref[5],
                      vrow(2), vrow(3), pos, length)            # [B*L, 64] (16 real lanes)
    h = _maxpool2(h, scr_ref)                                   # [B*L/2, 64]

    half_len = length // 2
    pos = _pos_in_segment(batch * half_len, half_len)
    h = _conv_bn_relu(h, wstack_ref[6], wstack_ref[7], wstack_ref[8],
                      vrow(4), vrow(5), pos, half_len)          # 32 real lanes
    h = _conv_bn_relu(h, wstack_ref[9], wstack_ref[10], wstack_ref[11],
                      vrow(6), vrow(7), pos, half_len)          # 64 real lanes
    h = _maxpool2(h, scr_ref)                                   # [B*L/4, 64]
    h = _avgpool(h, scr_ref, (length // 4) // T_OUT)            # [B*T, 64]

    # --------- multi-head self-attention (block-diagonal over the batch) ---------
    rows = batch * T_OUT
    qkv = _mxu_dot(h, qkvw_ref[...]) + vecs_ref[V_QKV_BIAS:V_QKV_BIAS + 1, :]   # [rows, 192]
    wo_t = wstack_ref[W_OUTPROJ]                                # [64, 64]
    same_batch = (_segment_ids((rows, 1), 0, T_OUT) ==
                  _segment_ids((1, rows), 1, T_OUT))            # [rows, rows] bool
    scale = 1.0 / (HEAD_DIM ** 0.5)

    attn = jnp.zeros((rows, EMBED), jnp.float32) + vrow(V_OUT_BIAS)   # out-proj bias, once
    for hd in range(NUM_HEADS):
        lo = hd * HEAD_DIM
        q = qkv[:, lo:lo + HEAD_DIM]
        k = qkv[:, EMBED + lo:EMBED + lo + HEAD_DIM]
        v = qkv[:, 2 * EMBED + lo:2 * EMBED + lo + HEAD_DIM]
        s = _qkt(q, k) * scale
        s = jnp.where(same_batch, s, -1e30)
        p = jnp.exp(s - jnp.max(s, axis=1, keepdims=True))
        p = p * pl.reciprocal(jnp.sum(p, axis=1, keepdims=True), approx=True)
        ctx = _mxu_dot(p, v)                                    # [rows, 16]
        attn = attn + _mxu_dot(ctx, wo_t[lo:lo + HEAD_DIM, :])  # head-concat folded into out-proj

    # --------- classifier (permute+flatten folded into the per-timestep fc1 stack) ---------
    pos_t = _pos_in_segment(rows, T_OUT)                        # [rows, 1]
    z = jnp.zeros((rows, EMBED), jnp.float32)
    for t in range(T_OUT):
        z = z + _mxu_dot(jnp.where(pos_t == t, attn, 0.0), wstack_ref[W_FC1 + t])
    seg = jnp.where(
        _segment_ids((batch, rows), 1, T_OUT) ==
        jax.lax.broadcasted_iota(jnp.int32, (batch, rows), 0), 1.0, 0.0)        # [B, rows]
    y = jnp.maximum(_mxu_dot(seg, z) + vrow(V_FC1_B), 0.0)                      # fc1  [B, 64]
    y = jnp.maximum(_mxu_dot(y, wstack_ref[W_FC2]) + vrow(V_FC2_B), 0.0)        # fc2  (pad=0)
    logit = (jnp.sum(y * vrow(V_FC3_W), axis=1, keepdims=True)
             + vecs_ref[V_FC3_B:V_FC3_B + 1, 0:1])                              # fc3  [B, 1]
    out_ref[...] = jax.nn.sigmoid(logit)


# --------------------------------------------------------------------------------------
# host-side packing + wrapper
# --------------------------------------------------------------------------------------
def _pack_params(p):
    """Repack ~30 torch-layout tensors into 3 kernel operands."""
    wstack = jnp.zeros((21, EMBED, EMBED), jnp.float32)
    cin = 1
    for i, cout in enumerate(ENC_CH):
        w = p[f"conv{i + 1}_w"]                                 # [cout, cin, 3]
        for k in range(3):
            wstack = wstack.at[3 * i + k, :cin, :cout].set(jnp.transpose(w[:, :, k]))
        cin = cout
    wstack = wstack.at[W_OUTPROJ].set(jnp.transpose(p["wo"]))
    w1r = jnp.transpose(p["fc1_w"].reshape(EMBED, EMBED, T_OUT), (2, 1, 0))     # [T, 64, 64]
    wstack = wstack.at[W_FC1:W_FC1 + T_OUT].set(w1r)
    wstack = wstack.at[W_FC2, :, :32].set(jnp.transpose(p["fc2_w"]))

    qkvw = jnp.concatenate([jnp.transpose(p["wq"]), jnp.transpose(p["wk"]),
                            jnp.transpose(p["wv"])], axis=1)    # [64, 192]

    vecs = jnp.zeros((14, 3 * EMBED), jnp.float32)
    for i, c in enumerate(ENC_CH):
        # conv biases intentionally omitted: train-mode BN cancels them exactly.
        vecs = vecs.at[2 * i, :c].set(p[f"bn{i + 1}_g"])
        vecs = vecs.at[2 * i + 1, :c].set(p[f"bn{i + 1}_b"])
    vecs = vecs.at[V_QKV_BIAS].set(jnp.concatenate([p["bq"], p["bk"], p["bv"]]))
    vecs = vecs.at[V_OUT_BIAS, :EMBED].set(p["bo"])
    vecs = vecs.at[V_FC1_B, :EMBED].set(p["fc1_b"])
    vecs = vecs.at[V_FC2_B, :32].set(p["fc2_b"])
    vecs = vecs.at[V_FC3_W, :32].set(p["fc3_w"][0])
    vecs = vecs.at[V_FC3_B, 0].set(p["fc3_b"][0])
    return qkvw, wstack, vecs


def cnn1d_attn_forward(x, params):
    """x: [B, L] float32; params: torch-layout parameter dict (see _init_params)."""
    B, L = x.shape
    assert L % 4 == 0 and (L // 4) % T_OUT == 0, "encoder output length must be a multiple of 7"
    qkvw, wstack, vecs = _pack_params(params)
    x_pad = jnp.zeros((B * L, EMBED), jnp.float32).at[:, 0].set(x.reshape(-1))
    args = (x_pad, qkvw, wstack, vecs)

    def full_spec(a):
        zeros = (0,) * a.ndim
        return pl.BlockSpec(a.shape, lambda: zeros)

    kernel = functools.partial(_cnn1d_attn_kernel, batch=B, length=L)
    # Linear footprint now that the quadratic constant matrices are gone; generous floor,
    # capped below v7x physical VMEM.
    vmem_bytes = int(min(64 * 2 ** 20, max(16 * 2 ** 20, 48 * B * L * EMBED * 4)))
    return pl.pallas_call(
        kernel,
        out_shape=jax.ShapeDtypeStruct((B, 1), jnp.float32),
        grid=(),
        in_specs=[full_spec(a) for a in args],
        out_specs=pl.BlockSpec((B, 1), lambda: (0, 0)),
        scratch_shapes=[pltpu.VMEM((B * L, EMBED), jnp.float32)],
        compiler_params=pltpu.CompilerParams(vmem_limit_bytes=vmem_bytes),
    )(*args)


# --------------------------------------------------------------------------------------
# deterministic params + pure-JAX reference + self-test
# --------------------------------------------------------------------------------------
def _init_params(key):
    ks = iter(jax.random.split(key, 32))

    def unif(shape, fan_in):
        bound = 1.0 / float(fan_in) ** 0.5
        return jax.random.uniform(next(ks), shape, jnp.float32, -bound, bound)

    p = {}
    cin = 1
    for i, cout in enumerate(ENC_CH, start=1):
        p[f"conv{i}_w"] = unif((cout, cin, 3), cin * 3)
        p[f"conv{i}_b"] = unif((cout,), cin * 3)
        p[f"bn{i}_g"] = 1.0 + 0.1 * jax.random.normal(next(ks), (cout,), jnp.float32)
        p[f"bn{i}_b"] = 0.1 * jax.random.normal(next(ks), (cout,), jnp.float32)
        cin = cout
    for name in ("wq", "wk", "wv", "wo"):
        p[name] = unif((EMBED, EMBED), EMBED)
    for name in ("bq", "bk", "bv", "bo"):
        p[name] = unif((EMBED,), EMBED)
    p["fc1_w"] = unif((64, 448), 448)
    p["fc1_b"] = unif((64,), 448)
    p["fc2_w"] = unif((32, 64), 64)
    p["fc2_b"] = unif((32,), 64)
    p["fc3_w"] = unif((1, 32), 32)
    p["fc3_b"] = unif((1,), 32)
    return p


def _reference(x, p):
    B, _ = x.shape
    h = x[:, None, :]

    def conv_bn_relu(h, w, b, g, be):
        y = jax.lax.conv_general_dilated(h, w, window_strides=(1,), padding=((1, 1),),
                                         dimension_numbers=("NCH", "OIH", "NCH"))
        y = y + b[None, :, None]
        mean = jnp.mean(y, axis=(0, 2), keepdims=True)
        var = jnp.mean(jnp.square(y - mean), axis=(0, 2), keepdims=True)
        y = (y - mean) * jax.lax.rsqrt(var + BN_EPS) * g[None, :, None] + be[None, :, None]
        return jnp.maximum(y, 0.0)

    def maxpool2(h):
        b, c, l = h.shape
        return h.reshape(b, c, l // 2, 2).max(axis=3)

    h = conv_bn_relu(h, p["conv1_w"], p["conv1_b"], p["bn1_g"], p["bn1_b"])
    h = conv_bn_relu(h, p["conv2_w"], p["conv2_b"], p["bn2_g"], p["bn2_b"])
    h = maxpool2(h)
    h = conv_bn_relu(h, p["conv3_w"], p["conv3_b"], p["bn3_g"], p["bn3_b"])
    h = conv_bn_relu(h, p["conv4_w"], p["conv4_b"], p["bn4_g"], p["bn4_b"])
    h = maxpool2(h)
    b, c, l = h.shape
    h = h.reshape(b, c, T_OUT, l // T_OUT).mean(axis=3)             # AdaptiveAvgPool1d(7)

    xt = jnp.transpose(h, (0, 2, 1))                                # [B, 7, 64]
    q = xt @ p["wq"].T + p["bq"]
    k = xt @ p["wk"].T + p["bk"]
    v = xt @ p["wv"].T + p["bv"]

    def split(z):
        return jnp.transpose(z.reshape(B, T_OUT, NUM_HEADS, HEAD_DIM), (0, 2, 1, 3))

    s = jnp.einsum("bhtd,bhsd->bhts", split(q), split(k)) / (HEAD_DIM ** 0.5)
    a = jax.nn.softmax(s, axis=-1)
    ctx = jnp.einsum("bhts,bhsd->bhtd", a, split(v))
    ctx = jnp.transpose(ctx, (0, 2, 1, 3)).reshape(B, T_OUT, EMBED)
    attn = ctx @ p["wo"].T + p["bo"]

    flat = jnp.transpose(attn, (0, 2, 1)).reshape(B, 448)
    y = jnp.maximum(flat @ p["fc1_w"].T + p["fc1_b"], 0.0)
    y = jnp.maximum(y @ p["fc2_w"].T + p["fc2_b"], 0.0)
    return jax.nn.sigmoid(y @ p["fc3_w"].T + p["fc3_b"])


if __name__ == "__main__":
    B, L = 2, 56   # L=56 -> encoder length 14 -> AdaptiveAvgPool1d(7) averages exact pairs
    key = jax.random.PRNGKey(0)
    kx, kp = jax.random.split(key)
    x = jax.random.normal(kx, (B, L), jnp.float32)
    params = _init_params(kp)

    out = cnn1d_attn_forward(x, params)
    out = jax.block_until_ready(out)

    ref = _reference(x, params)
    assert out.shape == (B, 1), out.shape
    assert jnp.allclose(out, ref, atol=1e-3, rtol=1e-3), (out, ref)
    print("KERNEL_OK")
</pallas_src>

<mosaic_0001>
module attributes {stable_mosaic.version = 11 : i64} {
  func.func @_cnn1d_attn_kernel(%arg0: memref<112x64xf32, #tpu.memory_space<vmem>>, %arg1: memref<64x192xf32, #tpu.memory_space<vmem>>, %arg2: memref<21x64x64xf32, #tpu.memory_space<vmem>>, %arg3: memref<14x192xf32, #tpu.memory_space<vmem>>, %arg4: memref<2x1xf32, #tpu.memory_space<vmem>>, %arg5: memref<112x64xf32, #tpu.memory_space<vmem>>) attributes {dimension_semantics = [], scalar_prefetch = 0 : i64, scratch_operands = 1 : i64, tpu.core_type = #tpu.core_type<tc>} {
    %c0 = arith.constant 0 : index
    %c0_0 = arith.constant 0 : index
    %0 = vector.load %arg0[%c0, %c0_0] : memref<112x64xf32, #tpu.memory_space<vmem>>, vector<112x64xf32>
    %1 = tpu.iota {dimensions = array<i32: 0>} : vector<112x1xi32>
    %2 = tpu.iota {dimensions = array<i32: 0>} : vector<112x1xi32>
    %3 = arith.sitofp %2 : vector<112x1xi32> to vector<112x1xf32>
    %cst = arith.constant 5.000000e-01 : f32
    %4 = vector.broadcast %cst : f32 to vector<112x1xf32>
    %5 = arith.addf %3, %4 : vector<112x1xf32>
    %cst_1 = arith.constant 0.0178571437 : f32
    %6 = vector.broadcast %cst_1 : f32 to vector<112x1xf32>
    %7 = arith.mulf %5, %6 : vector<112x1xf32>
    %8 = math.floor %7 : vector<112x1xf32>
    %9 = arith.fptosi %8 : vector<112x1xf32> to vector<112x1xi32>
    %c56_i32 = arith.constant 56 : i32
    %10 = vector.broadcast %c56_i32 : i32 to vector<112x1xi32>
    %11 = arith.muli %9, %10 : vector<112x1xi32>
    %12 = arith.subi %1, %11 : vector<112x1xi32>
    %c0_2 = arith.constant 0 : index
    %c0_3 = arith.constant 0 : index
    %c0_4 = arith.constant 0 : index
    %13 = vector.load %arg2[%c0_2, %c0_3, %c0_4] : memref<21x64x64xf32, #tpu.memory_space<vmem>>, vector<1x64x64xf32>
    %14 = vector.shape_cast %13 : vector<1x64x64xf32> to vector<64x64xf32>
    %c1 = arith.constant 1 : index
    %c0_5 = arith.constant 0 : index
    %c0_6 = arith.constant 0 : index
    %15 = vector.load %arg2[%c1, %c0_5, %c0_6] : memref<21x64x64xf32, #tpu.memory_space<vmem>>, vector<1x64x64xf32>
    %16 = vector.shape_cast %15 : vector<1x64x64xf32> to vector<64x64xf32>
    %c2 = arith.constant 2 : index
    %c0_7 = arith.constant 0 : index
    %c0_8 = arith.constant 0 : index
    %17 = vector.load %arg2[%c2, %c0_7, %c0_8] : memref<21x64x64xf32, #tpu.memory_space<vmem>>, vector<1x64x64xf32>
    %18 = vector.shape_cast %17 : vector<1x64x64xf32> to vector<64x64xf32>
    %c0_9 = arith.constant 0 : index
    %c0_10 = arith.constant 0 : index
    %19 = vector.load %arg3[%c0_9, %c0_10] : memref<14x192xf32, #tpu.memory_space<vmem>>, vector<1x64xf32>
    %c1_11 = arith.constant 1 : index
    %c0_12 = arith.constant 0 : index
    %20 = vector.load %arg3[%c1_11, %c0_12] : memref<14x192xf32, #tpu.memory_space<vmem>>, vector<1x64xf32>
    %c0_i32 = arith.constant 0 : i32
    %21 = vector.broadcast %c0_i32 : i32 to vector<112x1xi32>
    %22 = arith.cmpi eq, %12, %21 : vector<112x1xi32>
    %c1_i32 = arith.constant 1 : i32
    %23 = tpu.dynamic_rotate %0 by %c1_i32 dim 0 : vector<112x64xf32>, i32 -> vector<112x64xf32>
    %cst_13 = arith.constant 0.000000e+00 : f32
    %24 = vector.shape_cast %22 : vector<112x1xi1> to vector<112x1xi1>
    %25 = vector.broadcast %24 : vector<112x1xi1> to vector<112x64xi1>
    %26 = vector.broadcast %cst_13 : f32 to vector<112x64xf32>
    %27 = arith.select %25, %26, %23 : vector<112x64xi1>, vector<112x64xf32>
    %c55_i32 = arith.constant 55 : i32
    %28 = vector.broadcast %c55_i32 : i32 to vector<112x1xi32>
    %29 = arith.cmpi eq, %12, %28 : vector<112x1xi32>
    %c111_i32 = arith.constant 111 : i32
    %30 = tpu.dynamic_rotate %0 by %c111_i32 dim 0 : vector<112x64xf32>, i32 -> vector<112x64xf32>
    %cst_14 = arith.constant 0.000000e+00 : f32
    %31 = vector.shape_cast %29 : vector<112x1xi1> to vector<112x1xi1>
    %32 = vector.broadcast %31 : vector<112x1xi1> to vector<112x64xi1>
    %33 = vector.broadcast %cst_14 : f32 to vector<112x64xf32>
    %34 = arith.select %32, %33, %30 : vector<112x64xi1>, vector<112x64xf32>
    %cst_15 = arith.constant dense<0.000000e+00> : vector<112x64xf32>
    %35 = tpu.matmul %27, %14, %cst_15 {dimension_numbers = #tpu.dot_dimension_numbers<[1], [0], [0], [1], [0, 0, 1, 1], [], []>} : vector<112x64xf32>, vector<64x64xf32>, vector<112x64xf32> -> vector<112x64xf32>
    %cst_16 = arith.constant dense<0.000000e+00> : vector<112x64xf32>
    %36 = tpu.matmul %0, %16, %cst_16 {dimension_numbers = #tpu.dot_dimension_numbers<[1], [0], [0], [1], [0, 0, 1, 1], [], []>} : vector<112x64xf32>, vector<64x64xf32>, vector<112x64xf32> -> vector<112x64xf32>
    %37 = arith.addf %35, %36 : vector<112x64xf32>
    %cst_17 = arith.constant dense<0.000000e+00> : vector<112x64xf32>
    %38 = tpu.matmul %34, %18, %cst_17 {dimension_numbers = #tpu.dot_dimension_numbers<[1], [0], [0], [1], [0, 0, 1, 1], [], []>} : vector<112x64xf32>, vector<64x64xf32>, vector<112x64xf32> -> vector<112x64xf32>
    %39 = arith.addf %37, %38 : vector<112x64xf32>
    %cst_18 = arith.constant dense<0.000000e+00> : vector<64xf32>
    %40 = vector.multi_reduction <add>, %39, %cst_18 [0] : vector<112x64xf32> to vector<64xf32>
    %41 = vector.shape_cast %40 : vector<64xf32> to vector<1x64xf32>
    %cst_19 = arith.constant 1.120000e+02 : f32
    %42 = vector.broadcast %cst_19 : f32 to vector<1x64xf32>
    %43 = arith.divf %41, %42 : vector<1x64xf32>
    %44 = vector.broadcast %43 : vector<1x64xf32> to vector<112x64xf32>
    %45 = arith.subf %39, %44 : vector<112x64xf32>
    %46 = arith.mulf %45, %45 : vector<112x64xf32>
    %cst_20 = arith.constant dense<0.000000e+00> : vector<64xf32>
    %47 = vector.multi_reduction <add>, %46, %cst_20 [0] : vector<112x64xf32> to vector<64xf32>
    %48 = vector.shape_cast %47 : vector<64xf32> to vector<1x64xf32>
    %cst_21 = arith.constant 1.120000e+02 : f32
    %49 = vector.broadcast %cst_21 : f32 to vector<1x64xf32>
    %50 = arith.divf %48, %49 : vector<1x64xf32>
    %51 = vector.broadcast %43 : vector<1x64xf32> to vector<112x64xf32>
    %52 = arith.subf %39, %51 : vector<112x64xf32>
    %cst_22 = arith.constant 9.99999974E-6 : f32
    %53 = vector.broadcast %cst_22 : f32 to vector<1x64xf32>
    %54 = arith.addf %50, %53 : vector<1x64xf32>
    %55 = math.rsqrt %54 : vector<1x64xf32>
    %56 = vector.broadcast %55 : vector<1x64xf32> to vector<112x64xf32>
    %57 = arith.mulf %52, %56 : vector<112x64xf32>
    %58 = vector.broadcast %19 : vector<1x64xf32> to vector<112x64xf32>
    %59 = arith.mulf %57, %58 : vector<112x64xf32>
    %60 = vector.broadcast %20 : vector<1x64xf32> to vector<112x64xf32>
    %61 = arith.addf %59, %60 : vector<112x64xf32>
    %cst_23 = arith.constant 0.000000e+00 : f32
    %62 = vector.broadcast %cst_23 : f32 to vector<112x64xf32>
    %63 = arith.maximumf %61, %62 : vector<112x64xf32>
    %c3 = arith.constant 3 : index
    %c0_24 = arith.constant 0 : index
    %c0_25 = arith.constant 0 : index
    %64 = vector.load %arg2[%c3, %c0_24, %c0_25] : memref<21x64x64xf32, #tpu.memory_space<vmem>>, vector<1x64x64xf32>
    %65 = vector.shape_cast %64 : vector<1x64x64xf32> to vector<64x64xf32>
    %c4 = arith.constant 4 : index
    %c0_26 = arith.constant 0 : index
    %c0_27 = arith.constant 0 : index
    %66 = vector.load %arg2[%c4, %c0_26, %c0_27] : memref<21x64x64xf32, #tpu.memory_space<vmem>>, vector<1x64x64xf32>
    %67 = vector.shape_cast %66 : vector<1x64x64xf32> to vector<64x64xf32>
    %c5 = arith.constant 5 : index
    %c0_28 = arith.constant 0 : index
    %c0_29 = arith.constant 0 : index
    %68 = vector.load %arg2[%c5, %c0_28, %c0_29] : memref<21x64x64xf32, #tpu.memory_space<vmem>>, vector<1x64x64xf32>
    %69 = vector.shape_cast %68 : vector<1x64x64xf32> to vector<64x64xf32>
    %c2_30 = arith.constant 2 : index
    %c0_31 = arith.constant 0 : index
    %70 = vector.load %arg3[%c2_30, %c0_31] : memref<14x192xf32, #tpu.memory_space<vmem>>, vector<1x64xf32>
    %c3_32 = arith.constant 3 : index
    %c0_33 = arith.constant 0 : index
    %71 = vector.load %arg3[%c3_32, %c0_33] : memref<14x192xf32, #tpu.memory_space<vmem>>, vector<1x64xf32>
    %c0_i32_34 = arith.constant 0 : i32
    %72 = vector.broadcast %c0_i32_34 : i32 to vector<112x1xi32>
    %73 = arith.cmpi eq, %12, %72 : vector<112x1xi32>
    %c1_i32_35 = arith.constant 1 : i32
    %74 = tpu.dynamic_rotate %63 by %c1_i32_35 dim 0 : vector<112x64xf32>, i32 -> vector<112x64xf32>
    %cst_36 = arith.constant 0.000000e+00 : f32
    %75 = vector.shape_cast %73 : vector<112x1xi1> to vector<112x1xi1>
    %76 = vector.broadcast %75 : vector<112x1xi1> to vector<112x64xi1>
    %77 = vector.broadcast %cst_36 : f32 to vector<112x64xf32>
    %78 = arith.select %76, %77, %74 : vector<112x64xi1>, vector<112x64xf32>
    %c55_i32_37 = arith.constant 55 : i32
    %79 = vector.broadcast %c55_i32_37 : i32 to vector<112x1xi32>
    %80 = arith.cmpi eq, %12, %79 : vector<112x1xi32>
    %c111_i32_38 = arith.constant 111 : i32
    %81 = tpu.dynamic_rotate %63 by %c111_i32_38 dim 0 : vector<112x64xf32>, i32 -> vector<112x64xf32>
    %cst_39 = arith.constant 0.000000e+00 : f32
    %82 = vector.shape_cast %80 : vector<112x1xi1> to vector<112x1xi1>
    %83 = vector.broadcast %82 : vector<112x1xi1> to vector<112x64xi1>
    %84 = vector.broadcast %cst_39 : f32 to vector<112x64xf32>
    %85 = arith.select %83, %84, %81 : vector<112x64xi1>, vector<112x64xf32>
    %cst_40 = arith.constant dense<0.000000e+00> : vector<112x64xf32>
    %86 = tpu.matmul %78, %65, %cst_40 {dimension_numbers = #tpu.dot_dimension_numbers<[1], [0], [0], [1], [0, 0, 1, 1], [], []>} : vector<112x64xf32>, vector<64x64xf32>, vector<112x64xf32> -> vector<112x64xf32>
    %cst_41 = arith.constant dense<0.000000e+00> : vector<112x64xf32>
    %87 = tpu.matmul %63, %67, %cst_41 {dimension_numbers = #tpu.dot_dimension_numbers<[1], [0], [0], [1], [0, 0, 1, 1], [], []>} : vector<112x64xf32>, vector<64x64xf32>, vector<112x64xf32> -> vector<112x64xf32>
    %88 = arith.addf %86, %87 : vector<112x64xf32>
    %cst_42 = arith.constant dense<0.000000e+00> : vector<112x64xf32>
    %89 = tpu.matmul %85, %69, %cst_42 {dimension_numbers = #tpu.dot_dimension_numbers<[1], [0], [0], [1], [0, 0, 1, 1], [], []>} : vector<112x64xf32>, vector<64x64xf32>, vector<112x64xf32> -> vector<112x64xf32>
    %90 = arith.addf %88, %89 : vector<112x64xf32>
    %cst_43 = arith.constant dense<0.000000e+00> : vector<64xf32>
    %91 = vector.multi_reduction <add>, %90, %cst_43 [0] : vector<112x64xf32> to vector<64xf32>
    %92 = vector.shape_cast %91 : vector<64xf32> to vector<1x64xf32>
    %cst_44 = arith.constant 1.120000e+02 : f32
    %93 = vector.broadcast %cst_44 : f32 to vector<1x64xf32>
    %94 = arith.divf %92, %93 : vector<1x64xf32>
    %95 = vector.broadcast %94 : vector<1x64xf32> to vector<112x64xf32>
    %96 = arith.subf %90, %95 : vector<112x64xf32>
    %97 = arith.mulf %96, %96 : vector<112x64xf32>
    %cst_45 = arith.constant dense<0.000000e+00> : vector<64xf32>
    %98 = vector.multi_reduction <add>, %97, %cst_45 [0] : vector<112x64xf32> to vector<64xf32>
    %99 = vector.shape_cast %98 : vector<64xf32> to vector<1x64xf32>
    %cst_46 = arith.constant 1.120000e+02 : f32
    %100 = vector.broadcast %cst_46 : f32 to vector<1x64xf32>
    %101 = arith.divf %99, %100 : vector<1x64xf32>
    %102 = vector.broadcast %94 : vector<1x64xf32> to vector<112x64xf32>
    %103 = arith.subf %90, %102 : vector<112x64xf32>
    %cst_47 = arith.constant 9.99999974E-6 : f32
    %104 = vector.broadcast %cst_47 : f32 to vector<1x64xf32>
    %105 = arith.addf %101, %104 : vector<1x64xf32>
    %106 = math.rsqrt %105 : vector<1x64xf32>
    %107 = vector.broadcast %106 : vector<1x64xf32> to vector<112x64xf32>
    %108 = arith.mulf %103, %107 : vector<112x64xf32>
    %109 = vector.broadcast %70 : vector<1x64xf32> to vector<112x64xf32>
    %110 = arith.mulf %108, %109 : vector<112x64xf32>
    %111 = vector.broadcast %71 : vector<1x64xf32> to vector<112x64xf32>
    %112 = arith.addf %110, %111 : vector<112x64xf32>
    %cst_48 = arith.constant 0.000000e+00 : f32
    %113 = vector.broadcast %cst_48 : f32 to vector<112x64xf32>
    %114 = arith.maximumf %112, %113 : vector<112x64xf32>
    %c0_49 = arith.constant 0 : index
    %c0_50 = arith.constant 0 : index
    %115 = vector.load %arg5[%c0_49, %c0_50] : memref<112x64xf32, #tpu.memory_space<vmem>>, vector<112x64xf32>
    tpu.vector_store %arg5[%c0_49, %c0_50], %114 {strides = array<i32>} : memref<112x64xf32, #tpu.memory_space<vmem>>, vector<112x64xf32>,
    %c0_51 = arith.constant 0 : index
    %c0_52 = arith.constant 0 : index
    %116 = tpu.strided_load %arg5[%c0_51, %c0_52] {strides = array<i32: 2, 1>} : memref<112x64xf32, #tpu.memory_space<vmem>>, vector<56x64xf32>
    %c1_53 = arith.constant 1 : index
    %c0_54 = arith.constant 0 : index
    %117 = tpu.strided_load %arg5[%c1_53, %c0_54] {strides = array<i32: 2, 1>} : memref<112x64xf32, #tpu.memory_space<vmem>>, vector<56x64xf32>
    %118 = arith.maximumf %116, %117 : vector<56x64xf32>
    %119 = tpu.iota {dimensions = array<i32: 0>} : vector<56x1xi32>
    %120 = tpu.iota {dimensions = array<i32: 0>} : vector<56x1xi32>
    %121 = arith.sitofp %120 : vector<56x1xi32> to vector<56x1xf32>
    %cst_55 = arith.constant 5.000000e-01 : f32
    %122 = vector.broadcast %cst_55 : f32 to vector<56x1xf32>
    %123 = arith.addf %121, %122 : vector<56x1xf32>
    %cst_56 = arith.constant 0.0357142873 : f32
    %124 = vector.broadcast %cst_56 : f32 to vector<56x1xf32>
    %125 = arith.mulf %123, %124 : vector<56x1xf32>
    %126 = math.floor %125 : vector<56x1xf32>
    %127 = arith.fptosi %126 : vector<56x1xf32> to vector<56x1xi32>
    %c28_i32 = arith.constant 28 : i32
    %128 = vector.broadcast %c28_i32 : i32 to vector<56x1xi32>
    %129 = arith.muli %127, %128 : vector<56x1xi32>
    %130 = arith.subi %119, %129 : vector<56x1xi32>
    %c6 = arith.constant 6 : index
    %c0_57 = arith.constant 0 : index
    %c0_58 = arith.constant 0 : index
    %131 = vector.load %arg2[%c6, %c0_57, %c0_58] : memref<21x64x64xf32, #tpu.memory_space<vmem>>, vector<1x64x64xf32>
    %132 = vector.shape_cast %131 : vector<1x64x64xf32> to vector<64x64xf32>
    %c7 = arith.constant 7 : index
    %c0_59 = arith.constant 0 : index
    %c0_60 = arith.constant 0 : index
    %133 = vector.load %arg2[%c7, %c0_59, %c0_60] : memref<21x64x64xf32, #tpu.memory_space<vmem>>, vector<1x64x64xf32>
    %134 = vector.shape_cast %133 : vector<1x64x64xf32> to vector<64x64xf32>
    %c8 = arith.constant 8 : index
    %c0_61 = arith.constant 0 : index
    %c0_62 = arith.constant 0 : index
    %135 = vector.load %arg2[%c8, %c0_61, %c0_62] : memref<21x64x64xf32, #tpu.memory_space<vmem>>, vector<1x64x64xf32>
    %136 = vector.shape_cast %135 : vector<1x64x64xf32> to vector<64x64xf32>
    %c4_63 = arith.constant 4 : index
    %c0_64 = arith.constant 0 : index
    %137 = vector.load %arg3[%c4_63, %c0_64] : memref<14x192xf32, #tpu.memory_space<vmem>>, vector<1x64xf32>
    %c5_65 = arith.constant 5 : index
    %c0_66 = arith.constant 0 : index
    %138 = vector.load %arg3[%c5_65, %c0_66] : memref<14x192xf32, #tpu.memory_space<vmem>>, vector<1x64xf32>
    %c0_i32_67 = arith.constant 0 : i32
    %139 = vector.broadcast %c0_i32_67 : i32 to vector<56x1xi32>
    %140 = arith.cmpi eq, %130, %139 : vector<56x1xi32>
    %c1_i32_68 = arith.constant 1 : i32
    %141 = tpu.dynamic_rotate %118 by %c1_i32_68 dim 0 : vector<56x64xf32>, i32 -> vector<56x64xf32>
    %cst_69 = arith.constant 0.000000e+00 : f32
    %142 = vector.shape_cast %140 : vector<56x1xi1> to vector<56x1xi1>
    %143 = vector.broadcast %142 : vector<56x1xi1> to vector<56x64xi1>
    %144 = vector.broadcast %cst_69 : f32 to vector<56x64xf32>
    %145 = arith.select %143, %144, %141 : vector<56x64xi1>, vector<56x64xf32>
    %c27_i32 = arith.constant 27 : i32
    %146 = vector.broadcast %c27_i32 : i32 to vector<56x1xi32>
    %147 = arith.cmpi eq, %130, %146 : vector<56x1xi32>
    %c55_i32_70 = arith.constant 55 : i32
    %148 = tpu.dynamic_rotate %118 by %c55_i32_70 dim 0 : vector<56x64xf32>, i32 -> vector<56x64xf32>
    %cst_71 = arith.constant 0.000000e+00 : f32
    %149 = vector.shape_cast %147 : vector<56x1xi1> to vector<56x1xi1>
    %150 = vector.broadcast %149 : vector<56x1xi1> to vector<56x64xi1>
    %151 = vector.broadcast %cst_71 : f32 to vector<56x64xf32>
    %152 = arith.select %150, %151, %148 : vector<56x64xi1>, vector<56x64xf32>
    %cst_72 = arith.constant dense<0.000000e+00> : vector<56x64xf32>
    %153 = tpu.matmul %145, %132, %cst_72 {dimension_numbers = #tpu.dot_dimension_numbers<[1], [0], [0], [1], [0, 0, 1, 1], [], []>} : vector<56x64xf32>, vector<64x64xf32>, vector<56x64xf32> -> vector<56x64xf32>
    %cst_73 = arith.constant dense<0.000000e+00> : vector<56x64xf32>
    %154 = tpu.matmul %118, %134, %cst_73 {dimension_numbers = #tpu.dot_dimension_numbers<[1], [0], [0], [1], [0, 0, 1, 1], [], []>} : vector<56x64xf32>, vector<64x64xf32>, vector<56x64xf32> -> vector<56x64xf32>
    %155 = arith.addf %153, %154 : vector<56x64xf32>
    %cst_74 = arith.constant dense<0.000000e+00> : vector<56x64xf32>
    %156 = tpu.matmul %152, %136, %cst_74 {dimension_numbers = #tpu.dot_dimension_numbers<[1], [0], [0], [1], [0, 0, 1, 1], [], []>} : vector<56x64xf32>, vector<64x64xf32>, vector<56x64xf32> -> vector<56x64xf32>
    %157 = arith.addf %155, %156 : vector<56x64xf32>
    %cst_75 = arith.constant dense<0.000000e+00> : vector<64xf32>
    %158 = vector.multi_reduction <add>, %157, %cst_75 [0] : vector<56x64xf32> to vector<64xf32>
    %159 = vector.shape_cast %158 : vector<64xf32> to vector<1x64xf32>
    %cst_76 = arith.constant 5.600000e+01 : f32
    %160 = vector.broadcast %cst_76 : f32 to vector<1x64xf32>
    %161 = arith.divf %159, %160 : vector<1x64xf32>
    %162 = vector.broadcast %161 : vector<1x64xf32> to vector<56x64xf32>
    %163 = arith.subf %157, %162 : vector<56x64xf32>
    %164 = arith.mulf %163, %163 : vector<56x64xf32>
    %cst_77 = arith.constant dense<0.000000e+00> : vector<64xf32>
    %165 = vector.multi_reduction <add>, %164, %cst_77 [0] : vector<56x64xf32> to vector<64xf32>
    %166 = vector.shape_cast %165 : vector<64xf32> to vector<1x64xf32>
    %cst_78 = arith.constant 5.600000e+01 : f32
    %167 = vector.broadcast %cst_78 : f32 to vector<1x64xf32>
    %168 = arith.divf %166, %167 : vector<1x64xf32>
    %169 = vector.broadcast %161 : vector<1x64xf32> to vector<56x64xf32>
    %170 = arith.subf %157, %169 : vector<56x64xf32>
    %cst_79 = arith.constant 9.99999974E-6 : f32
    %171 = vector.broadcast %cst_79 : f32 to vector<1x64xf32>
    %172 = arith.addf %168, %171 : vector<1x64xf32>
    %173 = math.rsqrt %172 : vector<1x64xf32>
    %174 = vector.broadcast %173 : vector<1x64xf32> to vector<56x64xf32>
    %175 = arith.mulf %170, %174 : vector<56x64xf32>
    %176 = vector.broadcast %137 : vector<1x64xf32> to vector<56x64xf32>
    %177 = arith.mulf %175, %176 : vector<56x64xf32>
    %178 = vector.broadcast %138 : vector<1x64xf32> to vector<56x64xf32>
    %179 = arith.addf %177, %178 : vector<56x64xf32>
    %cst_80 = arith.constant 0.000000e+00 : f32
    %180 = vector.broadcast %cst_80 : f32 to vector<56x64xf32>
    %181 = arith.maximumf %179, %180 : vector<56x64xf32>
    %c9 = arith.constant 9 : index
    %c0_81 = arith.constant 0 : index
    %c0_82 = arith.constant 0 : index
    %182 = vector.load %arg2[%c9, %c0_81, %c0_82] : memref<21x64x64xf32, #tpu.memory_space<vmem>>, vector<1x64x64xf32>
    %183 = vector.shape_cast %182 : vector<1x64x64xf32> to vector<64x64xf32>
    %c10 = arith.constant 10 : index
    %c0_83 = arith.constant 0 : index
    %c0_84 = arith.constant 0 : index
    %184 = vector.load %arg2[%c10, %c0_83, %c0_84] : memref<21x64x64xf32, #tpu.memory_space<vmem>>, vector<1x64x64xf32>
    %185 = vector.shape_cast %184 : vector<1x64x64xf32> to vector<64x64xf32>
    %c11 = arith.constant 11 : index
    %c0_85 = arith.constant 0 : index
    %c0_86 = arith.constant 0 : index
    %186 = vector.load %arg2[%c11, %c0_85, %c0_86] : memref<21x64x64xf32, #tpu.memory_space<vmem>>, vector<1x64x64xf32>
    %187 = vector.shape_cast %186 : vector<1x64x64xf32> to vector<64x64xf32>
    %c6_87 = arith.constant 6 : index
    %c0_88 = arith.constant 0 : index
    %188 = vector.load %arg3[%c6_87, %c0_88] : memref<14x192xf32, #tpu.memory_space<vmem>>, vector<1x64xf32>
    %c7_89 = arith.constant 7 : index
    %c0_90 = arith.constant 0 : index
    %189 = vector.load %arg3[%c7_89, %c0_90] : memref<14x192xf32, #tpu.memory_space<vmem>>, vector<1x64xf32>
    %c0_i32_91 = arith.constant 0 : i32
    %190 = vector.broadcast %c0_i32_91 : i32 to vector<56x1xi32>
    %191 = arith.cmpi eq, %130, %190 : vector<56x1xi32>
    %c1_i32_92 = arith.constant 1 : i32
    %192 = tpu.dynamic_rotate %181 by %c1_i32_92 dim 0 : vector<56x64xf32>, i32 -> vector<56x64xf32>
    %cst_93 = arith.constant 0.000000e+00 : f32
    %193 = vector.shape_cast %191 : vector<56x1xi1> to vector<56x1xi1>
    %194 = vector.broadcast %193 : vector<56x1xi1> to vector<56x64xi1>
    %195 = vector.broadcast %cst_93 : f32 to vector<56x64xf32>
    %196 = arith.select %194, %195, %192 : vector<56x64xi1>, vector<56x64xf32>
    %c27_i32_94 = arith.constant 27 : i32
    %197 = vector.broadcast %c27_i32_94 : i32 to vector<56x1xi32>
    %198 = arith.cmpi eq, %130, %197 : vector<56x1xi32>
    %c55_i32_95 = arith.constant 55 : i32
    %199 = tpu.dynamic_rotate %181 by %c55_i32_95 dim 0 : vector<56x64xf32>, i32 -> vector<56x64xf32>
    %cst_96 = arith.constant 0.000000e+00 : f32
    %200 = vector.shape_cast %198 : vector<56x1xi1> to vector<56x1xi1>
    %201 = vector.broadcast %200 : vector<56x1xi1> to vector<56x64xi1>
    %202 = vector.broadcast %cst_96 : f32 to vector<56x64xf32>
    %203 = arith.select %201, %202, %199 : vector<56x64xi1>, vector<56x64xf32>
    %cst_97 = arith.constant dense<0.000000e+00> : vector<56x64xf32>
    %204 = tpu.matmul %196, %183, %cst_97 {dimension_numbers = #tpu.dot_dimension_numbers<[1], [0], [0], [1], [0, 0, 1, 1], [], []>} : vector<56x64xf32>, vector<64x64xf32>, vector<56x64xf32> -> vector<56x64xf32>
    %cst_98 = arith.constant dense<0.000000e+00> : vector<56x64xf32>
    %205 = tpu.matmul %181, %185, %cst_98 {dimension_numbers = #tpu.dot_dimension_numbers<[1], [0], [0], [1], [0, 0, 1, 1], [], []>} : vector<56x64xf32>, vector<64x64xf32>, vector<56x64xf32> -> vector<56x64xf32>
    %206 = arith.addf %204, %205 : vector<56x64xf32>
    %cst_99 = arith.constant dense<0.000000e+00> : vector<56x64xf32>
    %207 = tpu.matmul %203, %187, %cst_99 {dimension_numbers = #tpu.dot_dimension_numbers<[1], [0], [0], [1], [0, 0, 1, 1], [], []>} : vector<56x64xf32>, vector<64x64xf32>, vector<56x64xf32> -> vector<56x64xf32>
    %208 = arith.addf %206, %207 : vector<56x64xf32>
    %cst_100 = arith.constant dense<0.000000e+00> : vector<64xf32>
    %209 = vector.multi_reduction <add>, %208, %cst_100 [0] : vector<56x64xf32> to vector<64xf32>
    %210 = vector.shape_cast %209 : vector<64xf32> to vector<1x64xf32>
    %cst_101 = arith.constant 5.600000e+01 : f32
    %211 = vector.broadcast %cst_101 : f32 to vector<1x64xf32>
    %212 = arith.divf %210, %211 : vector<1x64xf32>
    %213 = vector.broadcast %212 : vector<1x64xf32> to vector<56x64xf32>
    %214 = arith.subf %208, %213 : vector<56x64xf32>
    %215 = arith.mulf %214, %214 : vector<56x64xf32>
    %cst_102 = arith.constant dense<0.000000e+00> : vector<64xf32>
    %216 = vector.multi_reduction <add>, %215, %cst_102 [0] : vector<56x64xf32> to vector<64xf32>
    %217 = vector.shape_cast %216 : vector<64xf32> to vector<1x64xf32>
    %cst_103 = arith.constant 5.600000e+01 : f32
    %218 = vector.broadcast %cst_103 : f32 to vector<1x64xf32>
    %219 = arith.divf %217, %218 : vector<1x64xf32>
    %220 = vector.broadcast %212 : vector<1x64xf32> to vector<56x64xf32>
    %221 = arith.subf %208, %220 : vector<56x64xf32>
    %cst_104 = arith.constant 9.99999974E-6 : f32
    %222 = vector.broadcast %cst_104 : f32 to vector<1x64xf32>
    %223 = arith.addf %219, %222 : vector<1x64xf32>
    %224 = math.rsqrt %223 : vector<1x64xf32>
    %225 = vector.broadcast %224 : vector<1x64xf32> to vector<56x64xf32>
    %226 = arith.mulf %221, %225 : vector<56x64xf32>
    %227 = vector.broadcast %188 : vector<1x64xf32> to vector<56x64xf32>
    %228 = arith.mulf %226, %227 : vector<56x64xf32>
    %229 = vector.broadcast %189 : vector<1x64xf32> to vector<56x64xf32>
    %230 = arith.addf %228, %229 : vector<56x64xf32>
    %cst_105 = arith.constant 0.000000e+00 : f32
    %231 = vector.broadcast %cst_105 : f32 to vector<56x64xf32>
    %232 = arith.maximumf %230, %231 : vector<56x64xf32>
    %c0_106 = arith.constant 0 : index
    %c0_107 = arith.constant 0 : index
    %233 = vector.load %arg5[%c0_106, %c0_107] : memref<112x64xf32, #tpu.memory_space<vmem>>, vector<56x64xf32>
    tpu.vector_store %arg5[%c0_106, %c0_107], %232 {strides = array<i32>} : memref<112x64xf32, #tpu.memory_space<vmem>>, vector<56x64xf32>,
    %c0_108 = arith.constant 0 : index
    %c0_109 = arith.constant 0 : index
    %234 = tpu.strided_load %arg5[%c0_108, %c0_109] {strides = array<i32: 2, 1>} : memref<112x64xf32, #tpu.memory_space<vmem>>, vector<28x64xf32>
    %c1_110 = arith.constant 1 : index
    %c0_111 = arith.constant 0 : index
    %235 = tpu.strided_load %arg5[%c1_110, %c0_111] {strides = array<i32: 2, 1>} : memref<112x64xf32, #tpu.memory_space<vmem>>, vector<28x64xf32>
    %236 = arith.maximumf %234, %235 : vector<28x64xf32>
    %c0_112 = arith.constant 0 : index
    %c0_113 = arith.constant 0 : index
    %237 = vector.load %arg5[%c0_112, %c0_113] : memref<112x64xf32, #tpu.memory_space<vmem>>, vector<28x64xf32>
    tpu.vector_store %arg5[%c0_112, %c0_113], %236 {strides = array<i32>} : memref<112x64xf32, #tpu.memory_space<vmem>>, vector<28x64xf32>,
    %c0_114 = arith.constant 0 : index
    %c0_115 = arith.constant 0 : index
    %238 = tpu.strided_load %arg5[%c0_114, %c0_115] {strides = array<i32: 2, 1>} : memref<112x64xf32, #tpu.memory_space<vmem>>, vector<14x64xf32>
    %c1_116 = arith.constant 1 : index
    %c0_117 = arith.constant 0 : index
    %239 = tpu.strided_load %arg5[%c1_116, %c0_117] {strides = array<i32: 2, 1>} : memref<112x64xf32, #tpu.memory_space<vmem>>, vector<14x64xf32>
    %240 = arith.addf %238, %239 : vector<14x64xf32>
    %cst_118 = arith.constant 5.000000e-01 : f32
    %241 = vector.broadcast %cst_118 : f32 to vector<14x64xf32>
    %242 = arith.mulf %240, %241 : vector<14x64xf32>
    %c0_119 = arith.constant 0 : index
    %c0_120 = arith.constant 0 : index
    %243 = vector.load %arg1[%c0_119, %c0_120] : memref<64x192xf32, #tpu.memory_space<vmem>>, vector<64x192xf32>
    %cst_121 = arith.constant dense<0.000000e+00> : vector<14x192xf32>
    %244 = tpu.matmul %242, %243, %cst_121 {dimension_numbers = #tpu.dot_dimension_numbers<[1], [0], [0], [1], [0, 0, 1, 1], [], []>} : vector<14x64xf32>, vector<64x192xf32>, vector<14x192xf32> -> vector<14x192xf32>
    %c8_122 = arith.constant 8 : index
    %c0_123 = arith.constant 0 : index
    %245 = vector.load %arg3[%c8_122, %c0_123] : memref<14x192xf32, #tpu.memory_space<vmem>>, vector<1x192xf32>
    %246 = vector.broadcast %245 : vector<1x192xf32> to vector<14x192xf32>
    %247 = arith.addf %244, %246 : vector<14x192xf32>
    %c12 = arith.constant 12 : index
    %c0_124 = arith.constant 0 : index
    %c0_125 = arith.constant 0 : index
    %248 = vector.load %arg2[%c12, %c0_124, %c0_125] : memref<21x64x64xf32, #tpu.memory_space<vmem>>, vector<1x64x64xf32>
    %249 = vector.shape_cast %248 : vector<1x64x64xf32> to vector<64x64xf32>
    %250 = tpu.iota {dimensions = array<i32: 0>} : vector<14x1xi32>
    %251 = arith.sitofp %250 : vector<14x1xi32> to vector<14x1xf32>
    %cst_126 = arith.constant 5.000000e-01 : f32
    %252 = vector.broadcast %cst_126 : f32 to vector<14x1xf32>
    %253 = arith.addf %251, %252 : vector<14x1xf32>
    %cst_127 = arith.constant 0.142857149 : f32
    %254 = vector.broadcast %cst_127 : f32 to vector<14x1xf32>
    %255 = arith.mulf %253, %254 : vector<14x1xf32>
    %256 = math.floor %255 : vector<14x1xf32>
    %257 = arith.fptosi %256 : vector<14x1xf32> to vector<14x1xi32>
    %258 = tpu.iota {dimensions = array<i32: 1>} : vector<1x14xi32>
    %259 = arith.sitofp %258 : vector<1x14xi32> to vector<1x14xf32>
    %cst_128 = arith.constant 5.000000e-01 : f32
    %260 = vector.broadcast %cst_128 : f32 to vector<1x14xf32>
    %261 = arith.addf %259, %260 : vector<1x14xf32>
    %cst_129 = arith.constant 0.142857149 : f32
    %262 = vector.broadcast %cst_129 : f32 to vector<1x14xf32>
    %263 = arith.mulf %261, %262 : vector<1x14xf32>
    %264 = math.floor %263 : vector<1x14xf32>
    %265 = arith.fptosi %264 : vector<1x14xf32> to vector<1x14xi32>
    %266 = vector.broadcast %257 : vector<14x1xi32> to vector<14x14xi32>
    %267 = vector.broadcast %265 : vector<1x14xi32> to vector<14x14xi32>
    %268 = arith.cmpi eq, %266, %267 : vector<14x14xi32>
    %cst_130 = arith.constant 0.000000e+00 : f32
    %269 = vector.broadcast %cst_130 : f32 to vector<14x64xf32>
    %c9_131 = arith.constant 9 : index
    %c0_132 = arith.constant 0 : index
    %270 = vector.load %arg3[%c9_131, %c0_132] : memref<14x192xf32, #tpu.memory_space<vmem>>, vector<1x64xf32>
    %271 = vector.broadcast %270 : vector<1x64xf32> to vector<14x64xf32>
    %272 = arith.addf %269, %271 : vector<14x64xf32>
    %273 = vector.extract_strided_slice %247 {offsets = [0, 0], sizes = [14, 16], strides = [1, 1]} : vector<14x192xf32> to vector<14x16xf32>
    %274 = vector.extract_strided_slice %247 {offsets = [0, 64], sizes = [14, 16], strides = [1, 1]} : vector<14x192xf32> to vector<14x16xf32>
    %275 = vector.extract_strided_slice %247 {offsets = [0, 128], sizes = [14, 16], strides = [1, 1]} : vector<14x192xf32> to vector<14x16xf32>
    %cst_133 = arith.constant dense<0.000000e+00> : vector<14x14xf32>
    %276 = tpu.matmul %273, %274, %cst_133 {dimension_numbers = #tpu.dot_dimension_numbers<[1], [1], [0], [0], [0, 0, 1, 0], [], []>} : vector<14x16xf32>, vector<14x16xf32>, vector<14x14xf32> -> vector<14x14xf32>
    %cst_134 = arith.constant 2.500000e-01 : f32
    %277 = vector.broadcast %cst_134 : f32 to vector<14x14xf32>
    %278 = arith.mulf %276, %277 : vector<14x14xf32>
    %cst_135 = arith.constant -1.000000e+30 : f32
    %279 = vector.broadcast %cst_135 : f32 to vector<14x14xf32>
    %280 = arith.select %268, %278, %279 : vector<14x14xi1>, vector<14x14xf32>
    %cst_136 = arith.constant dense<0xFF800000> : vector<14xf32>
    %281 = vector.multi_reduction <maximumf>, %280, %cst_136 [1] : vector<14x14xf32> to vector<14xf32>
    %282 = vector.shape_cast %281 : vector<14xf32> to vector<14x1xf32>
    %283 = vector.broadcast %282 : vector<14x1xf32> to vector<14x14xf32>
    %284 = arith.subf %280, %283 : vector<14x14xf32>
    %285 = math.exp %284 : vector<14x14xf32>
    %cst_137 = arith.constant dense<0.000000e+00> : vector<14xf32>
    %286 = vector.multi_reduction <add>, %285, %cst_137 [1] : vector<14x14xf32> to vector<14xf32>
    %287 = vector.shape_cast %286 : vector<14xf32> to vector<14x1xf32>
    %288 = tpu.reciprocal %287 {approx = true} : vector<14x1xf32> -> vector<14x1xf32>
    %289 = vector.broadcast %288 : vector<14x1xf32> to vector<14x14xf32>
    %290 = arith.mulf %285, %289 : vector<14x14xf32>
    %cst_138 = arith.constant dense<0.000000e+00> : vector<14x16xf32>
    %291 = tpu.matmul %290, %275, %cst_138 {dimension_numbers = #tpu.dot_dimension_numbers<[1], [0], [0], [1], [0, 0, 1, 1], [], []>} : vector<14x14xf32>, vector<14x16xf32>, vector<14x16xf32> -> vector<14x16xf32>
    %292 = vector.extract_strided_slice %249 {offsets = [0, 0], sizes = [16, 64], strides = [1, 1]} : vector<64x64xf32> to vector<16x64xf32>
    %cst_139 = arith.constant dense<0.000000e+00> : vector<14x64xf32>
    %293 = tpu.matmul %291, %292, %cst_139 {dimension_numbers = #tpu.dot_dimension_numbers<[1], [0], [0], [1], [0, 0, 1, 1], [], []>} : vector<14x16xf32>, vector<16x64xf32>, vector<14x64xf32> -> vector<14x64xf32>
    %294 = arith.addf %272, %293 : vector<14x64xf32>
    %295 = vector.extract_strided_slice %247 {offsets = [0, 16], sizes = [14, 16], strides = [1, 1]} : vector<14x192xf32> to vector<14x16xf32>
    %296 = vector.extract_strided_slice %247 {offsets = [0, 80], sizes = [14, 16], strides = [1, 1]} : vector<14x192xf32> to vector<14x16xf32>
    %297 = vector.extract_strided_slice %247 {offsets = [0, 144], sizes = [14, 16], strides = [1, 1]} : vector<14x192xf32> to vector<14x16xf32>
    %cst_140 = arith.constant dense<0.000000e+00> : vector<14x14xf32>
    %298 = tpu.matmul %295, %296, %cst_140 {dimension_numbers = #tpu.dot_dimension_numbers<[1], [1], [0], [0], [0, 0, 1, 0], [], []>} : vector<14x16xf32>, vector<14x16xf32>, vector<14x14xf32> -> vector<14x14xf32>
    %cst_141 = arith.constant 2.500000e-01 : f32
    %299 = vector.broadcast %cst_141 : f32 to vector<14x14xf32>
    %300 = arith.mulf %298, %299 : vector<14x14xf32>
    %cst_142 = arith.constant -1.000000e+30 : f32
    %301 = vector.broadcast %cst_142 : f32 to vector<14x14xf32>
    %302 = arith.select %268, %300, %301 : vector<14x14xi1>, vector<14x14xf32>
    %cst_143 = arith.constant dense<0xFF800000> : vector<14xf32>
    %303 = vector.multi_reduction <maximumf>, %302, %cst_143 [1] : vector<14x14xf32> to vector<14xf32>
    %304 = vector.shape_cast %303 : vector<14xf32> to vector<14x1xf32>
    %305 = vector.broadcast %304 : vector<14x1xf32> to vector<14x14xf32>
    %306 = arith.subf %302, %305 : vector<14x14xf32>
    %307 = math.exp %306 : vector<14x14xf32>
    %cst_144 = arith.constant dense<0.000000e+00> : vector<14xf32>
    %308 = vector.multi_reduction <add>, %307, %cst_144 [1] : vector<14x14xf32> to vector<14xf32>
    %309 = vector.shape_cast %308 : vector<14xf32> to vector<14x1xf32>
    %310 = tpu.reciprocal %309 {approx = true} : vector<14x1xf32> -> vector<14x1xf32>
    %311 = vector.broadcast %310 : vector<14x1xf32> to vector<14x14xf32>
    %312 = arith.mulf %307, %311 : vector<14x14xf32>
    %cst_145 = arith.constant dense<0.000000e+00> : vector<14x16xf32>
    %313 = tpu.matmul %312, %297, %cst_145 {dimension_numbers = #tpu.dot_dimension_numbers<[1], [0], [0], [1], [0, 0, 1, 1], [], []>} : vector<14x14xf32>, vector<14x16xf32>, vector<14x16xf32> -> vector<14x16xf32>
    %314 = vector.extract_strided_slice %249 {offsets = [16, 0], sizes = [16, 64], strides = [1, 1]} : vector<64x64xf32> to vector<16x64xf32>
    %cst_146 = arith.constant dense<0.000000e+00> : vector<14x64xf32>
    %315 = tpu.matmul %313, %314, %cst_146 {dimension_numbers = #tpu.dot_dimension_numbers<[1], [0], [0], [1], [0, 0, 1, 1], [], []>} : vector<14x16xf32>, vector<16x64xf32>, vector<14x64xf32> -> vector<14x64xf32>
    %316 = arith.addf %294, %315 : vector<14x64xf32>
    %317 = vector.extract_strided_slice %247 {offsets = [0, 32], sizes = [14, 16], strides = [1, 1]} : vector<14x192xf32> to vector<14x16xf32>
    %318 = vector.extract_strided_slice %247 {offsets = [0, 96], sizes = [14, 16], strides = [1, 1]} : vector<14x192xf32> to vector<14x16xf32>
    %319 = vector.extract_strided_slice %247 {offsets = [0, 160], sizes = [14, 16], strides = [1, 1]} : vector<14x192xf32> to vector<14x16xf32>
    %cst_147 = arith.constant dense<0.000000e+00> : vector<14x14xf32>
    %320 = tpu.matmul %317, %318, %cst_147 {dimension_numbers = #tpu.dot_dimension_numbers<[1], [1], [0], [0], [0, 0, 1, 0], [], []>} : vector<14x16xf32>, vector<14x16xf32>, vector<14x14xf32> -> vector<14x14xf32>
    %cst_148 = arith.constant 2.500000e-01 : f32
    %321 = vector.broadcast %cst_148 : f32 to vector<14x14xf32>
    %322 = arith.mulf %320, %321 : vector<14x14xf32>
    %cst_149 = arith.constant -1.000000e+30 : f32
    %323 = vector.broadcast %cst_149 : f32 to vector<14x14xf32>
    %324 = arith.select %268, %322, %323 : vector<14x14xi1>, vector<14x14xf32>
    %cst_150 = arith.constant dense<0xFF800000> : vector<14xf32>
    %325 = vector.multi_reduction <maximumf>, %324, %cst_150 [1] : vector<14x14xf32> to vector<14xf32>
    %326 = vector.shape_cast %325 : vector<14xf32> to vector<14x1xf32>
    %327 = vector.broadcast %326 : vector<14x1xf32> to vector<14x14xf32>
    %328 = arith.subf %324, %327 : vector<14x14xf32>
    %329 = math.exp %328 : vector<14x14xf32>
    %cst_151 = arith.constant dense<0.000000e+00> : vector<14xf32>
    %330 = vector.multi_reduction <add>, %329, %cst_151 [1] : vector<14x14xf32> to vector<14xf32>
    %331 = vector.shape_cast %330 : vector<14xf32> to vector<14x1xf32>
    %332 = tpu.reciprocal %331 {approx = true} : vector<14x1xf32> -> vector<14x1xf32>
    %333 = vector.broadcast %332 : vector<14x1xf32> to vector<14x14xf32>
    %334 = arith.mulf %329, %333 : vector<14x14xf32>
    %cst_152 = arith.constant dense<0.000000e+00> : vector<14x16xf32>
    %335 = tpu.matmul %334, %319, %cst_152 {dimension_numbers = #tpu.dot_dimension_numbers<[1], [0], [0], [1], [0, 0, 1, 1], [], []>} : vector<14x14xf32>, vector<14x16xf32>, vector<14x16xf32> -> vector<14x16xf32>
    %336 = vector.extract_strided_slice %249 {offsets = [32, 0], sizes = [16, 64], strides = [1, 1]} : vector<64x64xf32> to vector<16x64xf32>
    %cst_153 = arith.constant dense<0.000000e+00> : vector<14x64xf32>
    %337 = tpu.matmul %335, %336, %cst_153 {dimension_numbers = #tpu.dot_dimension_numbers<[1], [0], [0], [1], [0, 0, 1, 1], [], []>} : vector<14x16xf32>, vector<16x64xf32>, vector<14x64xf32> -> vector<14x64xf32>
    %338 = arith.addf %316, %337 : vector<14x64xf32>
    %339 = vector.extract_strided_slice %247 {offsets = [0, 48], sizes = [14, 16], strides = [1, 1]} : vector<14x192xf32> to vector<14x16xf32>
    %340 = vector.extract_strided_slice %247 {offsets = [0, 112], sizes = [14, 16], strides = [1, 1]} : vector<14x192xf32> to vector<14x16xf32>
    %341 = vector.extract_strided_slice %247 {offsets = [0, 176], sizes = [14, 16], strides = [1, 1]} : vector<14x192xf32> to vector<14x16xf32>
    %cst_154 = arith.constant dense<0.000000e+00> : vector<14x14xf32>
    %342 = tpu.matmul %339, %340, %cst_154 {dimension_numbers = #tpu.dot_dimension_numbers<[1], [1], [0], [0], [0, 0, 1, 0], [], []>} : vector<14x16xf32>, vector<14x16xf32>, vector<14x14xf32> -> vector<14x14xf32>
    %cst_155 = arith.constant 2.500000e-01 : f32
    %343 = vector.broadcast %cst_155 : f32 to vector<14x14xf32>
    %344 = arith.mulf %342, %343 : vector<14x14xf32>
    %cst_156 = arith.constant -1.000000e+30 : f32
    %345 = vector.broadcast %cst_156 : f32 to vector<14x14xf32>
    %346 = arith.select %268, %344, %345 : vector<14x14xi1>, vector<14x14xf32>
    %cst_157 = arith.constant dense<0xFF800000> : vector<14xf32>
    %347 = vector.multi_reduction <maximumf>, %346, %cst_157 [1] : vector<14x14xf32> to vector<14xf32>
    %348 = vector.shape_cast %347 : vector<14xf32> to vector<14x1xf32>
    %349 = vector.broadcast %348 : vector<14x1xf32> to vector<14x14xf32>
    %350 = arith.subf %346, %349 : vector<14x14xf32>
    %351 = math.exp %350 : vector<14x14xf32>
    %cst_158 = arith.constant dense<0.000000e+00> : vector<14xf32>
    %352 = vector.multi_reduction <add>, %351, %cst_158 [1] : vector<14x14xf32> to vector<14xf32>
    %353 = vector.shape_cast %352 : vector<14xf32> to vector<14x1xf32>
    %354 = tpu.reciprocal %353 {approx = true} : vector<14x1xf32> -> vector<14x1xf32>
    %355 = vector.broadcast %354 : vector<14x1xf32> to vector<14x14xf32>
    %356 = arith.mulf %351, %355 : vector<14x14xf32>
    %cst_159 = arith.constant dense<0.000000e+00> : vector<14x16xf32>
    %357 = tpu.matmul %356, %341, %cst_159 {dimension_numbers = #tpu.dot_dimension_numbers<[1], [0], [0], [1], [0, 0, 1, 1], [], []>} : vector<14x14xf32>, vector<14x16xf32>, vector<14x16xf32> -> vector<14x16xf32>
    %358 = vector.extract_strided_slice %249 {offsets = [48, 0], sizes = [16, 64], strides = [1, 1]} : vector<64x64xf32> to vector<16x64xf32>
    %cst_160 = arith.constant dense<0.000000e+00> : vector<14x64xf32>
    %359 = tpu.matmul %357, %358, %cst_160 {dimension_numbers = #tpu.dot_dimension_numbers<[1], [0], [0], [1], [0, 0, 1, 1], [], []>} : vector<14x16xf32>, vector<16x64xf32>, vector<14x64xf32> -> vector<14x64xf32>
    %360 = arith.addf %338, %359 : vector<14x64xf32>
    %361 = tpu.iota {dimensions = array<i32: 0>} : vector<14x1xi32>
    %362 = tpu.iota {dimensions = array<i32: 0>} : vector<14x1xi32>
    %363 = arith.sitofp %362 : vector<14x1xi32> to vector<14x1xf32>
    %cst_161 = arith.constant 5.000000e-01 : f32
    %364 = vector.broadcast %cst_161 : f32 to vector<14x1xf32>
    %365 = arith.addf %363, %364 : vector<14x1xf32>
    %cst_162 = arith.constant 0.142857149 : f32
    %366 = vector.broadcast %cst_162 : f32 to vector<14x1xf32>
    %367 = arith.mulf %365, %366 : vector<14x1xf32>
    %368 = math.floor %367 : vector<14x1xf32>
    %369 = arith.fptosi %368 : vector<14x1xf32> to vector<14x1xi32>
    %c7_i32 = arith.constant 7 : i32
    %370 = vector.broadcast %c7_i32 : i32 to vector<14x1xi32>
    %371 = arith.muli %369, %370 : vector<14x1xi32>
    %372 = arith.subi %361, %371 : vector<14x1xi32>
    %cst_163 = arith.constant 0.000000e+00 : f32
    %373 = vector.broadcast %cst_163 : f32 to vector<14x64xf32>
    %c0_i32_164 = arith.constant 0 : i32
    %374 = vector.broadcast %c0_i32_164 : i32 to vector<14x1xi32>
    %375 = arith.cmpi eq, %372, %374 : vector<14x1xi32>
    %cst_165 = arith.constant 0.000000e+00 : f32
    %376 = vector.shape_cast %375 : vector<14x1xi1> to vector<14x1xi1>
    %377 = vector.broadcast %376 : vector<14x1xi1> to vector<14x64xi1>
    %378 = vector.broadcast %cst_165 : f32 to vector<14x64xf32>
    %379 = arith.select %377, %360, %378 : vector<14x64xi1>, vector<14x64xf32>
    %c13 = arith.constant 13 : index
    %c0_166 = arith.constant 0 : index
    %c0_167 = arith.constant 0 : index
    %380 = vector.load %arg2[%c13, %c0_166, %c0_167] : memref<21x64x64xf32, #tpu.memory_space<vmem>>, vector<1x64x64xf32>
    %381 = vector.shape_cast %380 : vector<1x64x64xf32> to vector<64x64xf32>
    %cst_168 = arith.constant dense<0.000000e+00> : vector<14x64xf32>
    %382 = tpu.matmul %379, %381, %cst_168 {dimension_numbers = #tpu.dot_dimension_numbers<[1], [0], [0], [1], [0, 0, 1, 1], [], []>} : vector<14x64xf32>, vector<64x64xf32>, vector<14x64xf32> -> vector<14x64xf32>
    %383 = arith.addf %373, %382 : vector<14x64xf32>
    %c1_i32_169 = arith.constant 1 : i32
    %384 = vector.broadcast %c1_i32_169 : i32 to vector<14x1xi32>
    %385 = arith.cmpi eq, %372, %384 : vector<14x1xi32>
    %cst_170 = arith.constant 0.000000e+00 : f32
    %386 = vector.shape_cast %385 : vector<14x1xi1> to vector<14x1xi1>
    %387 = vector.broadcast %386 : vector<14x1xi1> to vector<14x64xi1>
    %388 = vector.broadcast %cst_170 : f32 to vector<14x64xf32>
    %389 = arith.select %387, %360, %388 : vector<14x64xi1>, vector<14x64xf32>
    %c14 = arith.constant 14 : index
    %c0_171 = arith.constant 0 : index
    %c0_172 = arith.constant 0 : index
    %390 = vector.load %arg2[%c14, %c0_171, %c0_172] : memref<21x64x64xf32, #tpu.memory_space<vmem>>, vector<1x64x64xf32>
    %391 = vector.shape_cast %390 : vector<1x64x64xf32> to vector<64x64xf32>
    %cst_173 = arith.constant dense<0.000000e+00> : vector<14x64xf32>
    %392 = tpu.matmul %389, %391, %cst_173 {dimension_numbers = #tpu.dot_dimension_numbers<[1], [0], [0], [1], [0, 0, 1, 1], [], []>} : vector<14x64xf32>, vector<64x64xf32>, vector<14x64xf32> -> vector<14x64xf32>
    %393 = arith.addf %383, %392 : vector<14x64xf32>
    %c2_i32 = arith.constant 2 : i32
    %394 = vector.broadcast %c2_i32 : i32 to vector<14x1xi32>
    %395 = arith.cmpi eq, %372, %394 : vector<14x1xi32>
    %cst_174 = arith.constant 0.000000e+00 : f32
    %396 = vector.shape_cast %395 : vector<14x1xi1> to vector<14x1xi1>
    %397 = vector.broadcast %396 : vector<14x1xi1> to vector<14x64xi1>
    %398 = vector.broadcast %cst_174 : f32 to vector<14x64xf32>
    %399 = arith.select %397, %360, %398 : vector<14x64xi1>, vector<14x64xf32>
    %c15 = arith.constant 15 : index
    %c0_175 = arith.constant 0 : index
    %c0_176 = arith.constant 0 : index
    %400 = vector.load %arg2[%c15, %c0_175, %c0_176] : memref<21x64x64xf32, #tpu.memory_space<vmem>>, vector<1x64x64xf32>
    %401 = vector.shape_cast %400 : vector<1x64x64xf32> to vector<64x64xf32>
    %cst_177 = arith.constant dense<0.000000e+00> : vector<14x64xf32>
    %402 = tpu.matmul %399, %401, %cst_177 {dimension_numbers = #tpu.dot_dimension_numbers<[1], [0], [0], [1], [0, 0, 1, 1], [], []>} : vector<14x64xf32>, vector<64x64xf32>, vector<14x64xf32> -> vector<14x64xf32>
    %403 = arith.addf %393, %402 : vector<14x64xf32>
    %c3_i32 = arith.constant 3 : i32
    %404 = vector.broadcast %c3_i32 : i32 to vector<14x1xi32>
    %405 = arith.cmpi eq, %372, %404 : vector<14x1xi32>
    %cst_178 = arith.constant 0.000000e+00 : f32
    %406 = vector.shape_cast %405 : vector<14x1xi1> to vector<14x1xi1>
    %407 = vector.broadcast %406 : vector<14x1xi1> to vector<14x64xi1>
    %408 = vector.broadcast %cst_178 : f32 to vector<14x64xf32>
    %409 = arith.select %407, %360, %408 : vector<14x64xi1>, vector<14x64xf32>
    %c16 = arith.constant 16 : index
    %c0_179 = arith.constant 0 : index
    %c0_180 = arith.constant 0 : index
    %410 = vector.load %arg2[%c16, %c0_179, %c0_180] : memref<21x64x64xf32, #tpu.memory_space<vmem>>, vector<1x64x64xf32>
    %411 = vector.shape_cast %410 : vector<1x64x64xf32> to vector<64x64xf32>
    %cst_181 = arith.constant dense<0.000000e+00> : vector<14x64xf32>
    %412 = tpu.matmul %409, %411, %cst_181 {dimension_numbers = #tpu.dot_dimension_numbers<[1], [0], [0], [1], [0, 0, 1, 1], [], []>} : vector<14x64xf32>, vector<64x64xf32>, vector<14x64xf32> -> vector<14x64xf32>
    %413 = arith.addf %403, %412 : vector<14x64xf32>
    %c4_i32 = arith.constant 4 : i32
    %414 = vector.broadcast %c4_i32 : i32 to vector<14x1xi32>
    %415 = arith.cmpi eq, %372, %414 : vector<14x1xi32>
    %cst_182 = arith.constant 0.000000e+00 : f32
    %416 = vector.shape_cast %415 : vector<14x1xi1> to vector<14x1xi1>
    %417 = vector.broadcast %416 : vector<14x1xi1> to vector<14x64xi1>
    %418 = vector.broadcast %cst_182 : f32 to vector<14x64xf32>
    %419 = arith.select %417, %360, %418 : vector<14x64xi1>, vector<14x64xf32>
    %c17 = arith.constant 17 : index
    %c0_183 = arith.constant 0 : index
    %c0_184 = arith.constant 0 : index
    %420 = vector.load %arg2[%c17, %c0_183, %c0_184] : memref<21x64x64xf32, #tpu.memory_space<vmem>>, vector<1x64x64xf32>
    %421 = vector.shape_cast %420 : vector<1x64x64xf32> to vector<64x64xf32>
    %cst_185 = arith.constant dense<0.000000e+00> : vector<14x64xf32>
    %422 = tpu.matmul %419, %421, %cst_185 {dimension_numbers = #tpu.dot_dimension_numbers<[1], [0], [0], [1], [0, 0, 1, 1], [], []>} : vector<14x64xf32>, vector<64x64xf32>, vector<14x64xf32> -> vector<14x64xf32>
    %423 = arith.addf %413, %422 : vector<14x64xf32>
    %c5_i32 = arith.constant 5 : i32
    %424 = vector.broadcast %c5_i32 : i32 to vector<14x1xi32>
    %425 = arith.cmpi eq, %372, %424 : vector<14x1xi32>
    %cst_186 = arith.constant 0.000000e+00 : f32
    %426 = vector.shape_cast %425 : vector<14x1xi1> to vector<14x1xi1>
    %427 = vector.broadcast %426 : vector<14x1xi1> to vector<14x64xi1>
    %428 = vector.broadcast %cst_186 : f32 to vector<14x64xf32>
    %429 = arith.select %427, %360, %428 : vector<14x64xi1>, vector<14x64xf32>
    %c18 = arith.constant 18 : index
    %c0_187 = arith.constant 0 : index
    %c0_188 = arith.constant 0 : index
    %430 = vector.load %arg2[%c18, %c0_187, %c0_188] : memref<21x64x64xf32, #tpu.memory_space<vmem>>, vector<1x64x64xf32>
    %431 = vector.shape_cast %430 : vector<1x64x64xf32> to vector<64x64xf32>
    %cst_189 = arith.constant dense<0.000000e+00> : vector<14x64xf32>
    %432 = tpu.matmul %429, %431, %cst_189 {dimension_numbers = #tpu.dot_dimension_numbers<[1], [0], [0], [1], [0, 0, 1, 1], [], []>} : vector<14x64xf32>, vector<64x64xf32>, vector<14x64xf32> -> vector<14x64xf32>
    %433 = arith.addf %423, %432 : vector<14x64xf32>
    %c6_i32 = arith.constant 6 : i32
    %434 = vector.broadcast %c6_i32 : i32 to vector<14x1xi32>
    %435 = arith.cmpi eq, %372, %434 : vector<14x1xi32>
    %cst_190 = arith.constant 0.000000e+00 : f32
    %436 = vector.shape_cast %435 : vector<14x1xi1> to vector<14x1xi1>
    %437 = vector.broadcast %436 : vector<14x1xi1> to vector<14x64xi1>
    %438 = vector.broadcast %cst_190 : f32 to vector<14x64xf32>
    %439 = arith.select %437, %360, %438 : vector<14x64xi1>, vector<14x64xf32>
    %c19 = arith.constant 19 : index
    %c0_191 = arith.constant 0 : index
    %c0_192 = arith.constant 0 : index
    %440 = vector.load %arg2[%c19, %c0_191, %c0_192] : memref<21x64x64xf32, #tpu.memory_space<vmem>>, vector<1x64x64xf32>
    %441 = vector.shape_cast %440 : vector<1x64x64xf32> to vector<64x64xf32>
    %cst_193 = arith.constant dense<0.000000e+00> : vector<14x64xf32>
    %442 = tpu.matmul %439, %441, %cst_193 {dimension_numbers = #tpu.dot_dimension_numbers<[1], [0], [0], [1], [0, 0, 1, 1], [], []>} : vector<14x64xf32>, vector<64x64xf32>, vector<14x64xf32> -> vector<14x64xf32>
    %443 = arith.addf %433, %442 : vector<14x64xf32>
    %444 = tpu.iota {dimensions = array<i32: 1>} : vector<2x14xi32>
    %445 = arith.sitofp %444 : vector<2x14xi32> to vector<2x14xf32>
    %cst_194 = arith.constant 5.000000e-01 : f32
    %446 = vector.broadcast %cst_194 : f32 to vector<2x14xf32>
    %447 = arith.addf %445, %446 : vector<2x14xf32>
    %cst_195 = arith.constant 0.142857149 : f32
    %448 = vector.broadcast %cst_195 : f32 to vector<2x14xf32>
    %449 = arith.mulf %447, %448 : vector<2x14xf32>
    %450 = math.floor %449 : vector<2x14xf32>
    %451 = arith.fptosi %450 : vector<2x14xf32> to vector<2x14xi32>
    %452 = tpu.iota {dimensions = array<i32: 0>} : vector<2x14xi32>
    %453 = arith.cmpi eq, %451, %452 : vector<2x14xi32>
    %cst_196 = arith.constant 1.000000e+00 : f32
    %cst_197 = arith.constant 0.000000e+00 : f32
    %454 = vector.broadcast %cst_196 : f32 to vector<2x14xf32>
    %455 = vector.broadcast %cst_197 : f32 to vector<2x14xf32>
    %456 = arith.select %453, %454, %455 : vector<2x14xi1>, vector<2x14xf32>
    %cst_198 = arith.constant dense<0.000000e+00> : vector<2x64xf32>
    %457 = tpu.matmul %456, %443, %cst_198 {dimension_numbers = #tpu.dot_dimension_numbers<[1], [0], [0], [1], [0, 0, 1, 1], [], []>} : vector<2x14xf32>, vector<14x64xf32>, vector<2x64xf32> -> vector<2x64xf32>
    %c10_199 = arith.constant 10 : index
    %c0_200 = arith.constant 0 : index
    %458 = vector.load %arg3[%c10_199, %c0_200] : memref<14x192xf32, #tpu.memory_space<vmem>>, vector<1x64xf32>
    %459 = vector.broadcast %458 : vector<1x64xf32> to vector<2x64xf32>
    %460 = arith.addf %457, %459 : vector<2x64xf32>
    %cst_201 = arith.constant 0.000000e+00 : f32
    %461 = vector.broadcast %cst_201 : f32 to vector<2x64xf32>
    %462 = arith.maximumf %460, %461 : vector<2x64xf32>
    %c20 = arith.constant 20 : index
    %c0_202 = arith.constant 0 : index
    %c0_203 = arith.constant 0 : index
    %463 = vector.load %arg2[%c20, %c0_202, %c0_203] : memref<21x64x64xf32, #tpu.memory_space<vmem>>, vector<1x64x64xf32>
    %464 = vector.shape_cast %463 : vector<1x64x64xf32> to vector<64x64xf32>
    %cst_204 = arith.constant dense<0.000000e+00> : vector<2x64xf32>
    %465 = tpu.matmul %462, %464, %cst_204 {dimension_numbers = #tpu.dot_dimension_numbers<[1], [0], [0], [1], [0, 0, 1, 1], [], []>} : vector<2x64xf32>, vector<64x64xf32>, vector<2x64xf32> -> vector<2x64xf32>
    %c11_205 = arith.constant 11 : index
    %c0_206 = arith.constant 0 : index
    %466 = vector.load %arg3[%c11_205, %c0_206] : memref<14x192xf32, #tpu.memory_space<vmem>>, vector<1x64xf32>
    %467 = vector.broadcast %466 : vector<1x64xf32> to vector<2x64xf32>
    %468 = arith.addf %465, %467 : vector<2x64xf32>
    %cst_207 = arith.constant 0.000000e+00 : f32
    %469 = vector.broadcast %cst_207 : f32 to vector<2x64xf32>
    %470 = arith.maximumf %468, %469 : vector<2x64xf32>
    %c12_208 = arith.constant 12 : index
    %c0_209 = arith.constant 0 : index
    %471 = vector.load %arg3[%c12_208, %c0_209] : memref<14x192xf32, #tpu.memory_space<vmem>>, vector<1x64xf32>
    %472 = vector.broadcast %471 : vector<1x64xf32> to vector<2x64xf32>
    %473 = arith.mulf %470, %472 : vector<2x64xf32>
    %cst_210 = arith.constant dense<0.000000e+00> : vector<2xf32>
    %474 = vector.multi_reduction <add>, %473, %cst_210 [1] : vector<2x64xf32> to vector<2xf32>
    %475 = vector.shape_cast %474 : vector<2xf32> to vector<2x1xf32>
    %c13_211 = arith.constant 13 : index
    %c0_212 = arith.constant 0 : index
    %476 = vector.load %arg3[%c13_211, %c0_212] : memref<14x192xf32, #tpu.memory_space<vmem>>, vector<1x1xf32>
    %477 = vector.broadcast %476 : vector<1x1xf32> to vector<2x1xf32>
    %478 = arith.addf %475, %477 : vector<2x1xf32>
    %479 = arith.negf %478 : vector<2x1xf32>
    %480 = math.exp %479 : vector<2x1xf32>
    %cst_213 = arith.constant 1.000000e+00 : f32
    %481 = vector.broadcast %cst_213 : f32 to vector<2x1xf32>
    %482 = arith.addf %481, %480 : vector<2x1xf32>
    %483 = arith.divf %481, %482 : vector<2x1xf32>
    %c0_214 = arith.constant 0 : index
    %c0_215 = arith.constant 0 : index
    %484 = vector.load %arg4[%c0_214, %c0_215] : memref<2x1xf32, #tpu.memory_space<vmem>>, vector<2x1xf32>
    tpu.vector_store %arg4[%c0_214, %c0_215], %483 {strides = array<i32>} : memref<2x1xf32, #tpu.memory_space<vmem>>, vector<2x1xf32>,
    return
  }
}

</mosaic_0001>

<bundles_post_ra>
// kernel: tpu_custom_call.1
= control target key start
LH: loop header
LB: loop body
LE: loop exit
PB: predicated region body
PF: predicated region fallthrough
CT: control target
= control target key end

     0   :  { %9 = vsyncpa [#allocation4], 0  ;;  %s7150_s15 = smov [#allocation3]   ;;  %s8900_s0 = inlined_call_operand.vmem [shape: f32[112,64], index: 0, kind: input, shape index: {}]   ;;  %s8901_s1 = inlined_call_operand.vmem [shape: f32[64,192], index: 1, kind: input, shape index: {}]   ;;  %s8902_s2 = inlined_call_operand.hbm [shape: f32[21,64,64], index: 2, kind: input, shape index: {}]   ;;  %s8903_s3 = inlined_call_operand.vmem [shape: f32[14,192], index: 3, kind: input, shape index: {}]   ;;  %s8904_s4 = inlined_call_operand.vmem [shape: f32[2,1], index: 4, kind: output, shape index: {}]  }
   0x1   :  { %s19_s16 = sshll.u32 %s7150_s15, 4  ;;  %s7126_s19 = scalar_lea.hbm %s8902_s2, 21504  ;;  %s20_s16 = int_to_ptr.vmem [resolvable:$true] %s19_s16 }
   0x2   :  { %p7127_p0 = scmp.ne.s32.totalorder %s8902_s2, %s7126_s19  ;;  %p7130_p1 = scmp.lt.u32.totalorder %s7126_s19, %s8902_s2 }
   0x4   :  { %p7132_p2 = pnand %p7130_p1, %p7127_p0 }
   0x6   :  { %7135 = shalt.err (!%p7132_p2)
}
   0x7   :  { %s7136_s24 = scalar_lea.vmem %s20_s16, 21504  ;;  %p7141_p4 = scmp.lt.s32.totalorder %s20_s16, %s20_s16 }
   0x8   :  { %p7137_p3 = scmp.ne.s32.totalorder %s20_s16, %s7136_s24  ;;  %p7142_p5 = scmp.lt.s32.totalorder %s7136_s24, %s7136_s24 }
   0xa   :  { %p7143_p6 = por %p7142_p5, %p7141_p4 }
   0xc   :  { %p7144_p7 = pnand %p7143_p6, %p7137_p3 }
   0xe   :  { %7147 = shalt.err (!%p7144_p7)
}
   0xf   :  { %s7151_s25 = smov 128   ;;  %s7152_s26 = smov 8  }
  0x10   :  { %25 = dma.hbm_to_vmem [thread:$0]  %s8902_s2, 21504, %s20_s16, [#allocation4], %s7151_s25, %s7151_s25, %s7152_s26  }
  0x11   :  { %7148 = dma.done.wait [#allocation4], 21504  }
  0x12   :  { %7149 = vsyncadd [#allocation4], 4294945792  ;;  %v8905_v0 = vlaneseq  ;;  %v167_v3 = vld [vmem:[#allocation3 + $0x40] sm:$0xff]  ;;  %v168_v4 = vld [vmem:[#allocation3 + $0x48] sm:$0xff]  ;;  %vm356_vm0 = vcmask 523264   ;;  %s7156_s23 = smov 64  }
  0x13   :  { %v169_v5 = vld [vmem:[#allocation3 + $0x50] sm:$0xff]  ;;  %v6473_v6 = vpack.c.bf16 %v168_v4, %v167_v3  ;;  %v170_v7 = vld [vmem:[#allocation3 + $0x58] sm:$0xff]  ;;  %v171_v9 = vld [vmem:[#allocation3 + $0x60] sm:$0xff]  ;;  %s7158_s24 = smov 48   ;;  %s7159_s25 = smov 112  }
  0x14   :  { %v7202_v1 = vshrl.u32 %v8905_v0, 7  ;;  %v6477_v8 = vpack.c.bf16 %v170_v7, %v169_v5  ;;  %v172_v10 = vld [vmem:[#allocation3 + $0x68] sm:$0xff]  ;;  %v7208_v11 = vld [vmem:[%s8900_s0] sm:$0xff]  ;;  %v174_v18 = vld [vmem:[#allocation3 + $0x78] sm:$0xff]  ;;  %s7160_s26 = smov 32   ;;  %s7161_s27 = smov 96  }
  0x15   :  { %6474 = vmatprep.subr.bf16.mxu0 %v6473_v6  ;;  %5802 = vmatprep.mubr.msk.f32.mxu0 %vm356_vm0, %v7208_v11  ;;  %v6481_v15 = vpack.c.bf16 %v172_v10, %v171_v9  ;;  %v173_v17 = vld [vmem:[#allocation3 + $0x70] sm:$0xff]  ;;  %v158_v25 = vld [vmem:[#allocation3] sm:$0xff]  ;;  %v159_v26 = vld [vmem:[#allocation3 + $0x8] sm:$0xff]  ;;  %v200_v57 = vrot.slane %v7208_v11, 7  ;;  %s7162_s28 = smov 80   ;;  %s7163_s29 = smov 16  }
  0x16   :  { %v60_v2 = vcvt.s32.f32 %v7202_v1  ;;  %v7215_v13 = vadd.s32 8, %v7202_v1  ;;  %v7218_v14 = vadd.s32 16, %v7202_v1  ;;  %6476 = vmatpush3.bf16.msra.mxu0 %v6473_v6  ;;  %v7221_v16 = vadd.s32 24, %v7202_v1  ;;  %v160_v35 = vld [vmem:[#allocation3 + $0x10] sm:$0xff]  ;;  %v161_v36 = vld [vmem:[#allocation3 + $0x18] sm:$0xff]  ;;  %v7259_v44 = vld [vmem:[%s8900_s0 + $0x10] sm:$0xff] }
  0x17   :  { %6478 = vmatprep.subr.bf16.mxu0 %v6477_v8  ;;  %v7227_v22 = vadd.s32 32, %v7202_v1  ;;  %v6485_v23 = vpack.c.bf16 %v174_v18, %v173_v17  ;;  %v7235_v30 = vadd.s32 40, %v7202_v1  ;;  %v6489_v32 = vpack.c.bf16 %v159_v26, %v158_v25  ;;  %v7249_v41 = vld [vmem:[%s8900_s0 + $0x8] sm:$0xff]  ;;  %v162_v48 = vld [vmem:[#allocation3 + $0x20] sm:$0xff]  ;;  %v163_v49 = vld [vmem:[#allocation3 + $0x28] sm:$0xff] }
  0x18   :  { %v7210_v12 = vadd.f32 0.5, %v60_v2  ;;  %8933 = vst [vmem:[#allocation6_spill] sm:$0xff] %v7215_v13  ;;  %8934 = vst [vmem:[#allocation7_spill] sm:$0xff] %v7218_v14  ;;  %v61_v20 = vcvt.s32.f32 %v7215_v13  ;;  %v62_v21 = vcvt.s32.f32 %v7218_v14  ;;  %v63_v24 = vcvt.s32.f32 %v7221_v16  ;;  %v7272_v54 = vld [vmem:[%s8900_s0 + $0x18] sm:$0xff]  ;;  %v7281_v58 = vld [vmem:[%s8900_s0 + $0x20] sm:$0xff] }
  0x19   :  { %8935 = vst [vmem:[#allocation8_spill] sm:$0xff] %v7221_v16  ;;  %v64_v31 = vcvt.s32.f32 %v7227_v22  ;;  %v7241_v34 = vadd.s32 48, %v7202_v1  ;;  %v65_v40 = vcvt.s32.f32 %v7235_v30  ;;  %v7254_v43 = vadd.s32 56, %v7202_v1  ;;  %v7286_v60 = vld [vmem:[%s8900_s0 + $0x68] sm:$0xff]  ;;  %v164_v3 = vld [vmem:[#allocation3 + $0x30] sm:$0xff] }
  0x1a   :  { %v88_v19 = vmul.f32 0.017857144, %v7210_v12  ;;  %6480 = vmatpush3.bf16.msra.mxu0 %v6477_v8  ;;  %v7230_v28 = vadd.f32 0.5, %v61_v20  ;;  %v7232_v29 = vadd.f32 0.5, %v62_v21  ;;  %v7238_v33 = vadd.f32 0.5, %v63_v24  ;;  %v165_v4 = vld [vmem:[#allocation3 + $0x38] sm:$0xff] }
  0x1b   :  { %6482 = vmatprep.subr.bf16.mxu0 %v6481_v15  ;;  %v7251_v42 = vadd.f32 0.5, %v64_v31  ;;  %v6493_v45 = vpack.c.bf16 %v161_v36, %v160_v35  ;;  %v66_v47 = vcvt.s32.f32 %v7241_v34  ;;  %v7265_v53 = vadd.f32 0.5, %v65_v40  ;;  %v176_v36 = vld [vmem:[#allocation3 + $0x80] sm:$0xff] }
  0x1c   :  { %v102_v27 = vfloor.f32 %v88_v19  ;;  %v89_v38 = vmul.f32 0.017857144, %v7230_v28  ;;  %v90_v39 = vmul.f32 0.017857144, %v7232_v29  ;;  %v91_v46 = vmul.f32 0.017857144, %v7238_v33 }
  0x1d   :  { %8936 = vst [vmem:[#allocation9_spill] sm:$0xff] %v7265_v53  ;;  %vm214_vm1 = vcmp.lt.s32.totalorder %v7202_v1, 1  ;;  %v92_v55 = vmul.f32 0.017857144, %v7251_v42  ;;  %v67_v56 = vcvt.s32.f32 %v7254_v43  ;;  %v6497_v59 = vpack.c.bf16 %v163_v49, %v162_v48 }
  0x1e   :  { %6484 = vmatpush3.bf16.msra.mxu0 %v6481_v15  ;;  %v6985_v37 = vtrunc.f32 %v102_v27  ;;  %v103_v51 = vfloor.f32 %v89_v38  ;;  %v104_v52 = vfloor.f32 %v90_v39  ;;  %v105_v61 = vfloor.f32 %v91_v46  ;;  %v7304_v15 = vld [vmem:[%s8900_s0 + $0x28] sm:$0xff]  ;;  %v7331_v46 = vld [vmem:[%s8900_s0 + $0x38] sm:$0xff] }
  0x1f   :  { %6486 = vmatprep.subr.bf16.mxu0 %v6485_v23  ;;  %v7288_v62 = vadd.f32 0.5, %v66_v47  ;;  %v201_v63 = vrot.slane %v7249_v41, 7  ;;  %v202_v2 = vrot.slane %v7259_v44, 7  ;;  %v7293_v6 = vadd.s32 64, %v7202_v1 }
  0x20   :  { %v6986_v50 = vcvt.f32.s32 %v6985_v37  ;;  %v8907_v7 = vrot.slane %v7272_v54, 7  ;;  %v6987_v8 = vtrunc.f32 %v103_v51  ;;  %v6989_v9 = vtrunc.f32 %v104_v52  ;;  %v177_v37 = vld [vmem:[#allocation3 + $0x88] sm:$0xff]  ;;  %v7343_v51 = vld [vmem:[%s8900_s0 + $0x40] sm:$0xff] }
  0x21   :  { %8937 = vst [vmem:[#allocation10_spill] sm:$0xff] %v7288_v62  ;;  %v93_v10 = vmul.f32 0.017857144, %v7265_v53  ;;  %v8906_v17 = vrot.slane %v7286_v60, 7  ;;  %v106_v18 = vfloor.f32 %v92_v55  ;;  %v81_v19 = vadd.f32 0.5, %v67_v56 }
  0x22   :  { %6488 = vmatpush3.bf16.msra.mxu0 %v6485_v23  ;;  %v130_v5 = vmul.u32 56, %v6986_v50  ;;  %v68_v20 = vcvt.s32.f32 %v7293_v6  ;;  %v7312_v23 = vld [vmem:[%s8900_s0 + $0x30] sm:$0xff]  ;;  %v6501_v24 = vpack.c.bf16 %v165_v4, %v164_v3  ;;  %v6991_v25 = vtrunc.f32 %v105_v61 }
  0x23   :  { %6490 = vmatprep.subr.bf16.mxu0 %v6489_v32  ;;  %v94_v26 = vmul.f32 0.017857144, %v7288_v62  ;;  %v7322_v35 = vsel %vm214_vm1, %v200_v57, %v201_v63  ;;  %v6988_v38 = vcvt.f32.s32 %v6987_v8  ;;  %v6990_v39 = vcvt.f32.s32 %v6989_v9 }
  0x24   :  { %v107_v40 = vfloor.f32 %v93_v10  ;;  %v228_v47 = vsel %vm214_vm1, %v8906_v17, %v200_v57  ;;  %v6993_v48 = vtrunc.f32 %v106_v18  ;;  %v95_v49 = vmul.f32 0.017857144, %v81_v19 }
  0x25   :  { %5803 = vmatmul.mubr.msk.f32.vlgmr.msra.gmra.mrb[0].mxu0 %vm356_vm0, %v7249_v41  ;;  %v7338_v50 = vadd.s32 72, %v7202_v1  ;;  %v7347_v52 = vsel %vm214_vm1, %v201_v63, %v202_v2  ;;  %v6992_v55 = vcvt.f32.s32 %v6991_v25  ;;  %v7349_v56 = vpack.c.bf16 %v177_v37, %v176_v36 }
  0x26   :  { %5805 = vmatprep.mubr.msk.f32.mxu0 %vm356_vm0, %v7259_v44  ;;  %6492 = vmatpush3.bf16.msra.mxu0 %v6489_v32  ;;  %v7318_v32 = vsub.s32 %v7202_v1, %v130_v5  ;;  %v7356_v57 = vsel %vm214_vm1, %v202_v2, %v8907_v7  ;;  %v131_v63 = vmul.u32 56, %v6988_v38  ;;  %v132_v4 = vmul.u32 56, %v6990_v39  ;;  %v7369_v2 = vld [vmem:[%s8900_s0 + $0x48] sm:$0xff] }
  0x27   :  { %6494 = vmatprep.subr.bf16.mxu0 %v6493_v45  ;;  %v69_v3 = vcvt.s32.f32 %v7338_v50  ;;  %v6995_v5 = vtrunc.f32 %v107_v40  ;;  %v7362_v8 = vadd.s32 80, %v7202_v1  ;;  %v6994_v9 = vcvt.f32.s32 %v6993_v48 }
  0x28   :  { %vm186_vm2 = vcmp.eq.s32.totalorder %v7318_v32, 0  ;;  %v109_v10 = vfloor.f32 %v95_v49  ;;  %v7372_v19 = vadd.s32 88, %v7202_v1  ;;  %v7385_v40 = vadd.s32 96, %v7202_v1 }
  0x29   :  { %5806 = vmatmul.mubr.msk.f32.gmra.mrb[2].mxu0 %vm356_vm0, %v7272_v54  ;;  %v83_v18 = vadd.f32 0.5, %v69_v3  ;;  %v257_v25 = vsel %vm186_vm2, 0.0, %v228_v47  ;;  %v7393_v47 = vsub.s32 %v7218_v14, %v132_v4  ;;  %v6996_v48 = vcvt.f32.s32 %v6995_v5 }
  0x2a   :  { %5808 = vmatprep.mubr.msk.f32.mxu0 %vm356_vm0, %v7281_v58  ;;  %6496 = vmatpush3.bf16.msra.mxu0 %v6493_v45  ;;  %v82_v45 = vadd.f32 0.5, %v68_v20  ;;  %v7377_v20 = vld [vmem:[%s8900_s0 + $0x50] sm:$0xff]  ;;  %v71_v39 = vcvt.s32.f32 %v7372_v19  ;;  %v7409_v0 = vadd.s32 104, %v7202_v1  ;;  %v8938_v14 = vrot.slane %v7281_v58, 7 }
  0x2b   :  { %6498 = vmatprep.subr.bf16.mxu0 %v6497_v59  ;;  %v97_v38 = vmul.f32 0.017857144, %v83_v18  ;;  %v72_v18 = vcvt.s32.f32 %v7385_v40  ;;  %vm188_vm4 = vcmp.eq.s32.totalorder %v7393_v47, 0  ;;  %vm299_vm15 = vcmp.lt.s32.totalorder %v7202_v1, 7 }
  0x2c   :  { %v96_v61 = vmul.f32 0.017857144, %v82_v45  ;;  %v7390_v45 = vsub.s32 %v7215_v13, %v131_v63  ;;  %v85_v3 = vadd.f32 0.5, %v71_v39  ;;  %v7406_v63 = vld [vmem:[%s8900_s0 + $0x60] sm:$0xff] }
  0x2d   :  { %5809 = vmatmul.mubr.msk.f32.gmra.mrb[4].mxu0 %vm356_vm0, %v7304_v15  ;;  %v111_v5 = vfloor.f32 %v97_v38 }
  0x2e   :  { %5811 = vmatprep.mubr.msk.f32.mxu0 %vm356_vm0, %v7312_v23  ;;  %6500 = vmatpush3.bf16.msra.mxu0 %v6497_v59  ;;  %v108_v59 = vfloor.f32 %v94_v26  ;;  %v133_v26 = vmul.u32 56, %v6992_v55  ;;  %v110_v37 = vfloor.f32 %v96_v61  ;;  %v7400_v55 = vld [vmem:[%s8900_s0 + $0x58] sm:$0xff]  ;;  %v6999_v61 = vtrunc.f32 %v109_v10 }
  0x2f   :  { %6502 = vmatprep.subr.bf16.mxu0 %v6501_v24  ;;  %v86_v10 = vadd.f32 0.5, %v72_v18  ;;  %vm187_vm3 = vcmp.eq.s32.totalorder %v7390_v45, 0  ;;  %v7003_v7 = vtrunc.f32 %v111_v5 }
  0x30   :  { %v6997_v36 = vtrunc.f32 %v108_v59  ;;  %v134_v59 = vmul.u32 56, %v6994_v9  ;;  %v7412_v17 = vsub.s32 %v7221_v16, %v133_v26  ;;  %v7001_v31 = vtrunc.f32 %v110_v37  ;;  %v178_v37 = vld [vmem:[#allocation3 + $0x90] sm:$0xff] }
  0x31   :  { %5812 = vmatmul.mubr.msk.f32.gmra.mrb[6].mxu0 %vm356_vm0, %v7331_v46  ;;  %v99_v9 = vmul.f32 0.017857144, %v85_v3  ;;  %v135_v26 = vmul.u32 56, %v6996_v48  ;;  %v7000_v3 = vcvt.f32.s32 %v6999_v61  ;;  %v100_v18 = vmul.f32 0.017857144, %v86_v10  ;;  %v180_v10 = vld [vmem:[#allocation3 + $0xa0] sm:$0xff] }
  0x32   :  { %5814 = vmatprep.mubr.msk.f32.mxu0 %vm356_vm0, %v7343_v51  ;;  %6504 = vmatpush3.bf16.msra.mxu0 %v6501_v24  ;;  %v70_v24 = vcvt.s32.f32 %v7362_v8  ;;  %v6998_v4 = vcvt.f32.s32 %v6997_v36  ;;  %v73_v36 = vcvt.s32.f32 %v7409_v0  ;;  %v7422_v38 = vsub.s32 %v7227_v22, %v134_v59 }
  0x33   :  { %6506 = vmatprep.subr.bf16.mxu0 %v7349_v56  ;;  %v113_v21 = vfloor.f32 %v99_v9  ;;  %v7002_v13 = vcvt.f32.s32 %v7001_v31  ;;  %v114_v59 = vfloor.f32 %v100_v18  ;;  %v258_v48 = vsel %vm187_vm3, 0.0, %v7322_v35 }
  0x34   :  { %v84_v49 = vadd.f32 0.5, %v70_v24  ;;  %v136_v27 = vmul.u32 56, %v6998_v4  ;;  %v87_v16 = vadd.f32 0.5, %v73_v36  ;;  %vm189_vm5 = vcmp.eq.s32.totalorder %v7412_v17, 0 }
  0x35   :  { %5815 = vmatmul.mubr.msk.f32.gmra.mrb[8].mxu0 %vm356_vm0, %v7369_v2  ;;  %vm190_vm6 = vcmp.eq.s32.totalorder %v7422_v38, 0  ;;  %v7442_v31 = vsub.s32 %v7235_v30, %v135_v26  ;;  %v137_v5 = vmul.u32 56, %v7000_v3  ;;  %v7004_v35 = vcvt.f32.s32 %v7003_v7 }
  0x36   :  { %5817 = vmatprep.mubr.msk.f32.mxu0 %vm356_vm0, %v7377_v20  ;;  %v98_v24 = vmul.f32 0.017857144, %v84_v49  ;;  %v179_v49 = vld [vmem:[#allocation3 + $0x98] sm:$0xff]  ;;  %v101_v4 = vmul.f32 0.017857144, %v87_v16  ;;  %v7445_v9 = vsub.s32 %v7241_v34, %v136_v27  ;;  %v7007_v36 = vtrunc.f32 %v113_v21 }
  0x37   :  { %v6509_v61 = vpack.c.bf16 %v179_v49, %v178_v37  ;;  %v138_v37 = vmul.u32 56, %v7002_v13  ;;  %v7009_v49 = vtrunc.f32 %v114_v59  ;;  %v207_v18 = vrot.slane %v7331_v46, 7 }
  0x38   :  { %v112_v39 = vfloor.f32 %v98_v24  ;;  %v8939_v24 = vrot.slane %v7272_v54, 7  ;;  %v115_v16 = vfloor.f32 %v101_v4  ;;  %v8940_v26 = vrot.slane %v7304_v15, 7 }
  0x39   :  { %5818 = vmatmul.mubr.msk.f32.gmra.mrb[10].mxu0 %vm356_vm0, %v7400_v55  ;;  %v8941_v27 = vrot.slane %v7281_v58, 7  ;;  %v8942_v21 = vrot.slane %v7312_v23, 7  ;;  %vm191_vm7 = vcmp.eq.s32.totalorder %v7442_v31, 0  ;;  %v7470_v3 = vsub.s32 %v7254_v43, %v137_v5 }
  0x3a   :  { %5820 = vmatprep.mubr.msk.f32.mxu0 %vm356_vm0, %v7406_v63  ;;  %v224_v62 = vsel %vm214_vm1, %v8939_v24, %v8938_v14  ;;  %v7005_v53 = vtrunc.f32 %v112_v39  ;;  %v259_v14 = vsel %vm188_vm4, 0.0, %v7347_v52  ;;  %v181_v39 = vld [vmem:[#allocation3 + $0xa8] sm:$0xff]  ;;  %v260_v52 = vsel %vm189_vm5, 0.0, %v7356_v57 }
  0x3b   :  { %v223_v7 = vsel %vm214_vm1, %v8941_v27, %v8940_v26  ;;  %v8943_v13 = vmov %v8940_v26  ;;  %v261_v57 = vsel %vm190_vm6, 0.0, %v224_v62  ;;  %v6513_v24 = vpack.c.bf16 %v181_v39, %v180_v10  ;;  %v182_v62 = vld [vmem:[#allocation3 + $0xb0] sm:$0xff] }
  0x3c   :  { %vm192_vm8 = vcmp.eq.s32.totalorder %v7445_v9, 0  ;;  %v139_v59 = vmul.u32 56, %v7004_v35  ;;  %v7011_v4 = vtrunc.f32 %v115_v16  ;;  %v208_v26 = vrot.slane %v7343_v51, 7 }
  0x3d   :  { %5821 = vmatmul.mubr.msk.f32.gmra.mrb[12].mxu0 %vm356_vm0, %v7286_v60  ;;  %v7010_v27 = vcvt.f32.s32 %v7009_v49  ;;  %v210_v43 = vrot.slane %v7377_v20, 7  ;;  %v262_v5 = vsel %vm191_vm7, 0.0, %v223_v7  ;;  %vm193_vm9 = vcmp.eq.s32.totalorder %v7470_v3, 0 }
  0x3e   :  { %5839 = vmatprep.mubr.msk.f32.mxu0 %vm356_vm0, %v257_v25  ;;  %v7006_v25 = vcvt.f32.s32 %v7005_v53  ;;  %v222_v53 = vsel %vm214_vm1, %v8943_v13, %v8942_v21  ;;  %v183_v21 = vld [vmem:[#allocation3 + $0xb8] sm:$0xff]  ;;  %v209_v13 = vrot.slane %v7369_v2, 7  ;;  %v7491_v39 = vsub.s32 %v7338_v50, %v139_v59 }
  0x3f   :  { %v263_v35 = vsel %vm192_vm8, 0.0, %v222_v53  ;;  %v7012_v16 = vcvt.f32.s32 %v7011_v4 }
  0x40   :  { %v219_v7 = vsel %vm214_vm1, %v208_v26, %v209_v13  ;;  %vm8915_vm11 = vcmp.eq.s32.totalorder %v7491_v39, 0  ;;  %v218_v59 = vsel %vm214_vm1, %v209_v13, %v210_v43 }
  0x41   :  { %5840 = vmatmul.mubr.msk.f32.vlgmr.msra.gmra.mrb[0].mxu0 %vm356_vm0, %v258_v48  ;;  %v7008_v48 = vcvt.f32.s32 %v7007_v36  ;;  %v143_v53 = vmul.u32 56, %v7012_v16  ;;  %v291_v16 = vrot.slane %v7312_v23, 1 }
  0x42   :  { %5842 = vmatprep.mubr.msk.f32.mxu0 %vm356_vm0, %v259_v14  ;;  %6508 = vmatpush3.bf16.msra.mxu0 %v7349_v56  ;;  %v7475_v14 = vsub.s32 %v7293_v6, %v138_v37  ;;  %v140_v56 = vmul.u32 56, %v7006_v25  ;;  %v8944_v6 = vrot.slane %v7312_v23, 7  ;;  %v6517_v37 = vpack.c.bf16 %v183_v21, %v182_v62 }
  0x43   :  { %6510 = vmatprep.subr.bf16.mxu0 %v6509_v61  ;;  %v141_v36 = vmul.u32 56, %v7008_v48  ;;  %v220_v25 = vsel %vm214_vm1, %v207_v18, %v208_v26  ;;  %v7529_v26 = vsub.s32 %v7409_v0, %v143_v53  ;;  %v287_v0 = vrot.slane %v7259_v44, 1 }
  0x44   :  { %v221_v10 = vsel %vm214_vm1, %v8944_v6, %v207_v18  ;;  %vm194_vm10 = vcmp.eq.s32.totalorder %v7475_v14, 0  ;;  %v7497_v49 = vsub.s32 %v7362_v8, %v140_v56  ;;  %v286_v56 = vrot.slane %v7249_v41, 1 }
  0x45   :  { %5843 = vmatmul.mubr.msk.f32.gmra.mrb[2].mxu0 %vm356_vm0, %v260_v52  ;;  %v142_v52 = vmul.u32 56, %v7010_v27  ;;  %v264_v50 = vsel %vm193_vm9, 0.0, %v221_v10  ;;  %v265_v18 = vsel %vm194_vm10, 0.0, %v220_v25  ;;  %v7510_v8 = vsub.s32 %v7372_v19, %v141_v36 }
  0x46   :  { %5845 = vmatprep.mubr.msk.f32.mxu0 %vm356_vm0, %v261_v57  ;;  %6512 = vmatpush3.bf16.msra.mxu0 %v6509_v61  ;;  %v211_v61 = vrot.slane %v7400_v55, 7  ;;  %v212_v57 = vrot.slane %v7406_v63, 7  ;;  %vm8914_vm12 = vcmp.eq.s32.totalorder %v7497_v49, 0  ;;  %v266_v19 = vsel %vm8915_vm11, 0.0, %v219_v7 }
  0x47   :  { %6514 = vmatprep.subr.bf16.mxu0 %v6513_v24  ;;  %v7517_v48 = vsub.s32 %v7385_v40, %v142_v52  ;;  %vm8917_vm13 = vcmp.eq.s32.totalorder %v7510_v8, 0  ;;  %v285_v40 = vrot.slane %v7208_v11, 1  ;;  %v8945_v41 = vrot.slane %v7286_v60, 7  ;;  %v1058_v11 = vld [vmem:[#allocation3 + $0xc0] sm:$0xff] }
  0x48   :  { %v217_v4 = vsel %vm214_vm1, %v210_v43, %v211_v61  ;;  %v216_v27 = vsel %vm214_vm1, %v211_v61, %v212_v57  ;;  %v288_v43 = vrot.slane %v7272_v54, 1  ;;  %vm8918_vm11 = vcmp.eq.s32.totalorder %v7318_v32, 55 }
  0x49   :  { %5846 = vmatmul.mubr.msk.f32.gmra.mrb[4].mxu0 %vm356_vm0, %v262_v5  ;;  %vm8916_vm14 = vcmp.eq.s32.totalorder %v7517_v48, 0  ;;  %v268_v62 = vsel %vm8917_vm13, 0.0, %v217_v4  ;;  %v215_v13 = vsel %vm214_vm1, %v212_v57, %v8945_v41  ;;  %v312_v5 = vsel %vm299_vm15, %v285_v40, %v286_v56 }
  0x4a   :  { %5848 = vmatprep.mubr.msk.f32.mxu0 %vm356_vm0, %v263_v35  ;;  %6516 = vmatpush3.bf16.msra.mxu0 %v6513_v24  ;;  %v267_v24 = vsel %vm8914_vm12, 0.0, %v218_v59  ;;  %v269_v21 = vsel %vm8916_vm14, 0.0, %v216_v27  ;;  %vm8919_vm12 = vcmp.eq.s32.totalorder %v7529_v26, 0  ;;  %v289_v35 = vrot.slane %v7281_v58, 1 }
  0x4b   :  { %6518 = vmatprep.subr.bf16.mxu0 %v6517_v37  ;;  %v270_v44 = vsel %vm8919_vm12, 0.0, %v215_v13  ;;  %v342_v6 = vsel %vm8918_vm11, 0.0, %v312_v5  ;;  %vm8921_vm14 = vcmp.eq.s32.totalorder %v7390_v45, 55  ;;  %v311_v54 = vsel %vm299_vm15, %v286_v56, %v287_v0  ;;  %v1067_v5 = vld [vmem:[#allocation3 + $0x100] sm:$0xff] }
  0x4c   :  { %v290_v10 = vrot.slane %v7304_v15, 1  ;;  %vm8920_vm13 = vcmp.eq.s32.totalorder %v7393_v47, 55  ;;  %v310_v36 = vsel %vm299_vm15, %v287_v0, %v288_v43  ;;  %v343_v58 = vsel %vm8921_vm14, 0.0, %v311_v54  ;;  %v1070_v54 = vld [vmem:[#allocation3 + $0x118] sm:$0xff] }
  0x4d   :  { %5849 = vmatmul.mubr.msk.f32.gmra.mrb[6].mxu0 %vm356_vm0, %v264_v50  ;;  %vm8923_vm11 = vcmp.eq.s32.totalorder %v7412_v17, 55  ;;  %v309_v15 = vsel %vm299_vm15, %v288_v43, %v289_v35  ;;  %v292_v25 = vrot.slane %v7331_v46, 1  ;;  %vm8922_vm12 = vcmp.eq.s32.totalorder %v7422_v38, 55 }
  0x4e   :  { %5851 = vmatprep.mubr.msk.f32.mxu0 %vm356_vm0, %v265_v18  ;;  %6520 = vmatpush3.bf16.msra.mxu0 %v6517_v37  ;;  %v344_v37 = vsel %vm8920_vm13, 0.0, %v310_v36  ;;  %v308_v52 = vsel %vm299_vm15, %v289_v35, %v290_v10  ;;  %v345_v23 = vsel %vm8923_vm11, 0.0, %v309_v15  ;;  %v293_v61 = vrot.slane %v7343_v51, 1  ;;  %v1059_v36 = vld [vmem:[#allocation3 + $0xc8] sm:$0xff] }
  0x4f   :  { %v346_v50 = vsel %vm8922_vm12, 0.0, %v308_v52  ;;  %vm8925_vm13 = vcmp.eq.s32.totalorder %v7442_v31, 55  ;;  %v307_v46 = vsel %vm299_vm15, %v290_v10, %v291_v16  ;;  %v294_v7 = vrot.slane %v7369_v2, 1 }
  0x50   :  { %vm8924_vm14 = vcmp.eq.s32.totalorder %v7445_v9, 55  ;;  %v306_v18 = vsel %vm299_vm15, %v291_v16, %v292_v25  ;;  %v347_v51 = vsel %vm8925_vm13, 0.0, %v307_v46  ;;  %v295_v53 = vrot.slane %v7377_v20, 1  ;;  %v1072_v16 = vld [vmem:[#allocation3 + $0x128] sm:$0xff] }
  0x51   :  { %5852 = vmatmul.mubr.msk.f32.gmra.mrb[8].mxu0 %vm356_vm0, %v266_v19  ;;  %v348_v57 = vsel %vm8924_vm14, 0.0, %v306_v18  ;;  %vm8927_vm12 = vcmp.eq.s32.totalorder %v7470_v3, 55  ;;  %v305_v2 = vsel %vm299_vm15, %v292_v25, %v293_v61  ;;  %v296_v59 = vrot.slane %v7400_v55, 1  ;;  %v1061_v25 = vld [vmem:[#allocation3 + $0xd8] sm:$0xff] }
  0x52   :  { %5854 = vmatprep.mubr.msk.f32.mxu0 %vm356_vm0, %v267_v24  ;;  %vm8926_vm11 = vcmp.eq.s32.totalorder %v7475_v14, 55  ;;  %v304_v19 = vsel %vm299_vm15, %v293_v61, %v294_v7  ;;  %v349_v20 = vsel %vm8927_vm12, 0.0, %v305_v2  ;;  %v297_v24 = vrot.slane %v7406_v63, 1  ;;  %v1074_v61 = vld [vmem:[#allocation3 + $0x138] sm:$0xff]  ;;  %v1076_v2 = vld [vmem:[#allocation3 + $0x140] sm:$0xff] }
  0x53   :  { %v350_v4 = vsel %vm8926_vm11, 0.0, %v304_v19  ;;  %vm280_vm14 = vcmp.eq.s32.totalorder %v7491_v39, 55  ;;  %v303_v55 = vsel %vm299_vm15, %v294_v7, %v295_v53  ;;  %v298_v56 = vrot.slane %v7286_v60, 1  ;;  %v1063_v7 = vld [vmem:[#allocation3 + $0xe8] sm:$0xff] }
  0x54   :  { %vm8928_vm13 = vcmp.eq.s32.totalorder %v7497_v49, 55  ;;  %v302_v27 = vsel %vm299_vm15, %v295_v53, %v296_v59  ;;  %v351_v63 = vsel %vm280_vm14, 0.0, %v303_v55  ;;  %vm282_vm11 = vcmp.eq.s32.totalorder %v7510_v8, 55  ;;  %v1065_v53 = vld [vmem:[#allocation3 + $0xf8] sm:$0xff] }
  0x55   :  { %5855 = vmatmul.mubr.msk.f32.gmra.mrb[10].mxu0 %vm356_vm0, %v268_v62  ;;  %v352_v62 = vsel %vm8928_vm13, 0.0, %v302_v27  ;;  %v301_v60 = vsel %vm299_vm15, %v296_v59, %v297_v24  ;;  %vm283_vm12 = vcmp.eq.s32.totalorder %v7517_v48, 55  ;;  %v300_v0 = vsel %vm299_vm15, %v297_v24, %v298_v56  ;;  %v1077_v59 = vld [vmem:[#allocation3 + $0x148] sm:$0xff] }
  0x56   :  { %5857 = vmatprep.mubr.msk.f32.mxu0 %vm356_vm0, %v269_v21  ;;  %v353_v21 = vsel %vm282_vm11, 0.0, %v301_v60  ;;  %v354_v41 = vsel %vm283_vm12, 0.0, %v300_v0  ;;  %vm284_vm13 = vcmp.eq.s32.totalorder %v7529_v26, 55  ;;  %v313_v13 = vsel %vm299_vm15, %v298_v56, %v285_v40 }
  0x57   :  { %v355_v43 = vsel %vm284_vm13, 0.0, %v313_v13  ;;  %v6537_v40 = vpack.c.bf16 %v1059_v36, %v1058_v11  ;;  %v7653_v19 = vpack.c.bf16 %v1077_v59, %v1076_v2 }
  0x59   :  { %5858 = vmatmul.mubr.msk.f32.gmra.mrb[12].mxu0 %vm356_vm0, %v270_v44  ;;  %v1068_v44 = vld [vmem:[#allocation3 + $0x108] sm:$0xff]  ;;  %6538 = vmatprep.subr.bf16.mxu1 %v6537_v40 }
  0x5a   :  { %5876 = vmatprep.mubr.msk.f32.mxu0 %vm356_vm0, %v342_v6  ;;  %v6521_v35 = vpack.c.bf16 %v1068_v44, %v1067_v5  ;;  %v1069_v6 = vld [vmem:[#allocation3 + $0x110] sm:$0xff]  ;;  %6540 = vmatpush3.bf16.msra.mxu1 %v6537_v40 }
  0x5b   :  { %v6525_v10 = vpack.c.bf16 %v1070_v54, %v1069_v6 }
  0x5c   :  { %6522 = vmatprep.subr.bf16.mxu0 %v6521_v35 }
  0x5d   :  { %5877 = vmatmul.mubr.msk.f32.vlgmr.msra.gmra.mrb[0].mxu0 %vm356_vm0, %v343_v58  ;;  %v1071_v58 = vld [vmem:[#allocation3 + $0x120] sm:$0xff] }
  0x5e   :  { %5879 = vmatprep.mubr.msk.f32.mxu0 %vm356_vm0, %v344_v37  ;;  %6524 = vmatpush3.bf16.msra.mxu0 %v6521_v35  ;;  %v1060_v37 = vld [vmem:[#allocation3 + $0xd0] sm:$0xff]  ;;  %v6529_v15 = vpack.c.bf16 %v1072_v16, %v1071_v58 }
  0x5f   :  { %6526 = vmatprep.subr.bf16.mxu0 %v6525_v10  ;;  %v6541_v52 = vpack.c.bf16 %v1061_v25, %v1060_v37 }
  0x61   :  { %5880 = vmatmul.mubr.msk.f32.gmra.mrb[2].mxu0 %vm356_vm0, %v345_v23  ;;  %v1073_v23 = vld [vmem:[#allocation3 + $0x130] sm:$0xff]  ;;  %6542 = vmatprep.subr.bf16.mxu1 %v6541_v52 }
  0x62   :  { %5882 = vmatprep.mubr.msk.f32.mxu0 %vm356_vm0, %v346_v50  ;;  %6528 = vmatpush3.bf16.msra.mxu0 %v6525_v10  ;;  %v1062_v50 = vld [vmem:[#allocation3 + $0xe0] sm:$0xff]  ;;  %v6533_v46 = vpack.c.bf16 %v1074_v61, %v1073_v23 }
  0x63   :  { %6530 = vmatprep.subr.bf16.mxu0 %v6529_v15  ;;  %6544 = vmatpush3.bf16.msra.mxu1 %v6541_v52  ;;  %v6545_v18 = vpack.c.bf16 %v1063_v7, %v1062_v50 }
  0x65   :  { %5883 = vmatmul.mubr.msk.f32.gmra.mrb[4].mxu0 %vm356_vm0, %v347_v51  ;;  %6546 = vmatprep.subr.bf16.mxu1 %v6545_v18  ;;  %v1064_v51 = vld [vmem:[#allocation3 + $0xf0] sm:$0xff] }
  0x66   :  { %5885 = vmatprep.mubr.msk.f32.mxu0 %vm356_vm0, %v348_v57  ;;  %6532 = vmatpush3.bf16.msra.mxu0 %v6529_v15  ;;  %v6549_v57 = vpack.c.bf16 %v1065_v53, %v1064_v51 }
  0x67   :  { %6534 = vmatprep.subr.bf16.mxu0 %v6533_v46  ;;  %6548 = vmatpush3.bf16.msra.mxu1 %v6545_v18 }
  0x68   :  { %6550 = vmatprep.subr.bf16.mxu1 %v6549_v57 }
  0x69   :  { %5886 = vmatmul.mubr.msk.f32.gmra.mrb[6].mxu0 %vm356_vm0, %v349_v20 }
  0x6a   :  { %5888 = vmatprep.mubr.msk.f32.mxu0 %vm356_vm0, %v350_v4  ;;  %6536 = vmatpush3.bf16.msra.mxu0 %v6533_v46 }
  0x6b   :  { %6552 = vmatpush3.bf16.msra.mxu1 %v6549_v57 }
  0x6c   :  { %6554 = vmatprep.subr.bf16.mxu1 %v7653_v19 }
  0x6d   :  { %5889 = vmatmul.mubr.msk.f32.gmra.mrb[8].mxu0 %vm356_vm0, %v351_v63 }
  0x6e   :  { %5891 = vmatprep.mubr.msk.f32.mxu0 %vm356_vm0, %v352_v62 }
  0x71   :  { %5892 = vmatmul.mubr.msk.f32.gmra.mrb[10].mxu0 %vm356_vm0, %v353_v21 }
  0x72   :  { %5894 = vmatprep.mubr.msk.f32.mxu0 %vm356_vm0, %v354_v41 }
  0x75   :  { %5895 = vmatmul.mubr.msk.f32.gmra.mrb[12].mxu0 %vm356_vm0, %v355_v43 }
 0x130   :  { %v5878_v20 = vpop.f32.mrb[0].mxu0 }
 0x131   :  { %v903_v24 = vsel %vm356_vm0, %v5878_v20, 0.0  ;;  %v819_v4 = vpop.f32.mrb[1].mxu0 }
 0x132   :  { %v902_v55 = vsel %vm356_vm0, %v819_v4, 0.0 }
 0x133   :  { %v904_v56 = vadd.f32 %v903_v24, %v902_v55 }
 0x134   :  { %v5881_v27 = vpop.f32.mrb[2].mxu0 }
 0x135   :  { %v829_v63 = vpop.f32.mrb[3].mxu0  ;;  %v907_v0 = vsel %vm356_vm0, %v5881_v27, 0.0 }
 0x136   :  { %v905_v62 = vsel %vm356_vm0, %v829_v63, 0.0 }
 0x137   :  { %v906_v60 = vadd.f32 %v905_v62, %v904_v56 }
 0x138   :  { %v5884_v21 = vpop.f32.mrb[4].mxu0 }
 0x139   :  { %v839_v41 = vpop.f32.mrb[5].mxu0  ;;  %v908_v13 = vadd.f32 %v907_v0, %v906_v60  ;;  %v911_v44 = vsel %vm356_vm0, %v5884_v21, 0.0 }
 0x13a   :  { %v909_v43 = vsel %vm356_vm0, %v839_v41, 0.0 }
 0x13b   :  { %v910_v5 = vadd.f32 %v909_v43, %v908_v13 }
 0x13c   :  { %v5887_v35 = vpop.f32.mrb[6].mxu0 }
 0x13d   :  { %v849_v6 = vpop.f32.mrb[7].mxu0  ;;  %v912_v54 = vadd.f32 %v911_v44, %v910_v5  ;;  %v915_v36 = vsel %vm356_vm0, %v5887_v35, 0.0 }
 0x13e   :  { %v913_v11 = vsel %vm356_vm0, %v849_v6, 0.0 }
 0x13f   :  { %v914_v10 = vadd.f32 %v913_v11, %v912_v54 }
 0x140   :  { %v5890_v40 = vpop.f32.mrb[8].mxu0 }
 0x141   :  { %v859_v58 = vpop.f32.mrb[9].mxu0  ;;  %v916_v16 = vadd.f32 %v915_v36, %v914_v10  ;;  %v919_v25 = vsel %vm356_vm0, %v5890_v40, 0.0 }
 0x142   :  { %v917_v37 = vsel %vm356_vm0, %v859_v58, 0.0 }
 0x143   :  { %v918_v15 = vadd.f32 %v917_v37, %v916_v16 }
 0x144   :  { %v5893_v52 = vpop.f32.mrb[10].mxu0 }
 0x145   :  { %v869_v23 = vpop.f32.mrb[11].mxu0  ;;  %v920_v61 = vadd.f32 %v919_v25, %v918_v15  ;;  %v923_v7 = vsel %vm356_vm0, %v5893_v52, 0.0 }
 0x146   :  { %v921_v50 = vsel %vm356_vm0, %v869_v23, 0.0 }
 0x147   :  { %v922_v46 = vadd.f32 %v921_v50, %v920_v61 }
 0x148   :  { %v5896_v18 = vpop.f32.mrb[12].mxu0 }
 0x149   :  { %v879_v51 = vpop.f32.mrb[13].mxu0  ;;  %v924_v53 = vadd.f32 %v923_v7, %v922_v46  ;;  %v927_v59 = vsel %vm356_vm0, %v5896_v18, 0.0 }
 0x14a   :  { %v925_v57 = vsel %vm356_vm0, %v879_v51, 0.0 }
 0x14b   :  { %v926_v2 = vadd.f32 %v925_v57, %v924_v53 }
 0x14d   :  { %v928_v24 = vadd.f32 %v927_v59, %v926_v2 }
 0x14f   :  { %v929_v55 = vrot.slane %v928_v24, 4 }
 0x151   :  { %v930_v56 = vadd.f32 %v929_v55, %v928_v24 }
 0x153   :  { %v931_v62 = vrot.slane %v930_v56, 2 }
 0x155   :  { %v932_v60 = vadd.f32 %v931_v62, %v930_v56 }
 0x157   :  { %v933_v0 = vrot.slane %v932_v60, 1 }
 0x159   :  { %v934_v13 = vadd.f32 %v933_v0, %v932_v60 }
 0x15b   :  { %v936_v43 = vmul.f32 0.008928572, %v934_v13 }
 0x15d   :  { %v7670_v5 = vsub.f32 %v819_v4, %v936_v43  ;;  %v7672_v44 = vsub.f32 %v5878_v20, %v936_v43  ;;  %v7674_v54 = vsub.f32 %v829_v63, %v936_v43  ;;  %v7676_v11 = vsub.f32 %v5881_v27, %v936_v43 }
 0x15e   :  { %v7678_v10 = vsub.f32 %v839_v41, %v936_v43  ;;  %v7680_v36 = vsub.f32 %v5884_v21, %v936_v43  ;;  %v7682_v16 = vsub.f32 %v849_v6, %v936_v43  ;;  %v7684_v37 = vsub.f32 %v5887_v35, %v936_v43 }
 0x15f   :  { %v7686_v15 = vsub.f32 %v859_v58, %v936_v43  ;;  %v7688_v25 = vsub.f32 %v5890_v40, %v936_v43  ;;  %v7690_v4 = vsub.f32 %v869_v23, %v936_v43  ;;  %v7692_v20 = vsub.f32 %v5893_v52, %v936_v43 }
 0x160   :  { %v949_v63 = vsub.f32 %v879_v51, %v936_v43  ;;  %v7694_v61 = vsub.f32 %v5896_v18, %v936_v43  ;;  %v951_v27 = vmul.f32 %v7670_v5, %v7670_v5  ;;  %v952_v21 = vmul.f32 %v7672_v44, %v7672_v44 }
 0x161   :  { %v953_v41 = vmul.f32 %v7674_v54, %v7674_v54  ;;  %v954_v35 = vmul.f32 %v7676_v11, %v7676_v11  ;;  %v955_v52 = vmul.f32 %v7678_v10, %v7678_v10  ;;  %v956_v46 = vmul.f32 %v7680_v36, %v7680_v36 }
 0x162   :  { %v965_v6 = vsel %vm356_vm0, %v951_v27, 0.0  ;;  %v966_v40 = vsel %vm356_vm0, %v952_v21, 0.0  ;;  %v957_v51 = vmul.f32 %v7682_v16, %v7682_v16  ;;  %v958_v2 = vmul.f32 %v7684_v37, %v7684_v37 }
 0x163   :  { %v967_v58 = vadd.f32 %v966_v40, %v965_v6  ;;  %v968_v23 = vsel %vm356_vm0, %v953_v41, 0.0  ;;  %v970_v7 = vsel %vm356_vm0, %v954_v35, 0.0  ;;  %v972_v53 = vsel %vm356_vm0, %v955_v52, 0.0 }
 0x164   :  { %v974_v59 = vsel %vm356_vm0, %v956_v46, 0.0  ;;  %v959_v55 = vmul.f32 %v7686_v15, %v7686_v15  ;;  %v976_v56 = vsel %vm356_vm0, %v957_v51, 0.0  ;;  %v960_v60 = vmul.f32 %v7688_v25, %v7688_v25 }
 0x165   :  { %v969_v50 = vadd.f32 %v968_v23, %v967_v58  ;;  %v978_v0 = vsel %vm356_vm0, %v958_v2, 0.0  ;;  %v961_v43 = vmul.f32 %v7690_v4, %v7690_v4  ;;  %v962_v41 = vmul.f32 %v7692_v20, %v7692_v20 }
 0x166   :  { %v980_v27 = vsel %vm356_vm0, %v959_v55, 0.0  ;;  %v982_v35 = vsel %vm356_vm0, %v960_v60, 0.0  ;;  %v963_v40 = vmul.f32 %v949_v63, %v949_v63  ;;  %v964_v23 = vmul.f32 %v7694_v61, %v7694_v61 }
 0x167   :  { %v971_v18 = vadd.f32 %v970_v7, %v969_v50  ;;  %v984_v58 = vsel %vm356_vm0, %v961_v43, 0.0  ;;  %v986_v50 = vsel %vm356_vm0, %v962_v41, 0.0  ;;  %v1080_v41 = vld [vmem:[#allocation3 + $0x160] sm:$0xff] }
 0x168   :  { %v988_v7 = vsel %vm356_vm0, %v963_v40, 0.0  ;;  %v990_v51 = vsel %vm356_vm0, %v964_v23, 0.0  ;;  %v7755_v23 = vld [vmem:[%s8903_s3 + $0x1] ss:$0 sm:$0xff] }
 0x169   :  { %v973_v57 = vadd.f32 %v972_v53, %v971_v18 }
 0x16b   :  { %v975_v24 = vadd.f32 %v974_v59, %v973_v57 }
 0x16d   :  { %v977_v62 = vadd.f32 %v976_v56, %v975_v24 }
 0x16f   :  { %v979_v13 = vadd.f32 %v978_v0, %v977_v62  ;;  %v1078_v0 = vld [vmem:[#allocation3 + $0x150] sm:$0xff] }
 0x171   :  { %v981_v21 = vadd.f32 %v980_v27, %v979_v13  ;;  %v1079_v13 = vld [vmem:[#allocation3 + $0x158] sm:$0xff]  ;;  %v7741_v27 = vld [vmem:[%s8903_s3] ss:$0 sm:$0xff] }
 0x173   :  { %v983_v6 = vadd.f32 %v982_v35, %v981_v21  ;;  %v7743_v21 = vpack.c.bf16 %v1079_v13, %v1078_v0  ;;  %v1081_v35 = vld [vmem:[#allocation3 + $0x168] sm:$0xff] }
 0x175   :  { %v985_v52 = vadd.f32 %v984_v58, %v983_v6 }
 0x177   :  { %v987_v46 = vadd.f32 %v986_v50, %v985_v52 }
 0x179   :  { %v989_v18 = vadd.f32 %v988_v7, %v987_v46 }
 0x17b   :  { %v991_v53 = vadd.f32 %v990_v51, %v989_v18  ;;  %v7768_v18 = vpack.c.bf16 %v1081_v35, %v1080_v41 }
 0x17d   :  { %v992_v57 = vrot.slane %v991_v53, 4 }
 0x17f   :  { %v993_v2 = vadd.f32 %v992_v57, %v991_v53 }
 0x181   :  { %v994_v59 = vrot.slane %v993_v2, 2 }
 0x183   :  { %v995_v24 = vadd.f32 %v994_v59, %v993_v2 }
 0x185   :  { %v996_v55 = vrot.slane %v995_v24, 1 }
 0x187   :  { %v997_v56 = vadd.f32 %v996_v55, %v995_v24 }
 0x189   :  { %v998_v62 = vmul.f32 0.008928572, %v997_v56 }
 0x18b   :  { %v999_v60 = vadd.f32 1e-05, %v998_v62  ;;  %v1082_v62 = vld [vmem:[#allocation3 + $0x170] sm:$0xff] }
 0x18d   :  { %7082 = vrsqrt.f32 %v999_v60  ;;  %v1083_v60 = vld [vmem:[#allocation3 + $0x178] sm:$0xff] }
 0x197   :  { %v7736_v43 = vpop.eup %7082 }
 0x198   :  { %v1013_v6 = vmul.f32 %v7736_v43, %v949_v63  ;;  %v1001_v40 = vmul.f32 %v7736_v43, %v7670_v5  ;;  %v1002_v58 = vmul.f32 %v7736_v43, %v7672_v44  ;;  %v1003_v52 = vmul.f32 %v7736_v43, %v7674_v54 }
 0x199   :  { %v1014_v50 = vmul.f32 %v7736_v43, %v7694_v61  ;;  %v1004_v63 = vmul.f32 %v7736_v43, %v7676_v11  ;;  %v1005_v5 = vmul.f32 %v7736_v43, %v7678_v10  ;;  %v1006_v44 = vmul.f32 %v7736_v43, %v7680_v36 }
 0x19a   :  { %v1015_v46 = vmul.f32 %v1001_v40, %v7741_v27  ;;  %v1016_v54 = vmul.f32 %v1002_v58, %v7741_v27  ;;  %v1017_v7 = vmul.f32 %v1003_v52, %v7741_v27  ;;  %v1027_v10 = vmul.f32 %v1013_v6, %v7741_v27 }
 0x19b   :  { %v1028_v51 = vmul.f32 %v1014_v50, %v7741_v27  ;;  %v1018_v61 = vmul.f32 %v1004_v63, %v7741_v27  ;;  %v1019_v11 = vmul.f32 %v1005_v5, %v7741_v27  ;;  %v1020_v53 = vmul.f32 %v1006_v44, %v7741_v27 }
 0x19c   :  { %v1029_v36 = vadd.f32 %v1015_v46, %v7755_v23  ;;  %v1030_v57 = vadd.f32 %v1016_v54, %v7755_v23  ;;  %v1031_v2 = vadd.f32 %v1017_v7, %v7755_v23  ;;  %v1007_v35 = vmul.f32 %v7736_v43, %v7682_v16 }
 0x19d   :  { %v1042_v59 = vadd.f32 %v1028_v51, %v7755_v23  ;;  %v1032_v24 = vadd.f32 %v1018_v61, %v7755_v23  ;;  %v1033_v55 = vadd.f32 %v1019_v11, %v7755_v23  ;;  %v1034_v56 = vadd.f32 %v1020_v53, %v7755_v23 }
 0x19e   :  { %v7782_v0 = vmax.f32 %v1029_v36, 0.0  ;;  %v7784_v13 = vmax.f32 %v1030_v57, 0.0  ;;  %v7786_v41 = vmax.f32 %v1031_v2, 0.0  ;;  %v7803_v44 = vpack.c.bf16 %v1083_v60, %v1082_v62 }
 0x19f   :  { %v7790_v6 = vmax.f32 %v1042_v59, 0.0  ;;  %v7792_v40 = vmax.f32 %v1032_v24, 0.0  ;;  %v7794_v58 = vmax.f32 %v1033_v55, 0.0  ;;  %v7796_v52 = vmax.f32 %v1034_v56, 0.0 }
 0x1a0   :  { %5913 = vmatprep.mubr.msk.f32.mxu0 %vm356_vm0, %v7782_v0  ;;  %v1086_v50 = vrot.slane %v7782_v0, 7  ;;  %v1087_v63 = vrot.slane %v7784_v13, 7  ;;  %v1088_v5 = vrot.slane %v7786_v41, 7  ;;  %v1021_v54 = vmul.f32 %v1007_v35, %v7741_v27 }
 0x1a1   :  { %5914 = vmatmul.mubr.msk.f32.vlgmr.msra.gmra.mrb[14].mxu0 %vm356_vm0, %v7784_v13  ;;  %v1099_v16 = vrot.slane %v7790_v6, 7  ;;  %v1089_v46 = vrot.slane %v7792_v40, 7  ;;  %v1090_v7 = vrot.slane %v7794_v58, 7  ;;  %v1008_v11 = vmul.f32 %v7736_v43, %v7684_v37 }
 0x1a2   :  { %5916 = vmatprep.mubr.msk.f32.mxu0 %vm356_vm0, %v7786_v41  ;;  %v1112_v51 = vsel %vm214_vm1, %v1086_v50, %v1087_v63  ;;  %v1111_v61 = vsel %vm214_vm1, %v1087_v63, %v1088_v5  ;;  %v1091_v53 = vrot.slane %v7796_v52, 7  ;;  %v1041_v36 = vadd.f32 %v1027_v10, %v7755_v23 }
 0x1a3   :  { %v1113_v57 = vsel %vm214_vm1, %v1099_v16, %v1086_v50  ;;  %v1115_v2 = vsel %vm187_vm3, 0.0, %v1112_v51  ;;  %v1110_v59 = vsel %vm214_vm1, %v1088_v5, %v1089_v46  ;;  %v1116_v55 = vsel %vm188_vm4, 0.0, %v1111_v61 }
 0x1a4   :  { %v1114_v24 = vsel %vm186_vm2, 0.0, %v1113_v57  ;;  %v1035_v37 = vadd.f32 %v1021_v54, %v7755_v23  ;;  %v1109_v10 = vsel %vm214_vm1, %v1089_v46, %v1090_v7  ;;  %v1117_v56 = vsel %vm189_vm5, 0.0, %v1110_v59 }
 0x1a5   :  { %5950 = vmatprep.mubr.msk.f32.mxu1 %vm356_vm0, %v1114_v24  ;;  %5917 = vmatmul.mubr.msk.f32.gmra.mrb[16].mxu0 %vm356_vm0, %v7792_v40  ;;  %v1022_v62 = vmul.f32 %v1008_v11, %v7741_v27  ;;  %v1108_v60 = vsel %vm214_vm1, %v1090_v7, %v1091_v53  ;;  %v1009_v35 = vmul.f32 %v7736_v43, %v7686_v15  ;;  %v1118_v63 = vsel %vm190_vm6, 0.0, %v1109_v10 }
 0x1a6   :  { %5951 = vmatmul.mubr.msk.f32.vlgmr.msra.gmra.mrb[0].mxu1 %vm356_vm0, %v1115_v2  ;;  %5919 = vmatprep.mubr.msk.f32.mxu0 %vm356_vm0, %v7794_v58  ;;  %v7847_v50 = vmax.f32 %v1035_v37, 0.0  ;;  %v1010_v5 = vmul.f32 %v7736_v43, %v7688_v25  ;;  %v1011_v46 = vmul.f32 %v7736_v43, %v7690_v4  ;;  %v1012_v7 = vmul.f32 %v7736_v43, %v7692_v20 }
 0x1a7   :  { %5953 = vmatprep.mubr.msk.f32.mxu1 %vm356_vm0, %v1116_v55  ;;  %6556 = vmatpush3.bf16.msra.mxu1 %v7653_v19  ;;  %v1036_v15 = vadd.f32 %v1022_v62, %v7755_v23  ;;  %v1023_v54 = vmul.f32 %v1009_v35, %v7741_v27  ;;  %v7861_v51 = vmax.f32 %v1041_v36, 0.0  ;;  %v1128_v11 = vrot.slane %v7782_v0, 1 }
 0x1a8   :  { %v1092_v61 = vrot.slane %v7847_v50, 7  ;;  %6558 = vmatprep.subr.bf16.mxu1 %v7743_v21  ;;  %v1024_v25 = vmul.f32 %v1010_v5, %v7741_v27  ;;  %v1025_v4 = vmul.f32 %v1011_v46, %v7741_v27  ;;  %v1026_v20 = vmul.f32 %v1012_v7, %v7741_v27 }
 0x1a9   :  { %5920 = vmatmul.mubr.msk.f32.gmra.mrb[18].mxu0 %vm356_vm0, %v7796_v52  ;;  %v7870_v19 = vmax.f32 %v1036_v15, 0.0  ;;  %v1037_v57 = vadd.f32 %v1023_v54, %v7755_v23  ;;  %v1098_v43 = vrot.slane %v7861_v51, 7  ;;  %v1129_v24 = vrot.slane %v7784_v13, 1 }
 0x1aa   :  { %5954 = vmatmul.mubr.msk.f32.gmra.mrb[2].mxu1 %vm356_vm0, %v1117_v56  ;;  %5922 = vmatprep.mubr.msk.f32.mxu0 %vm356_vm0, %v7847_v50  ;;  %v1107_v36 = vsel %vm214_vm1, %v1091_v53, %v1092_v61  ;;  %v1038_v2 = vadd.f32 %v1024_v25, %v7755_v23  ;;  %v1039_v59 = vadd.f32 %v1025_v4, %v7755_v23  ;;  %v1130_v55 = vrot.slane %v7786_v41, 1 }
 0x1ab   :  { %5956 = vmatprep.mubr.msk.f32.mxu1 %vm356_vm0, %v1118_v63  ;;  %v1051_v27 = vmax.f32 %v1037_v57, 0.0  ;;  %v1093_v37 = vrot.slane %v7870_v19, 7  ;;  %6560 = vmatpush3.bf16.msra.mxu1 %v7743_v21  ;;  %v1040_v10 = vadd.f32 %v1026_v20, %v7755_v23  ;;  %v7891_v53 = vsel %vm214_vm1, %v1098_v43, %v1099_v16 }
 0x1ac   :  { %v1052_v56 = vmax.f32 %v1038_v2, 0.0  ;;  %v1053_v62 = vmax.f32 %v1039_v59, 0.0  ;;  %6562 = vmatprep.subr.bf16.mxu1 %v7768_v18  ;;  %v7897_v13 = vsel %vm299_vm15, %v1128_v11, %v1129_v24  ;;  %v1119_v21 = vsel %vm191_vm7, 0.0, %v1108_v60 }
 0x1ad   :  { %5923 = vmatmul.mubr.msk.f32.gmra.mrb[20].mxu0 %vm356_vm0, %v7870_v19  ;;  %v1106_v23 = vsel %vm214_vm1, %v1092_v61, %v1093_v37  ;;  %v1094_v41 = vrot.slane %v1051_v27, 7  ;;  %v1054_v35 = vmax.f32 %v1040_v10, 0.0  ;;  %v1120_v16 = vsel %vm192_vm8, 0.0, %v1107_v36 }
 0x1ae   :  { %5957 = vmatmul.mubr.msk.f32.gmra.mrb[4].mxu1 %vm356_vm0, %v1119_v21  ;;  %5925 = vmatprep.mubr.msk.f32.mxu0 %vm356_vm0, %v1051_v27  ;;  %v1095_v63 = vrot.slane %v1052_v56, 7  ;;  %v1096_v5 = vrot.slane %v1053_v62, 7  ;;  %v1153_v15 = vsel %vm299_vm15, %v1129_v24, %v1130_v55  ;;  %v1131_v54 = vrot.slane %v7792_v40, 1 }
 0x1af   :  { %5959 = vmatprep.mubr.msk.f32.mxu1 %vm356_vm0, %v1120_v16  ;;  %v1105_v46 = vsel %vm214_vm1, %v1093_v37, %v1094_v41  ;;  %6564 = vmatpush3.bf16.msra.mxu1 %v7768_v18  ;;  %v1097_v60 = vrot.slane %v1054_v35, 7  ;;  %v1121_v25 = vsel %vm193_vm9, 0.0, %v1106_v23  ;;  %v1132_v20 = vrot.slane %v7794_v58, 1 }
 0x1b0   :  { %v1104_v7 = vsel %vm214_vm1, %v1094_v41, %v1095_v63  ;;  %v1103_v61 = vsel %vm214_vm1, %v1095_v63, %v1096_v5  ;;  %6566 = vmatprep.subr.bf16.mxu1 %v7803_v44  ;;  %v1122_v40 = vsel %vm194_vm10, 0.0, %v1105_v46  ;;  %v1152_v57 = vsel %vm299_vm15, %v1130_v55, %v1131_v54 }
 0x1b1   :  { %5926 = vmatmul.mubr.msk.f32.gmra.mrb[22].mxu0 %vm356_vm0, %v1052_v56  ;;  %v1102_v18 = vsel %vm214_vm1, %v1096_v5, %v1097_v60  ;;  %v1101_v4 = vsel %vm214_vm1, %v1097_v60, %v1098_v43  ;;  %v1133_v36 = vrot.slane %v7796_v52, 1  ;;  %v1134_v43 = vrot.slane %v7847_v50, 1 }
 0x1b2   :  { %5960 = vmatmul.mubr.msk.f32.gmra.mrb[6].mxu1 %vm356_vm0, %v1121_v25  ;;  %5928 = vmatprep.mubr.msk.f32.mxu0 %vm356_vm0, %v1053_v62  ;;  %v1135_v2 = vrot.slane %v7870_v19, 1  ;;  %v1151_v59 = vsel %vm299_vm15, %v1131_v54, %v1132_v20  ;;  %v1136_v24 = vrot.slane %v1051_v27, 1  ;;  %v1137_v37 = vrot.slane %v1052_v56, 1 }
 0x1b3   :  { %5962 = vmatprep.mubr.msk.f32.mxu1 %vm356_vm0, %v1122_v40  ;;  %6568 = vmatpush3.bf16.msra.mxu1 %v7803_v44  ;;  %v1138_v10 = vrot.slane %v1053_v62, 1  ;;  %vm8946_vm2 = vcmp.eq.s32.totalorder %v7491_v39, 0  ;;  %v1150_v44 = vsel %vm299_vm15, %v1132_v20, %v1133_v36  ;;  %v1149_v52 = vsel %vm299_vm15, %v1133_v36, %v1134_v43  ;;  %v1963_v20 = vld [vmem:[#allocation3 + $0x1c8] sm:$0xff]  ;;  %v1964_v36 = vld [vmem:[#allocation3 + $0x1d0] sm:$0xff] }
 0x1b4   :  { %v1123_v58 = vsel %vm8946_vm2, 0.0, %v1104_v7  ;;  %v1148_v50 = vsel %vm299_vm15, %v1134_v43, %v1135_v2  ;;  %vm8947_vm3 = vcmp.eq.s32.totalorder %v7497_v49, 0  ;;  %v1147_v55 = vsel %vm299_vm15, %v1135_v2, %v1136_v24 }
 0x1b5   :  { %5929 = vmatmul.mubr.msk.f32.gmra.mrb[24].mxu0 %vm356_vm0, %v1054_v35  ;;  %v1124_v19 = vsel %vm8947_vm3, 0.0, %v1103_v61  ;;  %v1146_v27 = vsel %vm299_vm15, %v1136_v24, %v1137_v37  ;;  %v1145_v56 = vsel %vm299_vm15, %v1137_v37, %v1138_v10  ;;  %v1139_v62 = vrot.slane %v1054_v35, 1 }
 0x1b6   :  { %5963 = vmatmul.mubr.msk.f32.gmra.mrb[8].mxu1 %vm356_vm0, %v1123_v58  ;;  %5931 = vmatprep.mubr.msk.f32.mxu0 %vm356_vm0, %v7861_v51  ;;  %v1140_v21 = vrot.slane %v7861_v51, 1  ;;  %v1141_v23 = vrot.slane %v7790_v6, 1  ;;  %vm8948_vm4 = vcmp.eq.s32.totalorder %v7510_v8, 0  ;;  %vm8949_vm5 = vcmp.eq.s32.totalorder %v7517_v48, 0  ;;  %v1967_v58 = vld [vmem:[#allocation3 + $0x1e8] sm:$0xff] }
 0x1b7   :  { %5965 = vmatprep.mubr.msk.f32.mxu1 %vm356_vm0, %v1124_v19  ;;  %v1125_v41 = vsel %vm8948_vm4, 0.0, %v1102_v18  ;;  %v1144_v16 = vsel %vm299_vm15, %v1138_v10, %v1139_v62  ;;  %v1126_v63 = vsel %vm8949_vm5, 0.0, %v1101_v4  ;;  %vm8950_vm6 = vcmp.eq.s32.totalorder %v7529_v26, 0  ;;  %v1966_v10 = vld [vmem:[#allocation3 + $0x1e0] sm:$0xff] }
 0x1b8   :  { %v1143_v35 = vsel %vm299_vm15, %v1139_v62, %v1140_v21  ;;  %v1142_v51 = vsel %vm299_vm15, %v1140_v21, %v1141_v23  ;;  %v1127_v5 = vsel %vm8950_vm6, 0.0, %v7891_v53  ;;  %vm8951_vm7 = vcmp.eq.s32.totalorder %v7318_v32, 55  ;;  %v1969_v62 = vld [vmem:[#allocation3 + $0x1f8] sm:$0xff] }
 0x1b9   :  { %5932 = vmatmul.mubr.msk.f32.gmra.mrb[26].mxu0 %vm356_vm0, %v7790_v6  ;;  %v1155_v6 = vsel %vm299_vm15, %v1141_v23, %v1128_v11  ;;  %v1156_v46 = vsel %vm8951_vm7, 0.0, %v7897_v13  ;;  %vm8952_vm8 = vcmp.eq.s32.totalorder %v7390_v45, 55  ;;  %vm8953_vm9 = vcmp.eq.s32.totalorder %v7393_v47, 55 }
 0x1ba   :  { %5966 = vmatmul.mubr.msk.f32.gmra.mrb[10].mxu1 %vm356_vm0, %v1125_v41  ;;  %v1157_v0 = vsel %vm8952_vm8, 0.0, %v1153_v15  ;;  %v1158_v11 = vsel %vm8953_vm9, 0.0, %v1152_v57  ;;  %vm8954_vm10 = vcmp.eq.s32.totalorder %v7412_v17, 55  ;;  %vm8955_vm2 = vcmp.eq.s32.totalorder %v7422_v38, 55  ;;  %v1962_v57 = vld [vmem:[#allocation3 + $0x1c0] sm:$0xff] }
 0x1bb   :  { %5968 = vmatprep.mubr.msk.f32.mxu1 %vm356_vm0, %v1126_v63  ;;  %v1159_v53 = vsel %vm8954_vm10, 0.0, %v1151_v59  ;;  %v1160_v32 = vsel %vm8955_vm2, 0.0, %v1150_v44  ;;  %vm8956_vm3 = vcmp.eq.s32.totalorder %v7442_v31, 55  ;;  %vm8957_vm4 = vcmp.eq.s32.totalorder %v7445_v9, 55  ;;  %v1965_v59 = vld [vmem:[#allocation3 + $0x1d8] sm:$0xff] }
 0x1bc   :  { %v1161_v45 = vsel %vm8956_vm3, 0.0, %v1149_v52  ;;  %v1162_v47 = vsel %vm8957_vm4, 0.0, %v1148_v50  ;;  %vm8958_vm5 = vcmp.eq.s32.totalorder %v7470_v3, 55  ;;  %vm8959_vm6 = vcmp.eq.s32.totalorder %v7475_v14, 55 }
 0x1bd   :  { %v1163_v17 = vsel %vm8958_vm5, 0.0, %v1147_v55  ;;  %v1164_v38 = vsel %vm8959_vm6, 0.0, %v1146_v27  ;;  %v1165_v31 = vsel %vm280_vm14, 0.0, %v1145_v56  ;;  %vm8960_vm7 = vcmp.eq.s32.totalorder %v7497_v49, 55  ;;  %v1968_v56 = vld [vmem:[#allocation3 + $0x1f0] sm:$0xff] }
 0x1be   :  { %5969 = vmatmul.mubr.msk.f32.gmra.mrb[12].mxu1 %vm356_vm0, %v1127_v5  ;;  %v1166_v9 = vsel %vm8960_vm7, 0.0, %v1144_v16  ;;  %v1167_v3 = vsel %vm282_vm11, 0.0, %v1143_v35  ;;  %v1168_v14 = vsel %vm283_vm12, 0.0, %v1142_v51  ;;  %v1169_v39 = vsel %vm284_vm13, 0.0, %v1155_v6 }
 0x1bf   :  { %5987 = vmatprep.mubr.msk.f32.mxu1 %vm356_vm0, %v1156_v46  ;;  %v7153_v43 = vmov 0.0|0.0   ;;  %v6570_v2 = vpack.c.bf16 %v1963_v20, %v1962_v57  ;;  %vm8931_vm11 = vmmov 0   ;;  %v7155_v24 = vmov 0.0  }
 0x1c0   :  { %6569 = vmatprep.subr.bf16.mxu0 %v7153_v43  ;;  %6024 = vmatprep.mubr.msk.f32.mxu0 %vm8931_vm11, %v7155_v24  ;;  %v6573_v37 = vpack.c.bf16 %v1965_v59, %v1964_v36  ;;  %v6576_v55 = vpack.c.bf16 %v1967_v58, %v1966_v10  ;;  %v6579_v51 = vpack.c.bf16 %v1969_v62, %v1968_v56 }
 0x1c1   :  { %6605 = vmatprep.subr.bf16.mxu1 %v7153_v43  ;;  %6571 = vmatpush3.bf16.msra.mxu0 %v6570_v2 }
 0x1c2   :  { %5988 = vmatmul.mubr.msk.f32.vlgmr.msra.gmra.mrb[0].mxu1 %vm356_vm0, %v1157_v0  ;;  %6572 = vmatprep.subr.bf16.mxu0 %v7153_v43 }
 0x1c3   :  { %5990 = vmatprep.mubr.msk.f32.mxu1 %vm356_vm0, %v1158_v11 }
 0x1c5   :  { %6574 = vmatpush3.bf16.msra.mxu0 %v6573_v37 }
 0x1c6   :  { %5991 = vmatmul.mubr.msk.f32.gmra.mrb[2].mxu1 %vm356_vm0, %v1159_v53  ;;  %6575 = vmatprep.subr.bf16.mxu0 %v7153_v43 }
 0x1c7   :  { %5993 = vmatprep.mubr.msk.f32.mxu1 %vm356_vm0, %v1160_v32 }
 0x1c9   :  { %6577 = vmatpush3.bf16.msra.mxu0 %v6576_v55 }
 0x1ca   :  { %5994 = vmatmul.mubr.msk.f32.gmra.mrb[4].mxu1 %vm356_vm0, %v1161_v45  ;;  %6578 = vmatprep.subr.bf16.mxu0 %v7153_v43 }
 0x1cb   :  { %5996 = vmatprep.mubr.msk.f32.mxu1 %vm356_vm0, %v1162_v47 }
 0x1cd   :  { %6580 = vmatpush3.bf16.msra.mxu0 %v6579_v51 }
 0x1ce   :  { %5997 = vmatmul.mubr.msk.f32.gmra.mrb[6].mxu1 %vm356_vm0, %v1163_v17  ;;  %6581 = vmatprep.subr.bf16.mxu0 %v7153_v43 }
 0x1cf   :  { %5999 = vmatprep.mubr.msk.f32.mxu1 %vm356_vm0, %v1164_v38 }
 0x1d2   :  { %6000 = vmatmul.mubr.msk.f32.gmra.mrb[8].mxu1 %vm356_vm0, %v1165_v31 }
 0x1d3   :  { %6002 = vmatprep.mubr.msk.f32.mxu1 %vm356_vm0, %v1166_v9 }
 0x1d6   :  { %6003 = vmatmul.mubr.msk.f32.gmra.mrb[10].mxu1 %vm356_vm0, %v1167_v3 }
 0x1d7   :  { %6005 = vmatprep.mubr.msk.f32.mxu1 %vm356_vm0, %v1168_v14 }
 0x1da   :  { %6006 = vmatmul.mubr.msk.f32.gmra.mrb[12].mxu1 %vm356_vm0, %v1169_v39 }
 0x1db   :  { %6135 = vmatprep.mubr.msk.f32.mxu1 %vm8931_vm11, %v7155_v24 }
 0x274   :  { %v5915_v13 = vpop.f32.mrb[14].mxu0 }
 0x275   :  { %v1278_v49 = vpop.f32.mrb[15].mxu0 }
 0x278   :  { %v5918_v60 = vpop.f32.mrb[16].mxu0 }
 0x279   :  { %v1288_v15 = vpop.f32.mrb[17].mxu0 }
 0x27c   :  { %v5921_v54 = vpop.f32.mrb[18].mxu0 }
 0x27d   :  { %v1298_v7 = vpop.f32.mrb[19].mxu0 }
 0x280   :  { %v5924_v8 = vpop.f32.mrb[20].mxu0 }
 0x281   :  { %v1308_v61 = vpop.f32.mrb[21].mxu0 }
 0x284   :  { %v8030_v25 = vpop.f32.mrb[22].mxu0 }
 0x285   :  { %v8032_v18 = vpop.f32.mrb[23].mxu0 }
 0x288   :  { %v8034_v48 = vpop.f32.mrb[24].mxu0 }
 0x289   :  { %v8036_v4 = vpop.f32.mrb[25].mxu0 }
 0x28c   :  { %v8038_v26 = vpop.f32.mrb[26].mxu0 }
 0x28d   :  { %v8040_v40 = vpop.f32.mrb[27].mxu0 }
 0x295   :  { %v5989_v44 = vpop.f32.mrb[0].mxu1 }
 0x296   :  { %v8049_v52 = vadd.f32 %v5989_v44, %v5915_v13  ;;  %v1632_v50 = vpop.f32.mrb[1].mxu1 }
 0x297   :  { %v8051_v19 = vadd.f32 %v1632_v50, %v1278_v49 }
 0x298   :  { %v1716_v27 = vsel %vm356_vm0, %v8049_v52, 0.0 }
 0x299   :  { %v1715_v21 = vsel %vm356_vm0, %v8051_v19, 0.0  ;;  %v5992_v23 = vpop.f32.mrb[2].mxu1 }
 0x29a   :  { %v1717_v41 = vadd.f32 %v1716_v27, %v1715_v21  ;;  %v6859_v16 = vadd.f32 %v5992_v23, %v5918_v60  ;;  %v1642_v63 = vpop.f32.mrb[3].mxu1 }
 0x29b   :  { %v6860_v35 = vadd.f32 %v1642_v63, %v1288_v15 }
 0x29c   :  { %v1720_v53 = vsel %vm356_vm0, %v6859_v16, 0.0 }
 0x29d   :  { %v1718_v6 = vsel %vm356_vm0, %v6860_v35, 0.0  ;;  %v5995_v5 = vpop.f32.mrb[4].mxu1 }
 0x29e   :  { %v1719_v46 = vadd.f32 %v1718_v6, %v1717_v41  ;;  %v6861_v0 = vadd.f32 %v5995_v5, %v5921_v54  ;;  %v1652_v11 = vpop.f32.mrb[5].mxu1 }
 0x29f   :  { %v6862_v32 = vadd.f32 %v1652_v11, %v1298_v7 }
 0x2a0   :  { %v1721_v45 = vadd.f32 %v1720_v53, %v1719_v46  ;;  %v1724_v3 = vsel %vm356_vm0, %v6861_v0, 0.0 }
 0x2a1   :  { %v1722_v47 = vsel %vm356_vm0, %v6862_v32, 0.0  ;;  %v5998_v17 = vpop.f32.mrb[6].mxu1 }
 0x2a2   :  { %v1723_v38 = vadd.f32 %v1722_v47, %v1721_v45  ;;  %v6863_v31 = vadd.f32 %v5998_v17, %v5924_v8  ;;  %v1662_v9 = vpop.f32.mrb[7].mxu1 }
 0x2a3   :  { %v6864_v14 = vadd.f32 %v1662_v9, %v1308_v61 }
 0x2a4   :  { %v1725_v39 = vadd.f32 %v1724_v3, %v1723_v38  ;;  %v1728_v7 = vsel %vm356_vm0, %v6863_v31, 0.0 }
 0x2a5   :  { %v1726_v13 = vsel %vm356_vm0, %v6864_v14, 0.0  ;;  %v6001_v49 = vpop.f32.mrb[8].mxu1 }
 0x2a6   :  { %v1727_v60 = vadd.f32 %v1726_v13, %v1725_v39  ;;  %v6865_v15 = vadd.f32 %v6001_v49, %v8030_v25  ;;  %v1672_v54 = vpop.f32.mrb[9].mxu1 }
 0x2a7   :  { %v6866_v57 = vadd.f32 %v1672_v54, %v8032_v18 }
 0x2a8   :  { %v1729_v20 = vadd.f32 %v1728_v7, %v1727_v60  ;;  %v1732_v37 = vsel %vm356_vm0, %v6865_v15, 0.0 }
 0x2a9   :  { %v1730_v36 = vsel %vm356_vm0, %v6866_v57, 0.0  ;;  %v6004_v8 = vpop.f32.mrb[10].mxu1 }
 0x2aa   :  { %v1731_v2 = vadd.f32 %v1730_v36, %v1729_v20  ;;  %v6867_v59 = vadd.f32 %v6004_v8, %v8034_v48  ;;  %v1682_v61 = vpop.f32.mrb[11].mxu1 }
 0x2ab   :  { %v6868_v10 = vadd.f32 %v1682_v61, %v8036_v4 }
 0x2ac   :  { %v1733_v58 = vadd.f32 %v1732_v37, %v1731_v2  ;;  %v1736_v27 = vsel %vm356_vm0, %v6867_v59, 0.0 }
 0x2ad   :  { %v1734_v25 = vsel %vm356_vm0, %v6868_v10, 0.0  ;;  %v6007_v44 = vpop.f32.mrb[12].mxu1 }
 0x2ae   :  { %v1735_v50 = vadd.f32 %v1734_v25, %v1733_v58  ;;  %v6869_v55 = vadd.f32 %v6007_v44, %v8038_v26  ;;  %v1692_v18 = vpop.f32.mrb[13].mxu1 }
 0x2af   :  { %v6870_v56 = vadd.f32 %v1692_v18, %v8040_v40 }
 0x2b0   :  { %v1737_v62 = vadd.f32 %v1736_v27, %v1735_v50  ;;  %v1740_v23 = vsel %vm356_vm0, %v6869_v55, 0.0 }
 0x2b1   :  { %v1738_v48 = vsel %vm356_vm0, %v6870_v56, 0.0 }
 0x2b2   :  { %v1739_v21 = vadd.f32 %v1738_v48, %v1737_v62 }
 0x2b4   :  { %v1741_v41 = vadd.f32 %v1740_v23, %v1739_v21 }
 0x2b6   :  { %v1742_v4 = vrot.slane %v1741_v41, 4 }
 0x2b8   :  { %v1743_v63 = vadd.f32 %v1742_v4, %v1741_v41 }
 0x2ba   :  { %v1744_v51 = vrot.slane %v1743_v63, 2 }
 0x2bc   :  { %v1745_v6 = vadd.f32 %v1744_v51, %v1743_v63 }
 0x2be   :  { %v1746_v5 = vrot.slane %v1745_v6, 1 }
 0x2c0   :  { %v1747_v46 = vadd.f32 %v1746_v5, %v1745_v6 }
 0x2c2   :  { %v1748_v11 = vmul.f32 0.008928572, %v1747_v46 }
 0x2c4   :  { %v8079_v26 = vsub.f32 %v8051_v19, %v1748_v11  ;;  %v8082_v53 = vsub.f32 %v8049_v52, %v1748_v11  ;;  %v8084_v40 = vsub.f32 %v6860_v35, %v1748_v11  ;;  %v8086_v45 = vsub.f32 %v6859_v16, %v1748_v11 }
 0x2c5   :  { %v8088_v47 = vsub.f32 %v6862_v32, %v1748_v11  ;;  %v8090_v17 = vsub.f32 %v6861_v0, %v1748_v11  ;;  %v8092_v38 = vsub.f32 %v6864_v14, %v1748_v11  ;;  %v8094_v9 = vsub.f32 %v6863_v31, %v1748_v11 }
 0x2c6   :  { %v8096_v3 = vsub.f32 %v6866_v57, %v1748_v11  ;;  %v8098_v39 = vsub.f32 %v6865_v15, %v1748_v11  ;;  %v8100_v19 = vsub.f32 %v6868_v10, %v1748_v11  ;;  %v8102_v52 = vsub.f32 %v6867_v59, %v1748_v11 }
 0x2c7   :  { %v8104_v35 = vsub.f32 %v6870_v56, %v1748_v11  ;;  %v8106_v16 = vsub.f32 %v6869_v55, %v1748_v11  ;;  %v1763_v0 = vmul.f32 %v8079_v26, %v8079_v26  ;;  %v1764_v32 = vmul.f32 %v8082_v53, %v8082_v53 }
 0x2c8   :  { %v1765_v31 = vmul.f32 %v8084_v40, %v8084_v40  ;;  %v1766_v14 = vmul.f32 %v8086_v45, %v8086_v45  ;;  %v1767_v15 = vmul.f32 %v8088_v47, %v8088_v47  ;;  %v1768_v57 = vmul.f32 %v8090_v17, %v8090_v17 }
 0x2c9   :  { %v1777_v13 = vsel %vm356_vm0, %v1763_v0, 0.0  ;;  %v1778_v49 = vsel %vm356_vm0, %v1764_v32, 0.0  ;;  %v1769_v8 = vmul.f32 %v8092_v38, %v8092_v38  ;;  %v1770_v61 = vmul.f32 %v8094_v9, %v8094_v9 }
 0x2ca   :  { %v1779_v60 = vadd.f32 %v1778_v49, %v1777_v13  ;;  %v1780_v54 = vsel %vm356_vm0, %v1765_v31, 0.0  ;;  %v1782_v20 = vsel %vm356_vm0, %v1766_v14, 0.0  ;;  %v1784_v2 = vsel %vm356_vm0, %v1767_v15, 0.0 }
 0x2cb   :  { %v1786_v37 = vsel %vm356_vm0, %v1768_v57, 0.0  ;;  %v1771_v58 = vmul.f32 %v8096_v3, %v8096_v3  ;;  %v1788_v25 = vsel %vm356_vm0, %v1769_v8, 0.0  ;;  %v1772_v50 = vmul.f32 %v8098_v39, %v8098_v39 }
 0x2cc   :  { %v1781_v7 = vadd.f32 %v1780_v54, %v1779_v60  ;;  %v1790_v55 = vsel %vm356_vm0, %v1770_v61, 0.0  ;;  %v1773_v27 = vmul.f32 %v8100_v19, %v8100_v19  ;;  %v1774_v48 = vmul.f32 %v8102_v52, %v8102_v52 }
 0x2cd   :  { %v1792_v56 = vsel %vm356_vm0, %v1771_v58, 0.0  ;;  %v1794_v21 = vsel %vm356_vm0, %v1772_v50, 0.0  ;;  %v1775_v41 = vmul.f32 %v8104_v35, %v8104_v35  ;;  %v1776_v51 = vmul.f32 %v8106_v16, %v8106_v16 }
 0x2ce   :  { %v1783_v36 = vadd.f32 %v1782_v20, %v1781_v7  ;;  %v1796_v4 = vsel %vm356_vm0, %v1773_v27, 0.0  ;;  %v1798_v6 = vsel %vm356_vm0, %v1774_v48, 0.0  ;;  %v1084_v20 = vld [vmem:[%s8903_s3 + $0x2] ss:$0 sm:$0xff] }
 0x2cf   :  { %v1800_v46 = vsel %vm356_vm0, %v1775_v41, 0.0  ;;  %v1802_v0 = vsel %vm356_vm0, %v1776_v51, 0.0 }
 0x2d0   :  { %v1785_v59 = vadd.f32 %v1784_v2, %v1783_v36 }
 0x2d2   :  { %v1787_v10 = vadd.f32 %v1786_v37, %v1785_v59 }
 0x2d4   :  { %v1789_v44 = vadd.f32 %v1788_v25, %v1787_v10 }
 0x2d6   :  { %v1791_v18 = vadd.f32 %v1790_v55, %v1789_v44 }
 0x2d8   :  { %v1793_v62 = vadd.f32 %v1792_v56, %v1791_v18 }
 0x2da   :  { %v1795_v23 = vadd.f32 %v1794_v21, %v1793_v62 }
 0x2dc   :  { %v1797_v63 = vadd.f32 %v1796_v4, %v1795_v23 }
 0x2de   :  { %v1799_v5 = vadd.f32 %v1798_v6, %v1797_v63 }
 0x2e0   :  { %v1801_v11 = vadd.f32 %v1800_v46, %v1799_v5 }
 0x2e2   :  { %v1803_v32 = vadd.f32 %v1802_v0, %v1801_v11 }
 0x2e4   :  { %v1804_v31 = vrot.slane %v1803_v32, 4 }
 0x2e6   :  { %v1805_v14 = vadd.f32 %v1804_v31, %v1803_v32 }
 0x2e8   :  { %v1806_v13 = vrot.slane %v1805_v14, 2 }
 0x2ea   :  { %v1807_v49 = vadd.f32 %v1806_v13, %v1805_v14 }
 0x2ec   :  { %v1808_v60 = vrot.slane %v1807_v49, 1 }
 0x2ee   :  { %v1809_v15 = vadd.f32 %v1808_v60, %v1807_v49 }
 0x2f0   :  { %v1810_v54 = vmul.f32 0.008928572, %v1809_v15 }
 0x2f2   :  { %v1811_v7 = vadd.f32 1e-05, %v1810_v54 }
 0x2f4   :  { %7084 = vrsqrt.f32 %v1811_v7 }
 0x2fe   :  { %v7085_v57 = vpop.eup %7084 }
 0x2ff   :  { %v1813_v36 = vmul.f32 %v7085_v57, %v8079_v26  ;;  %v1814_v8 = vmul.f32 %v7085_v57, %v8082_v53  ;;  %v1815_v2 = vmul.f32 %v7085_v57, %v8084_v40  ;;  %v1816_v59 = vmul.f32 %v7085_v57, %v8086_v45 }
 0x300   :  { %v1817_v61 = vmul.f32 %v7085_v57, %v8088_v47  ;;  %v1818_v37 = vmul.f32 %v7085_v57, %v8090_v17  ;;  %v1819_v10 = vmul.f32 %v7085_v57, %v8092_v38  ;;  %v1820_v58 = vmul.f32 %v7085_v57, %v8094_v9  ;;  %v1085_v17 = vld [vmem:[%s8903_s3 + $0x3] ss:$0 sm:$0xff] }
 0x301   :  { %v1821_v25 = vmul.f32 %v7085_v57, %v8096_v3  ;;  %v1822_v44 = vmul.f32 %v7085_v57, %v8098_v39  ;;  %v1823_v26 = vmul.f32 %v7085_v57, %v8100_v19  ;;  %v1824_v53 = vmul.f32 %v7085_v57, %v8102_v52 }
 0x302   :  { %v1825_v40 = vmul.f32 %v7085_v57, %v8104_v35  ;;  %v1826_v45 = vmul.f32 %v7085_v57, %v8106_v16  ;;  %v1827_v50 = vmul.f32 %v1813_v36, %v1084_v20  ;;  %v1828_v47 = vmul.f32 %v1814_v8, %v1084_v20 }
 0x303   :  { %v1829_v38 = vmul.f32 %v1815_v2, %v1084_v20  ;;  %v1830_v9 = vmul.f32 %v1816_v59, %v1084_v20  ;;  %v1831_v55 = vmul.f32 %v1817_v61, %v1084_v20  ;;  %v1832_v3 = vmul.f32 %v1818_v37, %v1084_v20  ;;  %v1953_v61 = vld [vmem:[#allocation3 + $0x180] sm:$0xff]  ;;  %v1954_v37 = vld [vmem:[#allocation3 + $0x188] sm:$0xff] }
 0x304   :  { %v1833_v18 = vmul.f32 %v1819_v10, %v1084_v20  ;;  %v1834_v39 = vmul.f32 %v1820_v58, %v1084_v20  ;;  %v1835_v27 = vmul.f32 %v1821_v25, %v1084_v20  ;;  %v1836_v19 = vmul.f32 %v1822_v44, %v1084_v20 }
 0x305   :  { %v1837_v56 = vmul.f32 %v1823_v26, %v1084_v20  ;;  %v1838_v52 = vmul.f32 %v1824_v53, %v1084_v20  ;;  %v1839_v62 = vmul.f32 %v1825_v40, %v1084_v20  ;;  %v1840_v35 = vmul.f32 %v1826_v45, %v1084_v20  ;;  %v1955_v26 = vld [vmem:[#allocation3 + $0x190] sm:$0xff]  ;;  %v1956_v53 = vld [vmem:[#allocation3 + $0x198] sm:$0xff] }
 0x306   :  { %v1841_v48 = vadd.f32 %v1827_v50, %v1085_v17  ;;  %v1842_v16 = vadd.f32 %v1828_v47, %v1085_v17  ;;  %v1843_v21 = vadd.f32 %v1829_v38, %v1085_v17  ;;  %v1844_v23 = vadd.f32 %v1830_v9, %v1085_v17  ;;  %v1957_v38 = vld [vmem:[#allocation3 + $0x1a0] sm:$0xff]  ;;  %v1958_v9 = vld [vmem:[#allocation3 + $0x1a8] sm:$0xff] }
 0x307   :  { %v1845_v41 = vadd.f32 %v1831_v55, %v1085_v17  ;;  %v1846_v4 = vadd.f32 %v1832_v3, %v1085_v17  ;;  %v1847_v63 = vadd.f32 %v1833_v18, %v1085_v17  ;;  %v1848_v51 = vadd.f32 %v1834_v39, %v1085_v17 }
 0x308   :  { %v1849_v6 = vadd.f32 %v1835_v27, %v1085_v17  ;;  %v1850_v5 = vadd.f32 %v1836_v19, %v1085_v17  ;;  %v1851_v46 = vadd.f32 %v1837_v56, %v1085_v17  ;;  %v1852_v11 = vadd.f32 %v1838_v52, %v1085_v17  ;;  %v1959_v56 = vld [vmem:[#allocation3 + $0x1b0] sm:$0xff]  ;;  %v1960_v52 = vld [vmem:[#allocation3 + $0x1b8] sm:$0xff] }
 0x309   :  { %v1853_v0 = vadd.f32 %v1839_v62, %v1085_v17  ;;  %v1854_v32 = vadd.f32 %v1840_v35, %v1085_v17  ;;  %v1855_v31 = vmax.f32 %v1841_v48, 0.0  ;;  %v1856_v14 = vmax.f32 %v1842_v16, 0.0 }
 0x30a   :  { %v1857_v13 = vmax.f32 %v1843_v21, 0.0  ;;  %v1858_v49 = vmax.f32 %v1844_v23, 0.0  ;;  %v1859_v60 = vmax.f32 %v1845_v41, 0.0  ;;  %v1860_v15 = vmax.f32 %v1846_v4, 0.0 }
 0x30b   :  { %v1861_v54 = vmax.f32 %v1847_v63, 0.0  ;;  %v1862_v7 = vmax.f32 %v1848_v51, 0.0  ;;  %v1863_v57 = vmax.f32 %v1849_v6, 0.0  ;;  %v1864_v20 = vmax.f32 %v1850_v5, 0.0  ;;  %1869 = vst.msk [vmem:[#allocation2] sm:$0xff] %vm356_vm0, %v1855_v31  ;;  %1870 = vst.msk [vmem:[#allocation2 + $0x8] sm:$0xff] %vm356_vm0, %v1856_v14 }
 0x30c   :  { %v1865_v36 = vmax.f32 %v1851_v46, 0.0  ;;  %v1866_v8 = vmax.f32 %v1852_v11, 0.0  ;;  %v1867_v2 = vmax.f32 %v1853_v0, 0.0  ;;  %v1868_v59 = vmax.f32 %v1854_v32, 0.0  ;;  %1871 = vst.msk [vmem:[#allocation2 + $0x10] sm:$0xff] %vm356_vm0, %v1857_v13  ;;  %1872 = vst.msk [vmem:[#allocation2 + $0x18] sm:$0xff] %vm356_vm0, %v1858_v49 }
 0x30d   :  { %1873 = vst.msk [vmem:[#allocation2 + $0x20] sm:$0xff] %vm356_vm0, %v1859_v60  ;;  %1874 = vst.msk [vmem:[#allocation2 + $0x28] sm:$0xff] %vm356_vm0, %v1860_v15  ;;  %v6582_v25 = vpack.c.bf16 %v1954_v37, %v1953_v61  ;;  %v1917_v50 = vmul.f32 0.035714287, %v7210_v12  ;;  %v6585_v47 = vpack.c.bf16 %v1956_v53, %v1955_v26  ;;  %v1918_v39 = vmul.f32 0.035714287, %v7230_v28 }
 0x30e   :  { %1875 = vst.msk [vmem:[#allocation2 + $0x30] sm:$0xff] %vm356_vm0, %v1861_v54  ;;  %1876 = vst.msk [vmem:[#allocation2 + $0x38] sm:$0xff] %vm356_vm0, %v1862_v7  ;;  %v6588_v27 = vpack.c.bf16 %v1958_v9, %v1957_v38  ;;  %v1919_v21 = vmul.f32 0.035714287, %v7232_v29  ;;  %v6591_v23 = vpack.c.bf16 %v1960_v52, %v1959_v56  ;;  %v1920_v46 = vmul.f32 0.035714287, %v7238_v33 }
 0x30f   :  { %1877 = vst.msk [vmem:[#allocation2 + $0x40] sm:$0xff] %vm356_vm0, %v1863_v57  ;;  %1878 = vst.msk [vmem:[#allocation2 + $0x48] sm:$0xff] %vm356_vm0, %v1864_v20  ;;  %v1924_v18 = vfloor.f32 %v1917_v50  ;;  %v1925_v16 = vfloor.f32 %v1918_v39  ;;  %v1921_v32 = vmul.f32 0.035714287, %v7251_v42  ;;  %v1971_v37 = vld [vmem:[#allocation3 + $0x200] sm:$0xff]  ;;  %v8964_v56 = vld [vmem:[#allocation7_spill] sm:$0xff] }
 0x310   :  { %1879 = vst.msk [vmem:[#allocation2 + $0x50] sm:$0xff] %vm356_vm0, %v1865_v36  ;;  %1880 = vst.msk [vmem:[#allocation2 + $0x58] sm:$0xff] %vm356_vm0, %v1866_v8  ;;  %v1926_v5 = vfloor.f32 %v1919_v21  ;;  %v1927_v60 = vfloor.f32 %v1920_v46  ;;  %v8963_v38 = vld [vmem:[#allocation10_spill] sm:$0xff] }
 0x311   :  { %1881 = vst.msk [vmem:[#allocation2 + $0x60] sm:$0xff] %vm356_vm0, %v1867_v2  ;;  %1882 = vst.msk [vmem:[#allocation2 + $0x68] sm:$0xff] %vm356_vm0, %v1868_v59  ;;  %v7013_v48 = vtrunc.f32 %v1924_v18  ;;  %v7015_v6 = vtrunc.f32 %v1925_v16  ;;  %v1928_v7 = vfloor.f32 %v1921_v32  ;;  %v8961_v59 = vld [vmem:[#allocation9_spill] sm:$0xff]  ;;  %v1923_v9 = vmul.f32 0.035714287, %v8963_v38 }
 0x312   :  { %v1883_v10 = vld [vmem:[#allocation2] ss:$2 sm:$0xff]  ;;  %v1897_v58 = vld [vmem:[#allocation2 + $0x1] ss:$2 sm:$0xff]  ;;  %v7017_v33 = vtrunc.f32 %v1926_v5  ;;  %v7019_v36 = vtrunc.f32 %v1927_v60  ;;  %v1922_v61 = vmul.f32 0.035714287, %v8961_v59 }
 0x313   :  { %v8184_v44 = vmax.f32 %v1883_v10, %v1897_v58  ;;  %v1885_v40 = vld [vmem:[#allocation2 + $0x10] ss:$2 sm:$0xff]  ;;  %v1899_v45 = vld [vmem:[#allocation2 + $0x11] ss:$2 sm:$0xff]  ;;  %v7014_v51 = vcvt.f32.s32 %v7013_v48  ;;  %v7016_v49 = vcvt.f32.s32 %v7015_v6  ;;  %v7021_v58 = vtrunc.f32 %v1928_v7  ;;  %v1974_v18 = vld [vmem:[#allocation3 + $0x218] sm:$0xff] }
 0x314   :  { %v8191_v17 = vmax.f32 %v1885_v40, %v1899_v45  ;;  %v1887_v55 = vld [vmem:[#allocation2 + $0x20] ss:$2 sm:$0xff]  ;;  %v1901_v3 = vld [vmem:[#allocation2 + $0x21] ss:$2 sm:$0xff]  ;;  %v7018_v20 = vcvt.f32.s32 %v7017_v33  ;;  %v1972_v10 = vld [vmem:[#allocation3 + $0x208] sm:$0xff]  ;;  %v7020_v40 = vcvt.f32.s32 %v7019_v36  ;;  %v1930_v21 = vfloor.f32 %v1923_v9 }
 0x315   :  { %6025 = vmatmul.mubr.msk.f32.vlgmr.msra.gmra.mrb[28].mxu0 %vm356_vm0, %v8184_v44  ;;  %v8199_v19 = vmax.f32 %v1887_v55, %v1901_v3  ;;  %v1889_v62 = vld [vmem:[#allocation2 + $0x30] ss:$2 sm:$0xff]  ;;  %v1903_v35 = vld [vmem:[#allocation2 + $0x31] ss:$2 sm:$0xff]  ;;  %v1938_v13 = vmul.u32 28, %v7014_v51  ;;  %v1939_v42 = vmul.u32 28, %v7016_v49  ;;  %v6594_v55 = vpack.c.bf16 %v1972_v10, %v1971_v37 }
 0x316   :  { %6027 = vmatprep.mubr.msk.f32.mxu0 %vm8931_vm11, %v7155_v24  ;;  %6583 = vmatpush3.bf16.msra.mxu0 %v6582_v25  ;;  %v8207_v41 = vmax.f32 %v1889_v62, %v1903_v35  ;;  %v1891_v4 = vld [vmem:[#allocation2 + $0x40] ss:$2 sm:$0xff]  ;;  %v1905_v63 = vld [vmem:[#allocation2 + $0x41] ss:$2 sm:$0xff]  ;;  %v1988_v2 = vrot.slane %v8184_v44, 7  ;;  %v8962_v25 = vld [vmem:[#allocation6_spill] sm:$0xff]  ;;  %v7022_v39 = vcvt.f32.s32 %v7021_v58 }
 0x317   :  { %6584 = vmatprep.subr.bf16.mxu0 %v7153_v43  ;;  %v8215_v0 = vmax.f32 %v1891_v4, %v1905_v63  ;;  %v1893_v31 = vld [vmem:[#allocation2 + $0x50] ss:$2 sm:$0xff]  ;;  %v1907_v14 = vld [vmem:[#allocation2 + $0x51] ss:$2 sm:$0xff]  ;;  %v8228_v57 = vsub.s32 %v7202_v1, %v1938_v13  ;;  %v8239_v26 = vsub.s32 %v8962_v25, %v1939_v42  ;;  %v1940_v53 = vmul.u32 28, %v7018_v20  ;;  %v1973_v3 = vld [vmem:[#allocation3 + $0x210] sm:$0xff] }
 0x318   :  { %v1895_v29 = vld [vmem:[#allocation2 + $0x60] ss:$2 sm:$0xff]  ;;  %v1909_v11 = vld [vmem:[#allocation2 + $0x61] ss:$2 sm:$0xff]  ;;  %v8225_v54 = vmax.f32 %v1893_v31, %v1907_v14  ;;  %v1989_v50 = vrot.slane %v8191_v17, 7  ;;  %v1941_v62 = vmul.u32 28, %v7020_v40  ;;  %v7025_v31 = vtrunc.f32 %v1930_v21 }
 0x319   :  { %6028 = vmatmul.mubr.msk.f32.gmra.mrb[30].mxu0 %vm356_vm0, %v8191_v17  ;;  %v8221_v15 = vmax.f32 %v1895_v29, %v1909_v11  ;;  %vm1981_vm12 = vcmp.eq.s32.totalorder %v8228_v57, 0  ;;  %vm1982_vm13 = vcmp.eq.s32.totalorder %v8239_v26, 0  ;;  %v8255_v52 = vsub.s32 %v8964_v56, %v1940_v53  ;;  %v1975_v4 = vld [vmem:[#allocation3 + $0x220] sm:$0xff]  ;;  %v1976_v63 = vld [vmem:[#allocation3 + $0x228] sm:$0xff]  ;;  %v8965_v6 = vld [vmem:[#allocation8_spill] sm:$0xff] }
 0x31a   :  { %6030 = vmatprep.mubr.msk.f32.mxu0 %vm8931_vm11, %v7155_v24  ;;  %6586 = vmatpush3.bf16.msra.mxu0 %v6585_v47  ;;  %v1929_v47 = vfloor.f32 %v1922_v61  ;;  %v2000_v35 = vsel %vm214_vm1, %v1988_v2, %v1989_v50  ;;  %v1990_v48 = vrot.slane %v8199_v19, 7  ;;  %v8268_v5 = vsub.s32 %v8965_v6, %v1941_v62  ;;  %v1977_v13 = vld [vmem:[#allocation3 + $0x230] sm:$0xff]  ;;  %v1978_v49 = vld [vmem:[#allocation3 + $0x238] sm:$0xff]  ;;  %v2531_v21 = vld [vmem:[#allocation3 + $0x288] sm:$0xff] }
 0x31b   :  { %6587 = vmatprep.subr.bf16.mxu0 %v7153_v43  ;;  %v1994_v8 = vrot.slane %v8221_v15, 7  ;;  %v2017_v51 = vsel %vm1982_vm13, 0.0, %v2000_v35  ;;  %vm1983_vm14 = vcmp.eq.s32.totalorder %v8255_v52, 0  ;;  %v1942_v46 = vmul.u32 28, %v7022_v39  ;;  %v2540_v6 = vld [vmem:[#allocation3 + $0x2c8] sm:$0xff] }
 0x31c   :  { %v7023_v16 = vtrunc.f32 %v1929_v47  ;;  %v1999_v29 = vsel %vm214_vm1, %v1989_v50, %v1990_v48  ;;  %v1991_v11 = vrot.slane %v8207_v41, 7  ;;  %v6600_v14 = vpack.c.bf16 %v1976_v63, %v1975_v4  ;;  %v2533_v63 = vld [vmem:[#allocation3 + $0x298] sm:$0xff] }
 0x31d   :  { %6031 = vmatmul.mubr.msk.f32.gmra.mrb[32].mxu0 %vm356_vm0, %v8199_v19  ;;  %v2001_v45 = vsel %vm214_vm1, %v1994_v8, %v1988_v2  ;;  %v2018_v33 = vsel %vm1983_vm14, 0.0, %v1999_v29  ;;  %vm1984_vm8 = vcmp.eq.s32.totalorder %v8268_v5, 0  ;;  %v8281_v60 = vsub.s32 %v7227_v22, %v1942_v46  ;;  %v2541_v29 = vld [vmem:[#allocation3 + $0x2d0] sm:$0xff] }
 0x31e   :  { %6033 = vmatprep.mubr.msk.f32.mxu0 %vm8931_vm11, %v7155_v24  ;;  %6589 = vmatpush3.bf16.msra.mxu0 %v6588_v27  ;;  %v2016_v27 = vsel %vm1981_vm12, 0.0, %v2001_v45  ;;  %v7024_v32 = vcvt.f32.s32 %v7023_v16  ;;  %v1998_v7 = vsel %vm214_vm1, %v1990_v48, %v1991_v11  ;;  %v1992_v42 = vrot.slane %v8215_v0, 7  ;;  %v2530_v16 = vld [vmem:[#allocation3 + $0x280] sm:$0xff] }
 0x31f   :  { %6590 = vmatprep.subr.bf16.mxu0 %v7153_v43  ;;  %v7026_v36 = vcvt.f32.s32 %v7025_v31  ;;  %v6603_v2 = vpack.c.bf16 %v1978_v49, %v1977_v13  ;;  %v2019_v22 = vsel %vm1984_vm8, 0.0, %v1998_v7  ;;  %vm1985_vm9 = vcmp.eq.s32.totalorder %v8281_v60, 0  ;;  %v2534_v31 = vld [vmem:[#allocation3 + $0x2a0] sm:$0xff] }
 0x320   :  { %v1943_v20 = vmul.u32 28, %v7024_v32  ;;  %v1997_v59 = vsel %vm214_vm1, %v1991_v11, %v1992_v42  ;;  %v1993_v37 = vrot.slane %v8225_v54, 7  ;;  %v2031_v45 = vrot.slane %v8191_v17, 1  ;;  %v2542_v32 = vld [vmem:[#allocation3 + $0x2d8] sm:$0xff]  ;;  %v2543_v49 = vld [vmem:[#allocation3 + $0x2e0] sm:$0xff] }
 0x321   :  { %6034 = vmatmul.mubr.msk.f32.gmra.mrb[34].mxu0 %vm356_vm0, %v8207_v41  ;;  %v1944_v10 = vmul.u32 28, %v7026_v36  ;;  %v2020_v58 = vsel %vm1985_vm9, 0.0, %v1997_v59  ;;  %vm2023_vm3 = vcmp.eq.s32.totalorder %v8228_v57, 27  ;;  %v2032_v38 = vrot.slane %v8199_v19, 1 }
 0x322   :  { %6036 = vmatprep.mubr.msk.f32.mxu0 %vm8931_vm11, %v7155_v24  ;;  %6592 = vmatpush3.bf16.msra.mxu0 %v6591_v23  ;;  %v6597_v23 = vpack.c.bf16 %v1974_v18, %v1973_v3  ;;  %v8297_v61 = vsub.s32 %v7235_v30, %v1943_v20  ;;  %v1996_v30 = vsel %vm214_vm1, %v1992_v42, %v1993_v37  ;;  %vm2024_vm4 = vcmp.eq.s32.totalorder %v8239_v26, 27  ;;  %v2536_v42 = vld [vmem:[#allocation3 + $0x2b0] sm:$0xff]  ;;  %v2537_v20 = vld [vmem:[#allocation3 + $0x2b8] sm:$0xff] }
 0x323   :  { %6593 = vmatprep.subr.bf16.mxu0 %v7153_v43  ;;  %v8310_v53 = vsub.s32 %v7241_v34, %v1944_v10  ;;  %v1995_v50 = vsel %vm214_vm1, %v1993_v37, %v1994_v8  ;;  %v2030_v34 = vrot.slane %v8184_v44, 1  ;;  %v2041_v8 = vsel %vm299_vm15, %v2031_v45, %v2032_v38 }
 0x324   :  { %vm8930_vm10 = vcmp.eq.s32.totalorder %v8297_v61, 0  ;;  %v2033_v9 = vrot.slane %v8207_v41, 1  ;;  %v2059_v19 = vsel %vm2024_vm4, 0.0, %v2041_v8  ;;  %vm2025_vm5 = vcmp.eq.s32.totalorder %v8255_v52, 27 }
 0x325   :  { %6037 = vmatmul.mubr.msk.f32.gmra.mrb[36].mxu0 %vm356_vm0, %v8215_v0  ;;  %v2021_v40 = vsel %vm8930_vm10, 0.0, %v1996_v30  ;;  %vm8929_vm2 = vcmp.eq.s32.totalorder %v8310_v53, 0  ;;  %v2042_v17 = vsel %vm299_vm15, %v2030_v34, %v2031_v45  ;;  %v2034_v3 = vrot.slane %v8215_v0, 1 }
 0x326   :  { %6039 = vmatprep.mubr.msk.f32.mxu0 %vm8931_vm11, %v7155_v24  ;;  %v2022_v47 = vsel %vm8929_vm2, 0.0, %v1995_v50  ;;  %v2058_v44 = vsel %vm2023_vm3, 0.0, %v2042_v17  ;;  %vm2026_vm6 = vcmp.eq.s32.totalorder %v8268_v5, 27  ;;  %v2035_v39 = vrot.slane %v8225_v54, 1 }
 0x327   :  { %v2039_v18 = vsel %vm299_vm15, %v2033_v9, %v2034_v3  ;;  %vm2027_vm7 = vcmp.eq.s32.totalorder %v8281_v60, 27  ;;  %v2036_v56 = vrot.slane %v8221_v15, 1  ;;  %vm2028_vm2 = vcmp.eq.s32.totalorder %v8297_v61, 27 }
 0x328   :  { %v2061_v0 = vsel %vm2026_vm6, 0.0, %v2039_v18  ;;  %vm2029_vm10 = vcmp.eq.s32.totalorder %v8310_v53, 27  ;;  %v6606_v4 = vpack.c.bf16 %v2531_v21, %v2530_v16  ;;  %v8396_v13 = vpack.c.bf16 %v2542_v32, %v2541_v29 }
 0x329   :  { %6040 = vmatmul.mubr.msk.f32.gmra.mrb[38].mxu0 %vm356_vm0, %v8225_v54  ;;  %v2037_v62 = vsel %vm299_vm15, %v2035_v39, %v2036_v56  ;;  %v6615_v59 = vpack.c.bf16 %v2537_v20, %v2536_v42 }
 0x32a   :  { %6042 = vmatprep.mubr.msk.f32.mxu0 %vm8931_vm11, %v7155_v24  ;;  %v2063_v35 = vsel %vm2028_vm2, 0.0, %v2037_v62  ;;  %6607 = vmatpush3.bf16.msra.mxu1 %v6606_v4 }
 0x32b   :  { %6608 = vmatprep.subr.bf16.mxu1 %v7153_v43 }
 0x32d   :  { %6043 = vmatmul.mubr.msk.f32.gmra.mrb[40].mxu0 %vm356_vm0, %v8221_v15  ;;  %v2043_v15 = vsel %vm299_vm15, %v2036_v56, %v2030_v34 }
 0x32e   :  { %6061 = vmatprep.mubr.msk.f32.mxu0 %vm8931_vm11, %v7155_v24  ;;  %v2064_v48 = vsel %vm2029_vm10, 0.0, %v2043_v15 }
 0x331   :  { %6062 = vmatmul.mubr.msk.f32.vlgmr.msra.gmra.mrb[28].mxu0 %vm356_vm0, %v2016_v27  ;;  %v2038_v27 = vsel %vm299_vm15, %v2034_v3, %v2035_v39 }
 0x332   :  { %6064 = vmatprep.mubr.msk.f32.mxu0 %vm8931_vm11, %v7155_v24  ;;  %6595 = vmatpush3.bf16.msra.mxu0 %v6594_v55  ;;  %v2040_v55 = vsel %vm299_vm15, %v2032_v38, %v2033_v9  ;;  %v2062_v54 = vsel %vm2027_vm7, 0.0, %v2038_v27 }
 0x333   :  { %6596 = vmatprep.subr.bf16.mxu0 %v7153_v43  ;;  %v2060_v41 = vsel %vm2025_vm5, 0.0, %v2040_v55 }
 0x335   :  { %6065 = vmatmul.mubr.msk.f32.gmra.mrb[30].mxu0 %vm356_vm0, %v2017_v51  ;;  %v2539_v51 = vld [vmem:[#allocation3 + $0x2c0] sm:$0xff] }
 0x336   :  { %6067 = vmatprep.mubr.msk.f32.mxu0 %vm8931_vm11, %v7155_v24  ;;  %6598 = vmatpush3.bf16.msra.mxu0 %v6597_v23  ;;  %v2532_v23 = vld [vmem:[#allocation3 + $0x290] sm:$0xff]  ;;  %v8392_v46 = vpack.c.bf16 %v2540_v6, %v2539_v51 }
 0x337   :  { %6599 = vmatprep.subr.bf16.mxu0 %v7153_v43  ;;  %v6609_v11 = vpack.c.bf16 %v2533_v63, %v2532_v23 }
 0x339   :  { %6068 = vmatmul.mubr.msk.f32.gmra.mrb[32].mxu0 %vm356_vm0, %v2018_v33  ;;  %v2544_v33 = vld [vmem:[#allocation3 + $0x2e8] sm:$0xff]  ;;  %6610 = vmatpush3.bf16.msra.mxu1 %v6609_v11 }
 0x33a   :  { %6070 = vmatprep.mubr.msk.f32.mxu0 %vm8931_vm11, %v7155_v24  ;;  %6601 = vmatpush3.bf16.msra.mxu0 %v6600_v14  ;;  %v2535_v14 = vld [vmem:[#allocation3 + $0x2a8] sm:$0xff]  ;;  %v8401_v36 = vpack.c.bf16 %v2544_v33, %v2543_v49 }
 0x33b   :  { %6602 = vmatprep.subr.bf16.mxu0 %v7153_v43  ;;  %v6612_v7 = vpack.c.bf16 %v2535_v14, %v2534_v31  ;;  %6611 = vmatprep.subr.bf16.mxu1 %v7153_v43 }
 0x33d   :  { %6071 = vmatmul.mubr.msk.f32.gmra.mrb[34].mxu0 %vm356_vm0, %v2019_v22  ;;  %v2546_v22 = vld [vmem:[#allocation3 + $0x2f8] sm:$0xff]  ;;  %6613 = vmatpush3.bf16.msra.mxu1 %v6612_v7 }
 0x33e   :  { %6073 = vmatprep.mubr.msk.f32.mxu0 %vm8931_vm11, %v7155_v24  ;;  %6604 = vmatpush3.bf16.msra.mxu0 %v6603_v2  ;;  %v2545_v2 = vld [vmem:[#allocation3 + $0x2f0] sm:$0xff] }
 0x33f   :  { %6629 = vmatprep.subr.bf16.mxu0 %v7153_v43  ;;  %6614 = vmatprep.subr.bf16.mxu1 %v7153_v43  ;;  %v8406_v37 = vpack.c.bf16 %v2546_v22, %v2545_v2 }
 0x341   :  { %6074 = vmatmul.mubr.msk.f32.gmra.mrb[36].mxu0 %vm356_vm0, %v2020_v58  ;;  %6616 = vmatpush3.bf16.msra.mxu1 %v6615_v59 }
 0x342   :  { %6076 = vmatprep.mubr.msk.f32.mxu0 %vm8931_vm11, %v7155_v24  ;;  %6617 = vmatprep.subr.bf16.mxu1 %v7153_v43 }
 0x345   :  { %6077 = vmatmul.mubr.msk.f32.gmra.mrb[38].mxu0 %vm356_vm0, %v2021_v40 }
 0x346   :  { %6079 = vmatprep.mubr.msk.f32.mxu0 %vm8931_vm11, %v7155_v24 }
 0x349   :  { %6080 = vmatmul.mubr.msk.f32.gmra.mrb[40].mxu0 %vm356_vm0, %v2022_v47 }
 0x34a   :  { %6098 = vmatprep.mubr.msk.f32.mxu0 %vm8931_vm11, %v7155_v24 }
 0x34d   :  { %6099 = vmatmul.mubr.msk.f32.vlgmr.msra.gmra.mrb[28].mxu0 %vm356_vm0, %v2058_v44 }
 0x34e   :  { %6101 = vmatprep.mubr.msk.f32.mxu0 %vm8931_vm11, %v7155_v24  ;;  %6631 = vmatpush3.bf16.msra.mxu0 %v8392_v46 }
 0x34f   :  { %6632 = vmatprep.subr.bf16.mxu0 %v7153_v43 }
 0x351   :  { %6102 = vmatmul.mubr.msk.f32.gmra.mrb[30].mxu0 %vm356_vm0, %v2059_v19 }
 0x352   :  { %6104 = vmatprep.mubr.msk.f32.mxu0 %vm8931_vm11, %v7155_v24  ;;  %6634 = vmatpush3.bf16.msra.mxu0 %v8396_v13 }
 0x353   :  { %6635 = vmatprep.subr.bf16.mxu0 %v7153_v43 }
 0x355   :  { %6105 = vmatmul.mubr.msk.f32.gmra.mrb[32].mxu0 %vm356_vm0, %v2060_v41 }
 0x356   :  { %6107 = vmatprep.mubr.msk.f32.mxu0 %vm8931_vm11, %v7155_v24  ;;  %6637 = vmatpush3.bf16.msra.mxu0 %v8401_v36 }
 0x357   :  { %6638 = vmatprep.subr.bf16.mxu0 %v7153_v43 }
 0x359   :  { %6108 = vmatmul.mubr.msk.f32.gmra.mrb[34].mxu0 %vm356_vm0, %v2061_v0 }
 0x35a   :  { %6110 = vmatprep.mubr.msk.f32.mxu0 %vm8931_vm11, %v7155_v24  ;;  %6640 = vmatpush3.bf16.msra.mxu0 %v8406_v37 }
 0x35d   :  { %6111 = vmatmul.mubr.msk.f32.gmra.mrb[36].mxu0 %vm356_vm0, %v2062_v54 }
 0x35e   :  { %6113 = vmatprep.mubr.msk.f32.mxu0 %vm8931_vm11, %v7155_v24 }
 0x361   :  { %6114 = vmatmul.mubr.msk.f32.gmra.mrb[38].mxu0 %vm356_vm0, %v2063_v35 }
 0x362   :  { %6116 = vmatprep.mubr.msk.f32.mxu0 %vm8931_vm11, %v7155_v24 }
 0x365   :  { %6117 = vmatmul.mubr.msk.f32.gmra.mrb[40].mxu0 %vm356_vm0, %v2064_v48 }
 0x366   :  { %6209 = vmatprep.mubr.msk.f32.mxu0 %vm8931_vm11, %v7155_v24 }
 0x420   :  { %v2394_v10 = vpop.f32.mrb[28].mxu0 }
 0x421   :  { %v6100_v58 = vpop.f32.mrb[29].mxu0  ;;  %v2435_v40 = vsel %vm356_vm0, %v2394_v10, 0.0 }
 0x424   :  { %v2399_v30 = vpop.f32.mrb[30].mxu0 }
 0x425   :  { %v2436_v45 = vsel %vm356_vm0, %v2399_v30, 0.0  ;;  %v6103_v50 = vpop.f32.mrb[31].mxu0 }
 0x426   :  { %v2437_v34 = vadd.f32 %v2436_v45, %v2435_v40 }
 0x428   :  { %v2404_v47 = vpop.f32.mrb[32].mxu0 }
 0x429   :  { %v2438_v17 = vsel %vm356_vm0, %v2404_v47, 0.0  ;;  %v6106_v38 = vpop.f32.mrb[33].mxu0 }
 0x42a   :  { %v2439_v44 = vadd.f32 %v2438_v17, %v2437_v34 }
 0x42c   :  { %v2409_v8 = vpop.f32.mrb[34].mxu0 }
 0x42d   :  { %v2440_v9 = vsel %vm356_vm0, %v2409_v8, 0.0  ;;  %v6109_v19 = vpop.f32.mrb[35].mxu0 }
 0x42e   :  { %v2441_v55 = vadd.f32 %v2440_v9, %v2439_v44 }
 0x430   :  { %v2414_v3 = vpop.f32.mrb[36].mxu0 }
 0x431   :  { %v2442_v41 = vsel %vm356_vm0, %v2414_v3, 0.0  ;;  %v6112_v18 = vpop.f32.mrb[37].mxu0 }
 0x432   :  { %v2443_v39 = vadd.f32 %v2442_v41, %v2441_v55 }
 0x434   :  { %v2419_v0 = vpop.f32.mrb[38].mxu0 }
 0x435   :  { %v2444_v27 = vsel %vm356_vm0, %v2419_v0, 0.0  ;;  %v6115_v56 = vpop.f32.mrb[39].mxu0 }
 0x436   :  { %v2445_v54 = vadd.f32 %v2444_v27, %v2443_v39 }
 0x438   :  { %v2424_v62 = vpop.f32.mrb[40].mxu0 }
 0x439   :  { %v2446_v35 = vsel %vm356_vm0, %v2424_v62, 0.0  ;;  %v6118_v15 = vpop.f32.mrb[41].mxu0 }
 0x43a   :  { %v2447_v48 = vadd.f32 %v2446_v35, %v2445_v54 }
 0x43c   :  { %v2448_v16 = vrot.slane %v2447_v48, 4 }
 0x43e   :  { %v2449_v21 = vadd.f32 %v2448_v16, %v2447_v48 }
 0x440   :  { %v2450_v23 = vrot.slane %v2449_v21, 2 }
 0x442   :  { %v2451_v4 = vadd.f32 %v2450_v23, %v2449_v21  ;;  %v1980_v21 = vld [vmem:[%s8903_s3 + $0x5] ss:$0 sm:$0xff] }
 0x444   :  { %v2452_v63 = vrot.slane %v2451_v4, 1 }
 0x446   :  { %v2453_v51 = vadd.f32 %v2452_v63, %v2451_v4 }
 0x448   :  { %v2455_v6 = vmul.f32 0.017857144, %v2453_v51 }
 0x44a   :  { %v2456_v29 = vsub.f32 %v2394_v10, %v2455_v6  ;;  %v2457_v11 = vsub.f32 %v2399_v30, %v2455_v6  ;;  %v2458_v32 = vsub.f32 %v2404_v47, %v2455_v6  ;;  %v2459_v31 = vsub.f32 %v2409_v8, %v2455_v6 }
 0x44b   :  { %v2460_v14 = vsub.f32 %v2414_v3, %v2455_v6  ;;  %v2461_v49 = vsub.f32 %v2419_v0, %v2455_v6  ;;  %v2462_v33 = vsub.f32 %v2424_v62, %v2455_v6  ;;  %v1979_v62 = vld [vmem:[%s8903_s3 + $0x4] ss:$0 sm:$0xff] }
 0x44c   :  { %v2463_v7 = vmul.f32 %v2456_v29, %v2456_v29  ;;  %v2464_v42 = vmul.f32 %v2457_v11, %v2457_v11  ;;  %v2465_v20 = vmul.f32 %v2458_v32, %v2458_v32  ;;  %v2466_v2 = vmul.f32 %v2459_v31, %v2459_v31 }
 0x44d   :  { %v2467_v40 = vmul.f32 %v2460_v14, %v2460_v14  ;;  %v2468_v10 = vmul.f32 %v2461_v49, %v2461_v49  ;;  %v2469_v47 = vmul.f32 %v2462_v33, %v2462_v33 }
 0x44e   :  { %v2470_v22 = vsel %vm356_vm0, %v2463_v7, 0.0  ;;  %v2471_v59 = vsel %vm356_vm0, %v2464_v42, 0.0  ;;  %v2473_v45 = vsel %vm356_vm0, %v2465_v20, 0.0  ;;  %v2475_v30 = vsel %vm356_vm0, %v2466_v2, 0.0  ;;  %v2521_v42 = vld [vmem:[#allocation3 + $0x240] sm:$0xff]  ;;  %v2522_v20 = vld [vmem:[#allocation3 + $0x248] sm:$0xff] }
 0x44f   :  { %v2472_v58 = vadd.f32 %v2471_v59, %v2470_v22  ;;  %v2477_v17 = vsel %vm356_vm0, %v2467_v40, 0.0  ;;  %v2479_v44 = vsel %vm356_vm0, %v2468_v10, 0.0  ;;  %v2481_v9 = vsel %vm356_vm0, %v2469_v47, 0.0  ;;  %v2523_v40 = vld [vmem:[#allocation3 + $0x250] sm:$0xff] }
 0x451   :  { %v2474_v50 = vadd.f32 %v2473_v45, %v2472_v58  ;;  %v2524_v45 = vld [vmem:[#allocation3 + $0x258] sm:$0xff] }
 0x453   :  { %v2476_v34 = vadd.f32 %v2475_v30, %v2474_v50  ;;  %v6618_v50 = vpack.c.bf16 %v2522_v20, %v2521_v42 }
 0x455   :  { %v2478_v38 = vadd.f32 %v2477_v17, %v2476_v34 }
 0x457   :  { %v2480_v8 = vadd.f32 %v2479_v44, %v2478_v38  ;;  %v6621_v38 = vpack.c.bf16 %v2524_v45, %v2523_v40 }
 0x459   :  { %v2482_v19 = vadd.f32 %v2481_v9, %v2480_v8 }
 0x45b   :  { %v2483_v55 = vrot.slane %v2482_v19, 4 }
 0x45d   :  { %v2484_v3 = vadd.f32 %v2483_v55, %v2482_v19 }
 0x45f   :  { %v2485_v41 = vrot.slane %v2484_v3, 2 }
 0x461   :  { %v2486_v18 = vadd.f32 %v2485_v41, %v2484_v3 }
 0x463   :  { %v2487_v39 = vrot.slane %v2486_v18, 1 }
 0x465   :  { %v2488_v0 = vadd.f32 %v2487_v39, %v2486_v18 }
 0x467   :  { %v2489_v27 = vmul.f32 0.017857144, %v2488_v0 }
 0x469   :  { %v2490_v56 = vadd.f32 1e-05, %v2489_v27 }
 0x46b   :  { %7086 = vrsqrt.f32 %v2490_v56 }
 0x475   :  { %v7087_v54 = vpop.eup %7086 }
 0x476   :  { %v2498_v35 = vmul.f32 %v7087_v54, %v2462_v33  ;;  %v2492_v15 = vmul.f32 %v7087_v54, %v2456_v29  ;;  %v2493_v48 = vmul.f32 %v7087_v54, %v2457_v11  ;;  %v2494_v16 = vmul.f32 %v7087_v54, %v2458_v32 }
 0x477   :  { %v2495_v23 = vmul.f32 %v7087_v54, %v2459_v31  ;;  %v2496_v4 = vmul.f32 %v7087_v54, %v2460_v14  ;;  %v2497_v63 = vmul.f32 %v7087_v54, %v2461_v49 }
 0x478   :  { %v2505_v51 = vmul.f32 %v2498_v35, %v1979_v62  ;;  %v2499_v6 = vmul.f32 %v2492_v15, %v1979_v62  ;;  %v2500_v7 = vmul.f32 %v2493_v48, %v1979_v62  ;;  %v2501_v2 = vmul.f32 %v2494_v16, %v1979_v62  ;;  %v2525_v16 = vld [vmem:[#allocation3 + $0x260] sm:$0xff] }
 0x479   :  { %v2502_v22 = vmul.f32 %v2495_v23, %v1979_v62  ;;  %v2503_v59 = vmul.f32 %v2496_v4, %v1979_v62  ;;  %v2504_v58 = vmul.f32 %v2497_v63, %v1979_v62 }
 0x47a   :  { %v2512_v33 = vadd.f32 %v2505_v51, %v1980_v21  ;;  %v2506_v29 = vadd.f32 %v2499_v6, %v1980_v21  ;;  %v2507_v11 = vadd.f32 %v2500_v7, %v1980_v21  ;;  %v2508_v32 = vadd.f32 %v2501_v2, %v1980_v21 }
 0x47b   :  { %v2509_v10 = vadd.f32 %v2502_v22, %v1980_v21  ;;  %v2510_v31 = vadd.f32 %v2503_v59, %v1980_v21  ;;  %v2511_v14 = vadd.f32 %v2504_v58, %v1980_v21  ;;  %v2526_v21 = vld [vmem:[#allocation3 + $0x268] sm:$0xff]  ;;  %v2527_v22 = vld [vmem:[#allocation3 + $0x270] sm:$0xff]  ;;  %v2528_v59 = vld [vmem:[#allocation3 + $0x278] sm:$0xff] }
 0x47c   :  { %v2513_v49 = vmax.f32 %v2506_v29, 0.0  ;;  %v2514_v30 = vmax.f32 %v2507_v11, 0.0  ;;  %v2515_v34 = vmax.f32 %v2508_v32, 0.0  ;;  %v8431_v47 = vmax.f32 %v2512_v33, 0.0 }
 0x47d   :  { %v2516_v17 = vmax.f32 %v2509_v10, 0.0  ;;  %v2517_v44 = vmax.f32 %v2510_v31, 0.0  ;;  %v8433_v8 = vmax.f32 %v2511_v14, 0.0  ;;  %v6624_v6 = vpack.c.bf16 %v2526_v21, %v2525_v16  ;;  %v3090_v16 = vld [vmem:[%s8901_s1 + $0x68] sm:$0xff]  ;;  %v3092_v21 = vld [vmem:[%s8901_s1 + $0x78] sm:$0xff] }
 0x47e   :  { %6136 = vmatmul.mubr.msk.f32.vlgmr.msra.gmra.mrb[14].mxu1 %vm356_vm0, %v2513_v49  ;;  %v2571_v9 = vrot.slane %v2514_v30, 1  ;;  %v2570_v19 = vrot.slane %v2513_v49, 1  ;;  %v2572_v55 = vrot.slane %v2515_v34, 1  ;;  %v2555_v3 = vrot.slane %v8431_v47, 7 }
 0x47f   :  { %6138 = vmatprep.mubr.msk.f32.mxu1 %vm8931_vm11, %v7155_v24  ;;  %6619 = vmatpush3.bf16.msra.mxu1 %v6618_v50  ;;  %v2573_v41 = vrot.slane %v2516_v17, 1  ;;  %v2574_v18 = vrot.slane %v2517_v44, 1  ;;  %v2575_v39 = vrot.slane %v8433_v8, 1  ;;  %v2549_v0 = vrot.slane %v2513_v49, 7 }
 0x480   :  { %v2582_v27 = vsel %vm299_vm15, %v2570_v19, %v2571_v9  ;;  %v2581_v56 = vsel %vm299_vm15, %v2571_v9, %v2572_v55  ;;  %6620 = vmatprep.subr.bf16.mxu1 %v7153_v43  ;;  %v2550_v54 = vrot.slane %v2514_v30, 7  ;;  %v2551_v62 = vrot.slane %v2515_v34, 7  ;;  %v3080_v9 = vld [vmem:[%s8901_s1 + $0x18] sm:$0xff] }
 0x481   :  { %v2584_v35 = vsel %vm2023_vm3, 0.0, %v2582_v27  ;;  %v2580_v15 = vsel %vm299_vm15, %v2572_v55, %v2573_v41  ;;  %v2579_v48 = vsel %vm299_vm15, %v2573_v41, %v2574_v18  ;;  %v2562_v23 = vsel %vm214_vm1, %v2555_v3, %v2549_v0  ;;  %v3079_v55 = vld [vmem:[%s8901_s1 + $0x10] sm:$0xff]  ;;  %v3084_v41 = vld [vmem:[%s8901_s1 + $0x38] sm:$0xff] }
 0x482   :  { %6139 = vmatmul.mubr.msk.f32.gmra.mrb[16].mxu1 %vm356_vm0, %v2514_v30  ;;  %6210 = vmatmul.mubr.msk.f32.vlgmr.msra.gmra.mrb[42].mxu0 %vm356_vm0, %v2584_v35  ;;  %v2561_v4 = vsel %vm214_vm1, %v2549_v0, %v2550_v54  ;;  %v2560_v63 = vsel %vm214_vm1, %v2550_v54, %v2551_v62  ;;  %v2552_v51 = vrot.slane %v2516_v17, 7  ;;  %v2553_v7 = vrot.slane %v2517_v44, 7  ;;  %v3081_v0 = vld [vmem:[%s8901_s1 + $0x20] sm:$0xff]  ;;  %v3083_v27 = vld [vmem:[%s8901_s1 + $0x30] sm:$0xff]  ;;  %v3088_v54 = vld [vmem:[%s8901_s1 + $0x58] sm:$0xff] }
 0x483   :  { %6141 = vmatprep.mubr.msk.f32.mxu1 %vm8931_vm11, %v7155_v24  ;;  %6212 = vmatprep.mubr.msk.f32.mxu0 %vm8931_vm11, %v7155_v24  ;;  %v2554_v42 = vrot.slane %v8433_v8, 7  ;;  %v8466_v20 = vsel %vm299_vm15, %v2574_v18, %v2575_v39  ;;  %v2585_v2 = vsel %vm2024_vm4, 0.0, %v2581_v56  ;;  %v2576_v33 = vrot.slane %v8431_v47, 1  ;;  %v3086_v56 = vld [vmem:[%s8901_s1 + $0x48] sm:$0xff] }
 0x484   :  { %6622 = vmatpush3.bf16.msra.mxu1 %v6621_v38  ;;  %v2559_v58 = vsel %vm214_vm1, %v2551_v62, %v2552_v51  ;;  %v2558_v29 = vsel %vm214_vm1, %v2552_v51, %v2553_v7  ;;  %v6627_v45 = vpack.c.bf16 %v2528_v59, %v2527_v22  ;;  %v2586_v10 = vsel %vm2025_vm5, 0.0, %v2580_v15  ;;  %v3085_v15 = vld [vmem:[%s8901_s1 + $0x40] sm:$0xff]  ;;  %v3091_v51 = vld [vmem:[%s8901_s1 + $0x70] sm:$0xff] }
 0x485   :  { %6623 = vmatprep.subr.bf16.mxu1 %v7153_v43  ;;  %v2557_v11 = vsel %vm214_vm1, %v2553_v7, %v2554_v42  ;;  %v2556_v32 = vsel %vm214_vm1, %v2554_v42, %v2555_v3  ;;  %v2577_v40 = vsel %vm299_vm15, %v2575_v39, %v2576_v33  ;;  %v2583_v50 = vsel %vm299_vm15, %v2576_v33, %v2570_v19  ;;  %v3082_v3 = vld [vmem:[%s8901_s1 + $0x28] sm:$0xff] }
 0x486   :  { %6142 = vmatmul.mubr.msk.f32.gmra.mrb[18].mxu1 %vm356_vm0, %v2515_v34  ;;  %6213 = vmatmul.mubr.msk.f32.gmra.mrb[44].mxu0 %vm356_vm0, %v2585_v2  ;;  %v2587_v31 = vsel %vm2026_vm6, 0.0, %v2579_v48  ;;  %v2563_v14 = vsel %vm1981_vm12, 0.0, %v2562_v23  ;;  %v2564_v49 = vsel %vm1982_vm13, 0.0, %v2561_v4  ;;  %v2565_v57 = vsel %vm1983_vm14, 0.0, %v2560_v63  ;;  %v3087_v48 = vld [vmem:[%s8901_s1 + $0x50] sm:$0xff]  ;;  %v3089_v63 = vld [vmem:[%s8901_s1 + $0x60] sm:$0xff] }
 0x487   :  { %6144 = vmatprep.mubr.msk.f32.mxu1 %vm8931_vm11, %v7155_v24  ;;  %6215 = vmatprep.mubr.msk.f32.mxu0 %vm8931_vm11, %v7155_v24  ;;  %v2566_v26 = vsel %vm1984_vm8, 0.0, %v2559_v58  ;;  %v2567_v52 = vsel %vm1985_vm9, 0.0, %v2558_v29  ;;  %vm8966_vm1 = vcmp.eq.s32.totalorder %v8297_v61, 0  ;;  %vm8967_vm15 = vcmp.eq.s32.totalorder %v8310_v53, 0  ;;  %v3078_v61 = vld [vmem:[%s8901_s1 + $0x8] sm:$0xff]  ;;  %v3077_v53 = vld [vmem:[%s8901_s1] sm:$0xff] }
 0x488   :  { %6625 = vmatpush3.bf16.msra.mxu1 %v6624_v6  ;;  %v2569_v5 = vsel %vm8967_vm15, 0.0, %v2556_v32  ;;  %v6641_v19 = vpack.c.bf16 %v3080_v9, %v3078_v61  ;;  %v6643_v18 = vpack.c.bf16 %v3079_v55, %v3077_v53  ;;  %v6645_v39 = vpack.c.bf16 %v3084_v41, %v3082_v3 }
 0x489   :  { %6626 = vmatprep.subr.bf16.mxu1 %v7153_v43  ;;  %v6647_v62 = vpack.c.bf16 %v3083_v27, %v3081_v0  ;;  %v6649_v35 = vpack.c.bf16 %v3088_v54, %v3086_v56  ;;  %v6651_v23 = vpack.c.bf16 %v3087_v48, %v3085_v15  ;;  %v6653_v4 = vpack.c.bf16 %v3092_v21, %v3090_v16 }
 0x48a   :  { %6145 = vmatmul.mubr.msk.f32.gmra.mrb[20].mxu1 %vm356_vm0, %v2516_v17  ;;  %6216 = vmatmul.mubr.msk.f32.gmra.mrb[46].mxu0 %vm356_vm0, %v2586_v10  ;;  %vm3067_vm12 = vcmask 519168   ;;  %vm3221_vm13 = vcmask 130048   ;;  %vm3339_vm14 = vcmask 1045504   ;;  %vm7157_vm9 = vmmov 1  }
 0x48b   :  { %6147 = vmatprep.mubr.msk.f32.mxu1 %vm8931_vm11, %v7155_v24  ;;  %6218 = vmatprep.mubr.msk.f32.mxu0 %vm8931_vm11, %v7155_v24  ;;  %vm8672_vm8 = vmpackc.low %vm3221_vm13, %vm3221_vm13  ;;  %vm3313_vm3 = vcmask 111616   ;;  %vm8932_vm5 = vcmask 113664  }
 0x48c   :  { %6628 = vmatpush3.bf16.msra.mxu1 %v6627_v45  ;;  %6642 = vmatprep.subr.bf16.mxu0 %v6641_v19 }
 0x48d   :  { %6849 = vmatprep.subr.bf16.mxu1 %v7153_v43  ;;  %6644 = vmatpush1.bf16.msra.mxu0 %v6643_v18 }
 0x48e   :  { %6148 = vmatmul.mubr.msk.f32.gmra.mrb[22].mxu1 %vm356_vm0, %v2517_v44  ;;  %6219 = vmatmul.mubr.msk.f32.gmra.mrb[48].mxu0 %vm356_vm0, %v2587_v31 }
 0x48f   :  { %6150 = vmatprep.mubr.msk.f32.mxu1 %vm8931_vm11, %v7155_v24  ;;  %3176 = vmatprep.mubr.f32.mxu0 %v7155_v24 }
 0x490   :  { %6646 = vmatprep.subr.bf16.mxu0 %v6645_v39 }
 0x491   :  { %6648 = vmatpush1.bf16.msra.mxu0 %v6647_v62 }
 0x492   :  { %6151 = vmatmul.mubr.msk.f32.gmra.mrb[24].mxu1 %vm356_vm0, %v8433_v8  ;;  %6650 = vmatprep.subr.bf16.mxu0 %v6649_v35 }
 0x493   :  { %6153 = vmatprep.mubr.msk.f32.mxu1 %vm8931_vm11, %v7155_v24 }
 0x495   :  { %6652 = vmatpush1.bf16.msra.mxu0 %v6651_v23 }
 0x496   :  { %6154 = vmatmul.mubr.msk.f32.gmra.mrb[26].mxu1 %vm356_vm0, %v8431_v47  ;;  %6654 = vmatprep.subr.bf16.mxu0 %v6653_v4 }
 0x497   :  { %6172 = vmatprep.mubr.msk.f32.mxu1 %vm8931_vm11, %v7155_v24 }
 0x49a   :  { %6173 = vmatmul.mubr.msk.f32.vlgmr.msra.gmra.mrb[14].mxu1 %vm356_vm0, %v2563_v14 }
 0x49b   :  { %6175 = vmatprep.mubr.msk.f32.mxu1 %vm8931_vm11, %v7155_v24  ;;  %6853 = vmatpush3.bf16.msra.mxu1 %v8392_v46  ;;  %v2568_v46 = vsel %vm8966_vm1, 0.0, %v2557_v11 }
 0x49c   :  { %6850 = vmatprep.subr.bf16.mxu1 %v7153_v43 }
 0x49e   :  { %6176 = vmatmul.mubr.msk.f32.gmra.mrb[16].mxu1 %vm356_vm0, %v2564_v49 }
 0x49f   :  { %6178 = vmatprep.mubr.msk.f32.mxu1 %vm8931_vm11, %v7155_v24  ;;  %6854 = vmatpush3.bf16.msra.mxu1 %v8396_v13  ;;  %v2588_v13 = vsel %vm2027_vm7, 0.0, %v8466_v20  ;;  %v6655_v20 = vpack.c.bf16 %v3091_v51, %v3089_v63 }
 0x4a0   :  { %6851 = vmatprep.subr.bf16.mxu1 %v7153_v43 }
 0x4a1   :  { %6656 = vmatpush1.bf16.msra.mxu0 %v6655_v20 }
 0x4a2   :  { %6179 = vmatmul.mubr.msk.f32.gmra.mrb[18].mxu1 %vm356_vm0, %v2565_v57 }
 0x4a3   :  { %6181 = vmatprep.mubr.msk.f32.mxu1 %vm8931_vm11, %v7155_v24  ;;  %6855 = vmatpush3.bf16.msra.mxu1 %v8401_v36  ;;  %v2589_v36 = vsel %vm2028_vm2, 0.0, %v2577_v40 }
 0x4a4   :  { %6852 = vmatprep.subr.bf16.mxu1 %v7153_v43 }
 0x4a6   :  { %6182 = vmatmul.mubr.msk.f32.gmra.mrb[20].mxu1 %vm356_vm0, %v2566_v26 }
 0x4a7   :  { %6184 = vmatprep.mubr.msk.f32.mxu1 %vm8931_vm11, %v7155_v24  ;;  %6856 = vmatpush3.bf16.msra.mxu1 %v8406_v37  ;;  %v2590_v37 = vsel %vm2029_vm10, 0.0, %v2583_v50  ;;  %vm8676_vm10 = vmpackc.low %vm3339_vm14, %vm7157_vm9 }
 0x4aa   :  { %6185 = vmatmul.mubr.msk.f32.gmra.mrb[22].mxu1 %vm356_vm0, %v2567_v52 }
 0x4ab   :  { %6187 = vmatprep.mubr.msk.f32.mxu1 %vm8931_vm11, %v7155_v24 }
 0x4ae   :  { %6188 = vmatmul.mubr.msk.f32.gmra.mrb[24].mxu1 %vm356_vm0, %v2568_v46 }
 0x4af   :  { %6190 = vmatprep.mubr.msk.f32.mxu1 %vm8931_vm11, %v7155_v24 }
 0x4b2   :  { %6191 = vmatmul.mubr.msk.f32.gmra.mrb[26].mxu1 %vm356_vm0, %v2569_v5 }
 0x4b3   :  { %6221 = vmatprep.mubr.msk.f32.mxu1 %vm8931_vm11, %v7155_v24 }
 0x4b6   :  { %6222 = vmatmul.mubr.msk.f32.vlgmr.msra.gmra.mrb[22].mxu1 %vm356_vm0, %v2588_v13 }
 0x4b7   :  { %6224 = vmatprep.mubr.msk.f32.mxu1 %vm8931_vm11, %v7155_v24 }
 0x4ba   :  { %6225 = vmatmul.mubr.msk.f32.gmra.mrb[24].mxu1 %vm356_vm0, %v2589_v36 }
 0x4bb   :  { %6227 = vmatprep.mubr.msk.f32.mxu1 %vm8931_vm11, %v7155_v24 }
 0x4be   :  { %6228 = vmatmul.mubr.msk.f32.gmra.mrb[26].mxu1 %vm356_vm0, %v2590_v37 }
 0x555   :  { %v2920_v60 = vpop.f32.mrb[42].mxu0 }
 0x556   :  { %v6211_v30 = vpop.f32.mrb[43].mxu0 }
 0x559   :  { %v2925_v34 = vpop.f32.mrb[44].mxu0 }
 0x55a   :  { %v6214_v47 = vpop.f32.mrb[45].mxu0 }
 0x55d   :  { %v2930_v17 = vpop.f32.mrb[46].mxu0 }
 0x55e   :  { %v6217_v38 = vpop.f32.mrb[47].mxu0 }
 0x561   :  { %v2935_v44 = vpop.f32.mrb[48].mxu0 }
 0x562   :  { %v6220_v8 = vpop.f32.mrb[49].mxu0 }
 0x56d   :  { %v2799_v6 = vpop.f32.mrb[14].mxu1 }
 0x56e   :  { %v6871_v7 = vadd.f32 %v2920_v60, %v2799_v6  ;;  %v6174_v42 = vpop.f32.mrb[15].mxu1 }
 0x570   :  { %v2961_v58 = vsel %vm356_vm0, %v6871_v7, 0.0 }
 0x571   :  { %v2804_v2 = vpop.f32.mrb[16].mxu1 }
 0x572   :  { %v6872_v22 = vadd.f32 %v2925_v34, %v2804_v2  ;;  %v6177_v59 = vpop.f32.mrb[17].mxu1 }
 0x574   :  { %v2962_v33 = vsel %vm356_vm0, %v6872_v22, 0.0 }
 0x575   :  { %v2963_v29 = vadd.f32 %v2962_v33, %v2961_v58  ;;  %v2809_v11 = vpop.f32.mrb[18].mxu1 }
 0x576   :  { %v6873_v32 = vadd.f32 %v2930_v17, %v2809_v11  ;;  %v6180_v40 = vpop.f32.mrb[19].mxu1 }
 0x578   :  { %v2964_v45 = vsel %vm356_vm0, %v6873_v32, 0.0 }
 0x579   :  { %v2965_v50 = vadd.f32 %v2964_v45, %v2963_v29  ;;  %v2814_v10 = vpop.f32.mrb[20].mxu1 }
 0x57a   :  { %v6874_v31 = vadd.f32 %v2935_v44, %v2814_v10  ;;  %v6183_v14 = vpop.f32.mrb[21].mxu1 }
 0x57b   :  { %v2547_v14 = vld [vmem:[%s8903_s3 + $0x6] ss:$0 sm:$0xff] }
 0x57c   :  { %v2966_v49 = vsel %vm356_vm0, %v6874_v31, 0.0 }
 0x57d   :  { %v2967_v57 = vadd.f32 %v2966_v49, %v2965_v50 }
 0x589   :  { %v2940_v26 = vpop.f32.mrb[22].mxu1 }
 0x58a   :  { %v2968_v52 = vsel %vm356_vm0, %v2940_v26, 0.0  ;;  %v6223_v46 = vpop.f32.mrb[23].mxu1 }
 0x58b   :  { %v2969_v5 = vadd.f32 %v2968_v52, %v2967_v57  ;;  %v2548_v46 = vld [vmem:[%s8903_s3 + $0x7] ss:$0 sm:$0xff] }
 0x58d   :  { %v2945_v13 = vpop.f32.mrb[24].mxu1 }
 0x58e   :  { %v2970_v36 = vsel %vm356_vm0, %v2945_v13, 0.0  ;;  %v6226_v37 = vpop.f32.mrb[25].mxu1 }
 0x58f   :  { %v2971_v60 = vadd.f32 %v2970_v36, %v2969_v5 }
 0x591   :  { %v2950_v30 = vpop.f32.mrb[26].mxu1 }
 0x592   :  { %v2972_v34 = vsel %vm356_vm0, %v2950_v30, 0.0  ;;  %v6229_v47 = vpop.f32.mrb[27].mxu1 }
 0x593   :  { %v2973_v17 = vadd.f32 %v2972_v34, %v2971_v60 }
 0x595   :  { %v2974_v38 = vrot.slane %v2973_v17, 4 }
 0x597   :  { %v2975_v44 = vadd.f32 %v2974_v38, %v2973_v17 }
 0x599   :  { %v2976_v8 = vrot.slane %v2975_v44, 2 }
 0x59b   :  { %v2977_v61 = vadd.f32 %v2976_v8, %v2975_v44 }
 0x59d   :  { %v2978_v9 = vrot.slane %v2977_v61, 1 }
 0x59f   :  { %v2979_v53 = vadd.f32 %v2978_v9, %v2977_v61 }
 0x5a1   :  { %v2980_v19 = vmul.f32 0.017857144, %v2979_v53 }
 0x5a3   :  { %v2981_v55 = vsub.f32 %v6871_v7, %v2980_v19  ;;  %v2982_v3 = vsub.f32 %v6872_v22, %v2980_v19  ;;  %v2983_v41 = vsub.f32 %v6873_v32, %v2980_v19  ;;  %v2984_v18 = vsub.f32 %v6874_v31, %v2980_v19 }
 0x5a4   :  { %v2985_v39 = vsub.f32 %v2940_v26, %v2980_v19  ;;  %v2986_v0 = vsub.f32 %v2945_v13, %v2980_v19  ;;  %v2987_v27 = vsub.f32 %v2950_v30, %v2980_v19 }
 0x5a5   :  { %v2988_v56 = vmul.f32 %v2981_v55, %v2981_v55  ;;  %v2989_v54 = vmul.f32 %v2982_v3, %v2982_v3  ;;  %v2990_v62 = vmul.f32 %v2983_v41, %v2983_v41  ;;  %v2991_v35 = vmul.f32 %v2984_v18, %v2984_v18 }
 0x5a6   :  { %v2992_v21 = vmul.f32 %v2985_v39, %v2985_v39  ;;  %v2993_v63 = vmul.f32 %v2986_v0, %v2986_v0  ;;  %v2994_v7 = vmul.f32 %v2987_v27, %v2987_v27 }
 0x5a7   :  { %v2995_v15 = vsel %vm356_vm0, %v2988_v56, 0.0  ;;  %v2996_v48 = vsel %vm356_vm0, %v2989_v54, 0.0  ;;  %v2998_v23 = vsel %vm356_vm0, %v2990_v62, 0.0  ;;  %v3000_v51 = vsel %vm356_vm0, %v2991_v35, 0.0 }
 0x5a8   :  { %v2997_v16 = vadd.f32 %v2996_v48, %v2995_v15  ;;  %v3002_v42 = vsel %vm356_vm0, %v2992_v21, 0.0  ;;  %v3004_v2 = vsel %vm356_vm0, %v2993_v63, 0.0  ;;  %v3006_v59 = vsel %vm356_vm0, %v2994_v7, 0.0 }
 0x5aa   :  { %v2999_v4 = vadd.f32 %v2998_v23, %v2997_v16 }
 0x5ac   :  { %v3001_v6 = vadd.f32 %v3000_v51, %v2999_v4 }
 0x5ae   :  { %v3003_v20 = vadd.f32 %v3002_v42, %v3001_v6 }
 0x5b0   :  { %v3005_v22 = vadd.f32 %v3004_v2, %v3003_v20 }
 0x5b2   :  { %v3007_v58 = vadd.f32 %v3006_v59, %v3005_v22 }
 0x5b4   :  { %v3008_v33 = vrot.slane %v3007_v58, 4 }
 0x5b6   :  { %v3009_v29 = vadd.f32 %v3008_v33, %v3007_v58 }
 0x5b8   :  { %v3010_v11 = vrot.slane %v3009_v29, 2 }
 0x5ba   :  { %v3011_v32 = vadd.f32 %v3010_v11, %v3009_v29  ;;  %v3098_v29 = vsub.s32 0, %v7202_v1  ;;  %v5377_v11 = vld [vmem:[%s8903_s3 + $0x10] ss:$8 sm:$0x3] }
 0x5bc   :  { %v3012_v40 = vrot.slane %v3011_v32, 1 }
 0x5be   :  { %v3013_v45 = vadd.f32 %v3012_v40, %v3011_v32  ;;  %v3099_v32 = vrot.slane %v5377_v11, %v3098_v29  ;;  %v3102_v40 = vsub.s32 1, %v7202_v1 }
 0x5c0   :  { %v3014_v50 = vmul.f32 0.017857144, %v3013_v45 }
 0x5c2   :  { %v3015_v10 = vadd.f32 1e-05, %v3014_v50 }
 0x5c4   :  { %7088 = vrsqrt.f32 %v3015_v10 }
 0x5ce   :  { %v7089_v31 = vpop.eup %7088 }
 0x5cf   :  { %v3017_v49 = vmul.f32 %v7089_v31, %v2981_v55  ;;  %v3018_v57 = vmul.f32 %v7089_v31, %v2982_v3  ;;  %v3019_v26 = vmul.f32 %v7089_v31, %v2983_v41  ;;  %v3020_v52 = vmul.f32 %v7089_v31, %v2984_v18 }
 0x5d0   :  { %v3021_v5 = vmul.f32 %v7089_v31, %v2985_v39  ;;  %v3022_v13 = vmul.f32 %v7089_v31, %v2986_v0  ;;  %v3023_v36 = vmul.f32 %v7089_v31, %v2987_v27  ;;  %v3103_v31 = vrot.slane %v5377_v11, %v3102_v40  ;;  %v3191_v40 = vld [vmem:[#allocation3 + $0x308] sm:$0xff] }
 0x5d1   :  { %v3024_v37 = vmul.f32 %v3017_v49, %v2547_v14  ;;  %v3025_v60 = vmul.f32 %v3018_v57, %v2547_v14  ;;  %v3026_v30 = vmul.f32 %v3019_v26, %v2547_v14  ;;  %v3027_v34 = vmul.f32 %v3020_v52, %v2547_v14 }
 0x5d2   :  { %v3028_v47 = vmul.f32 %v3021_v5, %v2547_v14  ;;  %v3029_v17 = vmul.f32 %v3022_v13, %v2547_v14  ;;  %v3030_v38 = vmul.f32 %v3023_v36, %v2547_v14 }
 0x5d3   :  { %v3031_v44 = vadd.f32 %v3024_v37, %v2548_v46  ;;  %v3032_v8 = vadd.f32 %v3025_v60, %v2548_v46  ;;  %v3033_v61 = vadd.f32 %v3026_v30, %v2548_v46  ;;  %v3034_v9 = vadd.f32 %v3027_v34, %v2548_v46 }
 0x5d4   :  { %v3035_v53 = vadd.f32 %v3028_v47, %v2548_v46  ;;  %v3036_v19 = vadd.f32 %v3029_v17, %v2548_v46  ;;  %v3037_v55 = vadd.f32 %v3030_v38, %v2548_v46  ;;  %v8972_v17 = vlaneseq }
 0x5d5   :  { %v3038_v3 = vmax.f32 %v3031_v44, 0.0  ;;  %v3039_v41 = vmax.f32 %v3032_v8, 0.0  ;;  %v3040_v18 = vmax.f32 %v3033_v61, 0.0  ;;  %v3041_v39 = vmax.f32 %v3034_v9, 0.0 }
 0x5d6   :  { %v3042_v0 = vmax.f32 %v3035_v53, 0.0  ;;  %v3043_v27 = vmax.f32 %v3036_v19, 0.0  ;;  %v3044_v56 = vmax.f32 %v3037_v55, 0.0  ;;  %v3205_v38 = vand.u32 127, %v8972_v17 }
 0x5d7   :  { %3045 = vst.msk [vmem:[#allocation2] sm:$0xff] %vm356_vm0, %v3038_v3  ;;  %3046 = vst.msk [vmem:[#allocation2 + $0x8] sm:$0xff] %vm356_vm0, %v3039_v41  ;;  %v3199_v61 = vmul.f32 0.14285715, %v7230_v28  ;;  %v3198_v53 = vmul.f32 0.14285715, %v7210_v12 }
 0x5d8   :  { %3047 = vst.msk [vmem:[#allocation2 + $0x10] sm:$0xff] %vm356_vm0, %v3040_v18  ;;  %3048 = vst.msk [vmem:[#allocation2 + $0x18] sm:$0xff] %vm356_vm0, %v3041_v39  ;;  %v3206_v44 = vcvt.s32.f32 %v3205_v38 }
 0x5d9   :  { %3049 = vst.msk [vmem:[#allocation2 + $0x20] sm:$0xff] %vm356_vm0, %v3042_v0  ;;  %3050 = vst.msk [vmem:[#allocation2 + $0x28] sm:$0xff] %vm356_vm0, %v3043_v27  ;;  %v3201_v19 = vfloor.f32 %v3199_v61  ;;  %v3200_v3 = vfloor.f32 %v3198_v53 }
 0x5da   :  { %3051 = vst.msk [vmem:[#allocation2 + $0x30] sm:$0xff] %vm356_vm0, %v3044_v56  ;;  %v3207_v8 = vadd.f32 0.5, %v3206_v44 }
 0x5db   :  { %v8693_v41 = vtrunc.f32 %v3201_v19  ;;  %v8695_v39 = vtrunc.f32 %v3200_v3 }
 0x5dc   :  { %v3208_v9 = vmul.f32 0.14285715, %v3207_v8 }
 0x5dd   :  { %v7030_v0 = vcvt.f32.s32 %v8693_v41  ;;  %v7028_v56 = vcvt.f32.s32 %v8695_v39 }
 0x5de   :  { %v3052_v35 = vld [vmem:[#allocation2] ss:$2 sm:$0xff]  ;;  %v3056_v51 = vld [vmem:[#allocation2 + $0x1] ss:$2 sm:$0xff]  ;;  %v3209_v55 = vfloor.f32 %v3208_v9 }
 0x5df   :  { %v3053_v54 = vld [vmem:[#allocation2 + $0x10] ss:$2 sm:$0xff]  ;;  %v3057_v62 = vld [vmem:[#allocation2 + $0x11] ss:$2 sm:$0xff]  ;;  %v3060_v6 = vmax.f32 %v3052_v35, %v3056_v51 }
 0x5e0   :  { %v3054_v15 = vld [vmem:[#allocation2 + $0x20] ss:$2 sm:$0xff]  ;;  %v3061_v16 = vmax.f32 %v3053_v54, %v3057_v62  ;;  %v3058_v21 = vld [vmem:[#allocation2 + $0x21] ss:$2 sm:$0xff]  ;;  %v7031_v18 = vtrunc.f32 %v3209_v55 }
 0x5e1   :  { %v3055_v48 = vld [vmem:[#allocation2 + $0x30] ss:$2 sm:$0xf]  ;;  %v3059_v23 = vld [vmem:[#allocation2 + $0x31] ss:$2 sm:$0xf]  ;;  %v3062_v4 = vmax.f32 %v3054_v15, %v3058_v21 }
 0x5e2   :  { %v3063_v63 = vmax.f32 %v3055_v48, %v3059_v23  ;;  %3065 = vst.msk [vmem:[#allocation2 + $0x8] sm:$0xff] %vm356_vm0, %v3061_v16  ;;  %3064 = vst.msk [vmem:[#allocation2] sm:$0xff] %vm356_vm0, %v3060_v6  ;;  %v8698_v27 = vcvt.f32.s32 %v7031_v18 }
 0x5e3   :  { %3066 = vst.msk [vmem:[#allocation2 + $0x10] sm:$0xff] %vm356_vm0, %v3062_v4 }
 0x5e4   :  { %3068 = vst.msk [vmem:[#allocation2 + $0x18] sm:$0xf] %vm3067_vm12, %v3063_v63  ;;  %vm8704_vm2 = vcmp.eq.s32.totalorder %v7030_v0, %v8698_v27  ;;  %vm8711_vm4 = vcmp.eq.s32.totalorder %v7028_v56, %v8698_v27 }
 0x5e9   :  { %v3069_v20 = vld [vmem:[#allocation2] ss:$2 sm:$0xff]  ;;  %v3071_v2 = vld [vmem:[#allocation2 + $0x1] ss:$2 sm:$0xff] }
 0x5ea   :  { %v3073_v22 = vadd.f32 %v3071_v2, %v3069_v20 }
 0x5eb   :  { %v3070_v7 = vld [vmem:[#allocation2 + $0x10] ss:$2 sm:$0x3f]  ;;  %v3072_v42 = vld [vmem:[#allocation2 + $0x11] ss:$2 sm:$0x3f] }
 0x5ec   :  { %v3075_v59 = vmul.f32 0.5, %v3073_v22  ;;  %v3074_v58 = vadd.f32 %v3072_v42, %v3070_v7 }
 0x5ee   :  { %5378 = vmatmul.mubr.msk.f32.vlgmr.msra.gmra.mrb[50].mxu0 %vm356_vm0, %v3075_v59  ;;  %v3076_v33 = vmul.f32 0.5, %v3074_v58 }
 0x5ef   :  { %3182 = vmatprep.mubr.f32.mxu0 %v7155_v24 }
 0x5f2   :  { %5379 = vmatmul.mubr.msk.f32.gmra.mrb[52].mxu0 %vm356_vm0, %v3076_v33 }
 0x6c1   :  { %v3178_v45 = vpop.f32.mrb[50].mxu0 }
 0x6c2   :  { %v8657_v50 = vadd.f32 %v3178_v45, %v3099_v32  ;;  %v3180_v10 = vpop.f32.mrb[51].mxu0 }
 0x6c3   :  { %v3181_v26 = vadd.f32 %v3180_v10, %v3103_v31 }
 0x6c4   :  { %6234 = vmatprep.mubr.msk.f32.mxu1 %vm3221_vm13, %v8657_v50 }
 0x6c5   :  { %v3184_v14 = vpop.f32.mrb[52].mxu0 }
 0x6c6   :  { %v8661_v49 = vadd.f32 %v3184_v14, %v3099_v32  ;;  %v3186_v57 = vpop.f32.mrb[53].mxu0  ;;  %v3190_v32 = vld [vmem:[#allocation3 + $0x300] sm:$0xff] }
 0x6c7   :  { %v3187_v52 = vadd.f32 %v3186_v57, %v3103_v31  ;;  %v6669_v45 = vpack.c.bf16 %v3191_v40, %v3190_v32 }
 0x6c8   :  { %v8665_v46 = vpack.i.bf16 %v8661_v49, %v8657_v50 }
 0x6c9   :  { %v6663_v5 = vpack.c.bf16 %v3187_v52, %v3181_v26  ;;  %v8667_v13 = vpack.i.bf16 %v3187_v52, %v3181_v26  ;;  %6670 = vmatprep.subr.bf16.mxu0 %v6669_v45 }
 0x6ca   :  { %7048 = vrot.lane.b32.xlu0 %v8665_v46, %s7156_s23  ;;  %6672 = vmatpush3.bf16.msra.mxu0 %v6669_v45 }
 0x73c   :  { %v7049_v36 = vpop.permute.xlu0 %7048 }
 0x73d   :  { %v7051_v37 = vunpack.i.h.bf16 %v7049_v36  ;;  %v7050_v60 = vunpack.i.l.bf16 %v7049_v36 }
 0x73f   :  { %v6657_v34 = vpack.c.bf16 %v7051_v37, %v7050_v60 }
 0x741   :  { %6659 = vmatprep.subr.msk.bf16.mxu1 %vm8672_vm8, %v6657_v34 }
 0x742   :  { %6662 = vmatpush3.bf16.xpose.msk.msra.mxu1 %vm8672_vm8, %v6657_v34 }
 0x743   :  { %6665 = vmatprep.subr.msk.bf16.mxu1 %vm8676_vm10, %v6663_v5 }
 0x749   :  { %6235 = vmatmul.mubr.msk.f32.vlgmr.msra.gmra.mrb[28].mxu1 %vm3221_vm13, %v8661_v49 }
 0x74a   :  { %6668 = vmatpush3.bf16.msk.msra.mxu1 %vm8676_vm10, %v6663_v5 }
 0x81c   :  { %v6236_v54 = vpop.f32.mrb[28].mxu1 }
 0x81d   :  { %v3306_v28 = vmul.f32 0.25, %v6236_v54  ;;  %v3296_v62 = vpop.f32.mrb[29].mxu1 }
 0x81e   :  { %v3305_v15 = vmul.f32 0.25, %v3296_v62 }
 0x81f   :  { %v3308_v48 = vsel %vm8704_vm2, %v3306_v28, -1e+30 }
 0x820   :  { %v3314_v16 = vsel %vm3313_vm3, %v3308_v48, -inf  ;;  %v3307_v21 = vsel %vm8711_vm4, %v3305_v15, -1e+30 }
 0x821   :  { %3315 = vmax.xlane.f32.xlu1 %v3314_v16  ;;  %v3310_v23 = vsel %vm8932_vm5, %v3307_v21, -inf }
 0x822   :  { %3311 = vmax.xlane.f32.xlu0 %v3310_v23 }
 0x832   :  { %7053 = vrot.lane.b32.xlu1 %v8665_v46, %s7158_s24 }
 0x836   :  { %3501 = vrot.lane.b32.xlu1 %v8657_v50, %s7159_s25 }
 0x838   :  { %7058 = vrot.lane.b32.xlu0 %v8665_v46, %s7160_s26 }
 0x8ae   :  { %v3316_v4 = vpop.xlane.xlu1 %3315 }
 0x8af   :  { %v3318_v63 = vsub.f32 %v3308_v48, %v3316_v4  ;;  %v3312_v51 = vpop.xlane.xlu0 %3311 }
 0x8b0   :  { %v3317_v6 = vsub.f32 %v3307_v21, %v3312_v51 }
 0x8b1   :  { %v3321_v7 = vmul.f32 1.442695, %v3318_v63 }
 0x8b2   :  { %v3319_v42 = vmul.f32 1.442695, %v3317_v6  ;;  %v7054_v20 = vpop.permute.xlu1 %7053 }
 0x8b3   :  { %7090 = vpow2.f32 %v3321_v7  ;;  %v7056_v2 = vunpack.i.h.bf16 %v7054_v20  ;;  %v7055_v22 = vunpack.i.l.bf16 %v7054_v20  ;;  %v7059_v57 = vpop.permute.xlu0 %7058 }
 0x8b4   :  { %7092 = vpow2.f32 %v3319_v42  ;;  %v7061_v5 = vunpack.i.h.bf16 %v7059_v57  ;;  %v7060_v36 = vunpack.i.l.bf16 %v7059_v57 }
 0x8b5   :  { %v6673_v59 = vpack.c.bf16 %v7056_v2, %v7055_v22 }
 0x8b6   :  { %v3502_v10 = vpop.permute.xlu1 %3501  ;;  %v6689_v34 = vpack.c.bf16 %v7061_v5, %v7060_v36 }
 0x8b7   :  { %6675 = vmatprep.subr.msk.bf16.mxu1 %vm8672_vm8, %v6673_v59 }
 0x8bd   :  { %v7091_v58 = vpop.eup %7090 }
 0x8be   :  { %v3326_v33 = vsel %vm3313_vm3, %v7091_v58, 0.0  ;;  %v7093_v29 = vpop.eup %7092 }
 0x8bf   :  { %3327 = vadd.xlane.f32.xlu1 %v3326_v33  ;;  %v3323_v11 = vsel %vm8932_vm5, %v7093_v29, 0.0 }
 0x8c3   :  { %3324 = vadd.xlane.f32.xlu1 %v3323_v11 }
 0x8d4   :  { %3503 = vrot.lane.b32.xlu1 %v8661_v49, %s7159_s25 }
 0x8d8   :  { %3790 = vrot.lane.b32.xlu1 %v8657_v50, %s7161_s27 }
 0x8dc   :  { %3792 = vrot.lane.b32.xlu1 %v8661_v49, %s7161_s27 }
 0x94c   :  { %v3328_v31 = vpop.xlane.xlu1 %3327 }
 0x94d   :  { %7094 = vrcp.f32 %v3328_v31 }
 0x950   :  { %v3325_v14 = vpop.xlane.xlu1 %3324 }
 0x951   :  { %7096 = vrcp.f32 %v3325_v14 }
 0x954   :  { %v3504_v17 = vpop.permute.xlu1 %3503 }
 0x957   :  { %v7095_v26 = vpop.eup %7094 }
 0x958   :  { %v3332_v60 = vmul.f32 %v7095_v26, %v7091_v58  ;;  %v3791_v38 = vpop.permute.xlu1 %3790 }
 0x95b   :  { %v7097_v52 = vpop.eup %7096 }
 0x95c   :  { %v3331_v37 = vmul.f32 %v7097_v52, %v7093_v29  ;;  %v3793_v44 = vpop.permute.xlu1 %3792 }
 0x95e   :  { %6241 = vmatprep.mubr.msk.f32.mxu1 %vm8932_vm5, %v3331_v37 }
 0x95f   :  { %6242 = vmatmul.mubr.msk.f32.vlgmr.msra.gmra.mrb[30].mxu1 %vm8932_vm5, %v3332_v60 }
 0x960   :  { %6678 = vmatpush3.bf16.xpose.msk.msra.mxu1 %vm8672_vm8, %v6673_v59  ;;  %6255 = vmatprep.mubr.msk.f32.mxu1 %vm3221_vm13, %v3502_v10 }
 0x961   :  { %6691 = vmatprep.subr.msk.bf16.mxu1 %vm8672_vm8, %v6689_v34 }
 0x967   :  { %6256 = vmatmul.mubr.msk.f32.vlgmr.msra.gmra.mrb[32].mxu1 %vm3221_vm13, %v3504_v17 }
 0x968   :  { %6694 = vmatpush3.bf16.xpose.msk.msra.mxu1 %vm8672_vm8, %v6689_v34  ;;  %6276 = vmatprep.mubr.msk.f32.mxu1 %vm3221_vm13, %v3791_v38 }
 0x96f   :  { %6277 = vmatmul.mubr.msk.f32.vlgmr.msra.gmra.mrb[34].mxu1 %vm3221_vm13, %v3793_v44 }
 0xa32   :  { %v6243_v8 = vpop.f32.mrb[30].mxu1 }
 0xa33   :  { %v3409_v61 = vpop.f32.mrb[31].mxu1 }
 0xa34   :  { %6248 = vmatprep.mubr.msk.f32.mxu0 %vm3221_vm13, %v3409_v61 }
 0xa35   :  { %6249 = vmatmul.mubr.msk.f32.vlgmr.msra.gmra.mrb[54].mxu0 %vm3221_vm13, %v6243_v8 }
 0xa3a   :  { %v6257_v9 = vpop.f32.mrb[32].mxu1 }
 0xa3b   :  { %v3593_v53 = vmul.f32 0.25, %v6257_v9  ;;  %v3583_v19 = vpop.f32.mrb[33].mxu1 }
 0xa3c   :  { %v3592_v55 = vmul.f32 0.25, %v3583_v19  ;;  %v3192_v19 = vld [vmem:[#allocation3 + $0x310] sm:$0xff] }
 0xa3d   :  { %v3595_v3 = vsel %vm8704_vm2, %v3593_v53, -1e+30 }
 0xa3e   :  { %v3599_v18 = vsel %vm3313_vm3, %v3595_v3, -inf  ;;  %v3594_v54 = vsel %vm8711_vm4, %v3592_v55, -1e+30  ;;  %v3193_v55 = vld [vmem:[#allocation3 + $0x318] sm:$0xff] }
 0xa3f   :  { %3600 = vmax.xlane.f32.xlu0 %v3599_v18  ;;  %v3596_v28 = vsel %vm8932_vm5, %v3594_v54, -inf }
 0xa40   :  { %3597 = vmax.xlane.f32.xlu1 %v3596_v28 }
 0xa42   :  { %v6278_v62 = vpop.f32.mrb[34].mxu1 }
 0xa43   :  { %v3872_v15 = vpop.f32.mrb[35].mxu1  ;;  %v3882_v48 = vmul.f32 0.25, %v6278_v62 }
 0xa44   :  { %v3881_v45 = vmul.f32 0.25, %v3872_v15 }
 0xa45   :  { %v3884_v16 = vsel %vm8704_vm2, %v3882_v48, -1e+30 }
 0xa46   :  { %v3888_v21 = vsel %vm3313_vm3, %v3884_v16, -inf  ;;  %v3883_v10 = vsel %vm8711_vm4, %v3881_v45, -1e+30 }
 0xa47   :  { %v3885_v31 = vsel %vm8932_vm5, %v3883_v10, -inf }
 0xa55   :  { %7063 = vrot.lane.b32.xlu0 %v8667_v13, %s7159_s25 }
 0xa59   :  { %4080 = vrot.lane.b32.xlu0 %v8661_v49, %s7162_s28 }
 0xa78   :  { %3889 = vmax.xlane.f32.xlu0 %v3888_v21 }
 0xacc   :  { %v3601_v23 = vpop.xlane.xlu0 %3600 }
 0xacd   :  { %v3603_v4 = vsub.f32 %v3595_v3, %v3601_v23  ;;  %v3598_v63 = vpop.xlane.xlu1 %3597  ;;  %v6685_v3 = vpack.c.bf16 %v3193_v55, %v3192_v19  ;;  %v4399_v55 = vld [vmem:[#allocation3 + $0x398] sm:$0xff] }
 0xace   :  { %v3602_v51 = vsub.f32 %v3594_v54, %v3598_v63 }
 0xacf   :  { %v3606_v6 = vmul.f32 1.442695, %v3603_v4 }
 0xad0   :  { %v3604_v7 = vmul.f32 1.442695, %v3602_v51  ;;  %v7064_v42 = vpop.permute.xlu0 %7063 }
 0xad1   :  { %v7066_v20 = vunpack.i.h.bf16 %v7064_v42  ;;  %v7065_v2 = vunpack.i.l.bf16 %v7064_v42 }
 0xad2   :  { %7098 = vpow2.f32 %v3604_v7 }
 0xad3   :  { %v6679_v22 = vpack.c.bf16 %v7066_v20, %v7065_v2  ;;  %7100 = vpow2.f32 %v3606_v6 }
 0xad4   :  { %v4081_v29 = vpop.permute.xlu0 %4080 }
 0xad5   :  { %6681 = vmatprep.subr.msk.bf16.mxu0 %vm8676_vm10, %v6679_v22 }
 0xad6   :  { %6684 = vmatpush3.bf16.msk.msra.mxu0 %vm8676_vm10, %v6679_v22 }
 0xad7   :  { %6686 = vmatprep.subr.bf16.mxu0 %v6685_v3 }
 0xadc   :  { %v7099_v49 = vpop.eup %7098 }
 0xadd   :  { %v3608_v59 = vsel %vm8932_vm5, %v7099_v49, 0.0  ;;  %v7101_v58 = vpop.eup %7100 }
 0xade   :  { %3609 = vadd.xlane.f32.xlu1 %v3608_v59  ;;  %v3611_v33 = vsel %vm3313_vm3, %v7101_v58, 0.0  ;;  %v3194_v59 = vld [vmem:[#allocation3 + $0x320] sm:$0xff] }
 0xae2   :  { %3612 = vadd.xlane.f32.xlu1 %v3611_v33 }
 0xaf3   :  { %7068 = vrot.lane.b32.xlu1 %v8665_v46, %s7163_s29 }
 0xaf7   :  { %4078 = vrot.lane.b32.xlu1 %v8657_v50, %s7162_s28 }
 0xb05   :  { %v3890_v11 = vpop.xlane.xlu0 %3889 }
 0xb06   :  { %v3892_v32 = vsub.f32 %v3884_v16, %v3890_v11 }
 0xb08   :  { %v3895_v40 = vmul.f32 1.442695, %v3892_v32 }
 0xb0a   :  { %7102 = vpow2.f32 %v3895_v40 }
 0xb14   :  { %v7103_v14 = vpop.eup %7102 }
 0xb15   :  { %v3900_v57 = vsel %vm3313_vm3, %v7103_v14, 0.0 }
 0xb1b   :  { %3886 = vmax.xlane.f32.xlu1 %v3885_v31 }
 0xb1f   :  { %3901 = vadd.xlane.f32.xlu1 %v3900_v57 }
 0xb6b   :  { %v3610_v46 = vpop.xlane.xlu1 %3609 }
 0xb6c   :  { %7104 = vrcp.f32 %v3610_v46 }
 0xb6f   :  { %v3613_v26 = vpop.xlane.xlu1 %3612 }
 0xb70   :  { %7106 = vrcp.f32 %v3613_v26 }
 0xb73   :  { %v7069_v50 = vpop.permute.xlu1 %7068 }
 0xb74   :  { %v7071_v52 = vunpack.i.h.bf16 %v7069_v50  ;;  %v7070_v5 = vunpack.i.l.bf16 %v7069_v50 }
 0xb76   :  { %v7105_v36 = vpop.eup %7104  ;;  %v6705_v37 = vpack.c.bf16 %v7071_v52, %v7070_v5  ;;  %v3196_v5 = vld [vmem:[#allocation3 + $0x330] sm:$0xff] }
 0xb77   :  { %v4079_v60 = vpop.permute.xlu1 %4078  ;;  %v3616_v34 = vmul.f32 %v7105_v36, %v7099_v49  ;;  %v3197_v36 = vld [vmem:[#allocation3 + $0x338] sm:$0xff] }
 0xb78   :  { %6707 = vmatprep.subr.msk.bf16.mxu1 %vm8672_vm8, %v6705_v37  ;;  %6297 = vmatprep.mubr.msk.f32.mxu1 %vm3221_vm13, %v4079_v60 }
 0xb79   :  { %6262 = vmatprep.mubr.msk.f32.mxu0 %vm8932_vm5, %v3616_v34  ;;  %6710 = vmatpush3.bf16.xpose.msk.msra.mxu1 %vm8672_vm8, %v6705_v37 }
 0xb7a   :  { %v7107_v17 = vpop.eup %7106 }
 0xb7b   :  { %v3617_v38 = vmul.f32 %v7107_v17, %v7101_v58  ;;  %v3195_v58 = vld [vmem:[#allocation3 + $0x328] sm:$0xff]  ;;  %v6717_v17 = vpack.c.bf16 %v3197_v36, %v3196_v5  ;;  %v4575_v5 = vld [vmem:[#allocation3 + $0x3c0] sm:$0xff] }
 0xb7c   :  { %v6701_v33 = vpack.c.bf16 %v3195_v58, %v3194_v59  ;;  %v4576_v36 = vld [vmem:[#allocation3 + $0x3c8] sm:$0xff] }
 0xb7d   :  { %6263 = vmatmul.mubr.msk.f32.vlgmr.msra.gmra.mrb[56].mxu0 %vm8932_vm5, %v3617_v38 }
 0xb7e   :  { %6688 = vmatpush3.bf16.msra.mxu0 %v6685_v3 }
 0xb80   :  { %6298 = vmatmul.mubr.msk.f32.vlgmr.msra.gmra.mrb[36].mxu1 %vm3221_vm13, %v4081_v29 }
 0xba8   :  { %v3887_v44 = vpop.xlane.xlu1 %3886 }
 0xba9   :  { %v3891_v8 = vsub.f32 %v3883_v10, %v3887_v44 }
 0xbab   :  { %v3893_v61 = vmul.f32 1.442695, %v3891_v8 }
 0xbac   :  { %v3902_v30 = vpop.xlane.xlu1 %3901 }
 0xbad   :  { %7108 = vpow2.f32 %v3893_v61  ;;  %v4396_v61 = vld [vmem:[#allocation3 + $0x380] sm:$0xff] }
 0xbb7   :  { %v7109_v9 = vpop.eup %7108 }
 0xbb8   :  { %v3897_v53 = vsel %vm8932_vm5, %v7109_v9, 0.0 }
 0xbb9   :  { %3898 = vadd.xlane.f32.xlu0 %v3897_v53  ;;  %v4398_v53 = vld [vmem:[#allocation3 + $0x390] sm:$0xff] }
 0xbba   :  { %v6725_v3 = vpack.c.bf16 %v4399_v55, %v4398_v53  ;;  %v4675_v53 = vld [vmem:[#allocation3 + $0x400] sm:$0xff] }
 0xbcf   :  { %7073 = vrot.lane.b32.xlu0 %v8667_v13, %s7161_s27 }
 0xc46   :  { %v3899_v18 = vpop.xlane.xlu0 %3898 }
 0xc47   :  { %7110 = vrcp.f32 %v3899_v18  ;;  %v4401_v18 = vld [vmem:[#allocation3 + $0x3a8] sm:$0xff] }
 0xc48   :  { %7112 = vrcp.f32 %v3902_v30  ;;  %v4400_v30 = vld [vmem:[#allocation3 + $0x3a0] sm:$0xff] }
 0xc4a   :  { %v7074_v54 = vpop.permute.xlu0 %7073 }
 0xc4b   :  { %v7076_v28 = vunpack.i.h.bf16 %v7074_v54  ;;  %v7075_v62 = vunpack.i.l.bf16 %v7074_v54  ;;  %v6729_v54 = vpack.c.bf16 %v4401_v18, %v4400_v30  ;;  %v4678_v30 = vld [vmem:[#allocation3 + $0x418] sm:$0xff] }
 0xc4d   :  { %v6695_v15 = vpack.c.bf16 %v7076_v28, %v7075_v62 }
 0xc4f   :  { %6697 = vmatprep.subr.msk.bf16.mxu0 %vm8676_vm10, %v6695_v15 }
 0xc50   :  { %v6264_v48 = vpop.f32.mrb[56].mxu0 }
 0xc51   :  { %v7111_v16 = vpop.eup %7110  ;;  %v3698_v21 = vpop.f32.mrb[57].mxu0 }
 0xc52   :  { %v7113_v23 = vpop.eup %7112  ;;  %6269 = vmatprep.mubr.msk.f32.mxu0 %vm3221_vm13, %v3698_v21  ;;  %v3905_v4 = vmul.f32 %v7111_v16, %v7109_v9  ;;  %v4397_v9 = vld [vmem:[#allocation3 + $0x388] sm:$0xff]  ;;  %v4379_v21 = vld [vmem:[#allocation3 + $0x340] sm:$0xff] }
 0xc53   :  { %6270 = vmatmul.mubr.msk.f32.vlgmr.msra.gmra.mrb[54].mxu0 %vm3221_vm13, %v6264_v48  ;;  %v6299_v63 = vpop.f32.mrb[36].mxu1  ;;  %v3906_v6 = vmul.f32 %v7113_v23, %v7103_v14  ;;  %v6721_v19 = vpack.c.bf16 %v4397_v9, %v4396_v61  ;;  %v4403_v48 = vld [vmem:[#allocation3 + $0x3b8] sm:$0xff]  ;;  %v4380_v23 = vld [vmem:[#allocation3 + $0x348] sm:$0xff] }
 0xc54   :  { %6700 = vmatpush3.bf16.msk.msra.mxu0 %vm8676_vm10, %v6695_v15  ;;  %6283 = vmatprep.mubr.msk.f32.mxu0 %vm8932_vm5, %v3905_v4  ;;  %v4160_v51 = vpop.f32.mrb[37].mxu1  ;;  %v4170_v7 = vmul.f32 0.25, %v6299_v63  ;;  %v4402_v15 = vld [vmem:[#allocation3 + $0x3b0] sm:$0xff]  ;;  %v6737_v4 = vpack.c.bf16 %v4380_v23, %v4379_v21  ;;  %v4366_v63 = vmul.u32 7, %v7028_v56  ;;  %v4582_v61 = vld [vmem:[#allocation3 + $0x3f8] sm:$0xff]  ;;  %v4775_v21 = vld [vmem:[#allocation3 + $0x440] sm:$0xff] }
 0xc55   :  { %v4169_v42 = vmul.f32 0.25, %v4160_v51  ;;  %6702 = vmatprep.subr.bf16.mxu0 %v6701_v33  ;;  %6722 = vmatprep.subr.bf16.mxu1 %v6721_v19  ;;  %v6733_v16 = vpack.c.bf16 %v4403_v48, %v4402_v15  ;;  %v4367_v51 = vmul.u32 7, %v7030_v0  ;;  %v4681_v15 = vld [vmem:[#allocation3 + $0x430] sm:$0xff]  ;;  %v4682_v48 = vld [vmem:[#allocation3 + $0x438] sm:$0xff]  ;;  %v4776_v23 = vld [vmem:[#allocation3 + $0x448] sm:$0xff] }
 0xc56   :  { %v4172_v22 = vsel %vm8704_vm2, %v4170_v7, -1e+30  ;;  %6724 = vmatpush3.bf16.msra.mxu1 %v6721_v19  ;;  %v4676_v19 = vld [vmem:[#allocation3 + $0x408] sm:$0xff] }
 0xc57   :  { %6284 = vmatmul.mubr.msk.f32.vlgmr.msra.gmra.mrb[58].mxu0 %vm8932_vm5, %v3906_v6  ;;  %v4171_v20 = vsel %vm8711_vm4, %v4169_v42, -1e+30  ;;  %v4176_v49 = vsel %vm3313_vm3, %v4172_v22, -inf  ;;  %6726 = vmatprep.subr.bf16.mxu1 %v6725_v3  ;;  %v4368_v6 = vsub.s32 %v7202_v1, %v4366_v63  ;;  %v4369_v7 = vsub.s32 %v8962_v25, %v4367_v51  ;;  %v4381_v42 = vld [vmem:[#allocation3 + $0x350] sm:$0xff]  ;;  %v4778_v51 = vld [vmem:[#allocation3 + $0x458] sm:$0xff] }
 0xc58   :  { %v4173_v2 = vsel %vm8932_vm5, %v4171_v20, -inf  ;;  %6704 = vmatpush3.bf16.msra.mxu0 %v6701_v33  ;;  %v6769_v55 = vpack.c.bf16 %v4676_v19, %v4675_v53  ;;  %v4777_v63 = vld [vmem:[#allocation3 + $0x450] sm:$0xff]  ;;  %v5154_v53 = vld [vmem:[#allocation3 + $0x538] sm:$0xff] }
 0xc59   :  { %4174 = vmax.xlane.f32.xlu1 %v4173_v2  ;;  %v3213_v2 = vld [vmem:[%s8903_s3 + $0x11] ss:$0 sm:$0xff]  ;;  %vm4387_vm6 = vcmp.eq.s32.totalorder %v4368_v6, 1  ;;  %vm4388_vm7 = vcmp.eq.s32.totalorder %v4369_v7, 1  ;;  %vm4370_vm1 = vcmp.eq.s32.totalorder %v4368_v6, 0  ;;  %vm4371_vm15 = vcmp.eq.s32.totalorder %v4369_v7, 0 }
 0xc5a   :  { %6728 = vmatpush3.bf16.msra.mxu1 %v6725_v3  ;;  %vm4566_vm12 = vcmp.eq.s32.totalorder %v4368_v6, 2  ;;  %vm4667_vm14 = vcmp.eq.s32.totalorder %v4369_v7, 3  ;;  %vm4767_vm8 = vcmp.eq.s32.totalorder %v4369_v7, 4  ;;  %vm4666_vm9 = vcmp.eq.s32.totalorder %v4368_v6, 3  ;;  %v4677_v3 = vld [vmem:[#allocation3 + $0x410] sm:$0xff] }
 0xc5b   :  { %6730 = vmatprep.subr.bf16.mxu1 %v6729_v54  ;;  %vm4766_vm2 = vcmp.eq.s32.totalorder %v4368_v6, 4  ;;  %vm4867_vm4 = vcmp.eq.s32.totalorder %v4369_v7, 5  ;;  %v6773_v18 = vpack.c.bf16 %v4678_v30, %v4677_v3 }
 0xc5d   :  { %4177 = vmax.xlane.f32.xlu1 %v4176_v49 }
 0xc5e   :  { %6732 = vmatpush3.bf16.msra.mxu1 %v6729_v54  ;;  %v4679_v54 = vld [vmem:[#allocation3 + $0x420] sm:$0xff] }
 0xc5f   :  { %6734 = vmatprep.subr.bf16.mxu1 %v6733_v16 }
 0xc62   :  { %6736 = vmatpush3.bf16.msra.mxu1 %v6733_v16  ;;  %v6781_v16 = vpack.c.bf16 %v4682_v48, %v4681_v15  ;;  %v5230_v15 = vld [vmem:[%s8903_s3 + $0x14] ss:$0 sm:$0xff] }
 0xc63   :  { %6738 = vmatprep.subr.bf16.mxu1 %v6737_v4 }
 0xce6   :  { %v4175_v29 = vpop.xlane.xlu1 %4174 }
 0xce7   :  { %v4179_v11 = vsub.f32 %v4171_v20, %v4175_v29  ;;  %v4382_v20 = vld [vmem:[#allocation3 + $0x358] sm:$0xff] }
 0xce9   :  { %v4181_v35 = vmul.f32 1.442695, %v4179_v11 }
 0xcea   :  { %v4178_v32 = vpop.xlane.xlu1 %4177 }
 0xceb   :  { %v4180_v40 = vsub.f32 %v4172_v22, %v4178_v32  ;;  %v6741_v22 = vpack.c.bf16 %v4382_v20, %v4381_v42  ;;  %v4780_v42 = vld [vmem:[#allocation3 + $0x468] sm:$0xff] }
 0xced   :  { %v4183_v45 = vmul.f32 1.442695, %v4180_v40  ;;  %v4383_v40 = vld [vmem:[#allocation3 + $0x360] sm:$0xff] }
 0xcef   :  { %7114 = vpow2.f32 %v4183_v45 }
 0xcf0   :  { %7116 = vpow2.f32 %v4181_v35  ;;  %v4384_v35 = vld [vmem:[#allocation3 + $0x368] sm:$0xff] }
 0xcf9   :  { %v7115_v10 = vpop.eup %7114 }
 0xcfa   :  { %v4188_v12 = vsel %vm3313_vm3, %v7115_v10, 0.0  ;;  %v7117_v31 = vpop.eup %7116  ;;  %vm4866_vm3 = vcmp.eq.s32.totalorder %v4368_v6, 5 }
 0xcfb   :  { %4189 = vadd.xlane.f32.xlu1 %v4188_v12  ;;  %v4185_v14 = vsel %vm8932_vm5, %v7117_v31, 0.0 }
 0xcff   :  { %4186 = vadd.xlane.f32.xlu1 %v4185_v14 }
 0xd10   :  { %7078 = vrot.lane.b32.xlu1 %v8667_v13, %s7162_s28 }
 0xd2a   :  { %v6285_v57 = vpop.f32.mrb[58].mxu0 }
 0xd2b   :  { %v3986_v46 = vpop.f32.mrb[59].mxu0 }
 0xd2c   :  { %6290 = vmatprep.mubr.msk.f32.mxu0 %vm3221_vm13, %v3986_v46  ;;  %v6745_v46 = vpack.c.bf16 %v4384_v35, %v4383_v40  ;;  %v4975_v35 = vld [vmem:[#allocation3 + $0x4c0] sm:$0xff] }
 0xd2d   :  { %6291 = vmatmul.mubr.msk.f32.vlgmr.msra.gmra.mrb[54].mxu0 %vm3221_vm13, %v6285_v57 }
 0xd88   :  { %v4190_v26 = vpop.xlane.xlu1 %4189 }
 0xd89   :  { %7118 = vrcp.f32 %v4190_v26  ;;  %v4385_v26 = vld [vmem:[#allocation3 + $0x370] sm:$0xff] }
 0xd8c   :  { %v4187_v50 = vpop.xlane.xlu1 %4186 }
 0xd8d   :  { %7120 = vrcp.f32 %v4187_v50  ;;  %v4386_v50 = vld [vmem:[#allocation3 + $0x378] sm:$0xff] }
 0xd90   :  { %v7079_v52 = vpop.permute.xlu1 %7078 }
 0xd91   :  { %v7081_v37 = vunpack.i.h.bf16 %v7079_v52  ;;  %v7080_v60 = vunpack.i.l.bf16 %v7079_v52  ;;  %v6749_v52 = vpack.c.bf16 %v4386_v50, %v4385_v26  ;;  %v4977_v26 = vld [vmem:[#allocation3 + $0x4d0] sm:$0xff]  ;;  %v4978_v50 = vld [vmem:[#allocation3 + $0x4d8] sm:$0xff] }
 0xd93   :  { %v6711_v34 = vpack.c.bf16 %v7081_v37, %v7080_v60  ;;  %v7119_v13 = vpop.eup %7118  ;;  %v6753_v37 = vpack.c.bf16 %v4576_v36, %v4575_v5  ;;  %v4577_v60 = vld [vmem:[#allocation3 + $0x3d0] sm:$0xff]  ;;  %v4980_v5 = vld [vmem:[#allocation3 + $0x4e8] sm:$0xff] }
 0xd94   :  { %v4194_v8 = vmul.f32 %v7119_v13, %v7115_v10  ;;  %v4579_v13 = vld [vmem:[#allocation3 + $0x3e0] sm:$0xff]  ;;  %v4981_v36 = vld [vmem:[#allocation3 + $0x4f0] sm:$0xff] }
 0xd95   :  { %6713 = vmatprep.subr.msk.bf16.mxu0 %vm8676_vm10, %v6711_v34 }
 0xd96   :  { %6716 = vmatpush3.bf16.msk.msra.mxu0 %vm8676_vm10, %v6711_v34  ;;  %v4578_v34 = vld [vmem:[#allocation3 + $0x3d8] sm:$0xff] }
 0xd97   :  { %v7121_v38 = vpop.eup %7120  ;;  %6718 = vmatprep.subr.bf16.mxu0 %v6717_v17 }
 0xd98   :  { %v4193_v44 = vmul.f32 %v7121_v38, %v7117_v31  ;;  %v4580_v38 = vld [vmem:[#allocation3 + $0x3e8] sm:$0xff] }
 0xd9a   :  { %6304 = vmatprep.mubr.msk.f32.mxu0 %vm8932_vm5, %v4193_v44  ;;  %v6761_v44 = vpack.c.bf16 %v4580_v38, %v4579_v13 }
 0xd9b   :  { %6305 = vmatmul.mubr.msk.f32.vlgmr.msra.gmra.mrb[60].mxu0 %vm8932_vm5, %v4194_v8  ;;  %vm4967_vm5 = vcmp.eq.s32.totalorder %v4369_v7, 6  ;;  %v4581_v8 = vld [vmem:[#allocation3 + $0x3f0] sm:$0xff] }
 0xd9c   :  { %6720 = vmatpush3.bf16.msra.mxu0 %v6717_v17  ;;  %v6757_v17 = vpack.c.bf16 %v4578_v34, %v4577_v60  ;;  %v6765_v9 = vpack.c.bf16 %v4582_v61, %v4581_v8  ;;  %v5149_v8 = vld [vmem:[#allocation3 + $0x510] sm:$0xff]  ;;  %v5150_v61 = vld [vmem:[#allocation3 + $0x518] sm:$0xff] }
 0xd9d   :  { %6833 = vmatprep.subr.bf16.mxu0 %v7153_v43 }
 0xe6e   :  { %v6306_v28 = vpop.f32.mrb[60].mxu0 }
 0xe6f   :  { %v4274_v62 = vpop.f32.mrb[61].mxu0 }
 0xe70   :  { %6311 = vmatprep.mubr.msk.f32.mxu0 %vm3221_vm13, %v4274_v62 }
 0xe71   :  { %6312 = vmatmul.mubr.msk.f32.vlgmr.msra.gmra.mrb[54].mxu0 %vm3221_vm13, %v6306_v28  ;;  %vm4567_vm13 = vcmp.eq.s32.totalorder %v4369_v7, 2  ;;  %v4680_v28 = vld [vmem:[#allocation3 + $0x428] sm:$0xff]  ;;  %v4779_v7 = vld [vmem:[#allocation3 + $0x460] sm:$0xff] }
 0xe72   :  { %6451 = vmatprep.mubr.msk.f32.mxu0 %vm8931_vm11, %v7155_v24  ;;  %vm4966_vm11 = vcmp.eq.s32.totalorder %v4368_v6, 6  ;;  %v6777_v62 = vpack.c.bf16 %v4680_v28, %v4679_v54  ;;  %v6789_v6 = vpack.c.bf16 %v4778_v51, %v4777_v63  ;;  %v6793_v20 = vpack.c.bf16 %v4780_v42, %v4779_v7  ;;  %v5155_v54 = vld [vmem:[%s8903_s3 + $0x13] ss:$0 sm:$0xff] }
 0xf44   :  { %v6313_v39 = vpop.f32.mrb[54].mxu0 }
 0xf45   :  { %v6875_v41 = vadd.f32 %v6313_v39, %v3213_v2  ;;  %v4355_v0 = vpop.f32.mrb[55].mxu0 }
 0xf46   :  { %v6876_v25 = vadd.f32 %v4355_v0, %v3213_v2  ;;  %v4781_v2 = vld [vmem:[#allocation3 + $0x470] sm:$0xff]  ;;  %v4876_v0 = vld [vmem:[#allocation3 + $0x488] sm:$0xff] }
 0xf47   :  { %v4394_v56 = vsel %vm4388_vm7, %v6875_v41, 0.0  ;;  %v4377_v49 = vsel %vm4371_vm15, %v6875_v41, 0.0  ;;  %v4573_v59 = vsel %vm4567_vm13, %v6875_v41, 0.0  ;;  %v8828_v58 = vsel %vm4667_vm14, %v6875_v41, 0.0 }
 0xf48   :  { %v4393_v33 = vsel %vm4387_vm6, %v6876_v25, 0.0  ;;  %v4376_v29 = vsel %vm4370_vm1, %v6876_v25, 0.0  ;;  %v4572_v11 = vsel %vm4566_vm12, %v6876_v25, 0.0  ;;  %v4672_v32 = vsel %vm4666_vm9, %v6876_v25, 0.0 }
 0xf49   :  { %6330 = vmatprep.mubr.msk.f32.mxu1 %vm356_vm0, %v4393_v33  ;;  %v8835_v45 = vsel %vm4766_vm2, %v6876_v25, 0.0  ;;  %v8838_v10 = vsel %vm4767_vm8, %v6875_v41, 0.0  ;;  %v8841_v12 = vsel %vm4866_vm3, %v6876_v25, 0.0  ;;  %v8844_v31 = vsel %vm4867_vm4, %v6875_v41, 0.0  ;;  %v4880_v33 = vld [vmem:[#allocation3 + $0x4a8] sm:$0xff] }
 0xf4a   :  { %6331 = vmatmul.mubr.msk.f32.vlgmr.msra.gmra.mrb[38].mxu1 %vm356_vm0, %v4394_v56  ;;  %v8848_v14 = vsel %vm4966_vm11, %v6876_v25, 0.0  ;;  %v8851_v57 = vsel %vm4967_vm5, %v6875_v41, 0.0  ;;  %v4875_v41 = vld [vmem:[#allocation3 + $0x480] sm:$0xff]  ;;  %v4877_v56 = vld [vmem:[#allocation3 + $0x490] sm:$0xff]  ;;  %vm5066_vm11 = vcmp.eq.s32.totalorder %v8698_v27, %v7202_v1  ;;  %vm8977_vm5 = vcmask 113664   ;;  %v5152_v27 = vld [vmem:[#allocation3 + $0x528] sm:$0xff] }
 0xf4b   :  { %6740 = vmatpush3.bf16.msra.mxu1 %v6737_v4  ;;  %6349 = vmatprep.mubr.msk.f32.mxu1 %vm356_vm0, %v4376_v29  ;;  %v6785_v4 = vpack.c.bf16 %v4776_v23, %v4775_v21  ;;  %v6801_v25 = vpack.c.bf16 %v4876_v0, %v4875_v41  ;;  %v5067_v38 = vsel %vm5066_vm11, 1.0, %v7155_v24  ;;  %vm8978_vm6 = vmmov 0   ;;  %v5151_v1 = vld [vmem:[#allocation3 + $0x520] sm:$0xff] }
 0xf4c   :  { %6742 = vmatprep.subr.bf16.mxu1 %v6741_v22  ;;  %v6844_v47 = vpack.c.bf16 %v5152_v27, %v5151_v1  ;;  %v5236_v23 = vld [vmem:[%s8903_s3 + $0x15] ss:$0 sm:$0xff] }
 0xf4f   :  { %6744 = vmatpush3.bf16.msra.mxu1 %v6741_v22  ;;  %v4782_v22 = vld [vmem:[#allocation3 + $0x478] sm:$0xff] }
 0xf50   :  { %6746 = vmatprep.subr.bf16.mxu1 %v6745_v46  ;;  %v6797_v39 = vpack.c.bf16 %v4782_v22, %v4781_v2 }
 0xf53   :  { %6748 = vmatpush3.bf16.msra.mxu1 %v6745_v46 }
 0xf54   :  { %6750 = vmatprep.subr.bf16.mxu1 %v6749_v52 }
 0xf57   :  { %6752 = vmatpush3.bf16.msra.mxu1 %v6749_v52  ;;  %v4979_v52 = vld [vmem:[#allocation3 + $0x4e0] sm:$0xff] }
 0xf58   :  { %6754 = vmatprep.subr.bf16.mxu1 %v6753_v37 }
 0xf5a   :  { %6350 = vmatmul.mubr.msk.f32.vlgmr.msra.gmra.mrb[38].mxu1 %vm356_vm0, %v4377_v49  ;;  %v4878_v49 = vld [vmem:[#allocation3 + $0x498] sm:$0xff] }
 0xf5b   :  { %6756 = vmatpush3.bf16.msra.mxu1 %v6753_v37  ;;  %6368 = vmatprep.mubr.msk.f32.mxu1 %vm356_vm0, %v4572_v11  ;;  %v4881_v11 = vld [vmem:[#allocation3 + $0x4b0] sm:$0xff]  ;;  %v4982_v37 = vld [vmem:[#allocation3 + $0x4f8] sm:$0xff] }
 0xf5c   :  { %6758 = vmatprep.subr.bf16.mxu1 %v6757_v17  ;;  %v6829_v60 = vpack.c.bf16 %v4982_v37, %v4981_v36 }
 0xf5f   :  { %6760 = vmatpush3.bf16.msra.mxu1 %v6757_v17 }
 0xf60   :  { %6762 = vmatprep.subr.bf16.mxu1 %v6761_v44 }
 0xf63   :  { %6764 = vmatpush3.bf16.msra.mxu1 %v6761_v44 }
 0xf64   :  { %6766 = vmatprep.subr.bf16.mxu1 %v6765_v9 }
 0xf67   :  { %6768 = vmatpush3.bf16.msra.mxu1 %v6765_v9  ;;  %v5153_v9 = vld [vmem:[#allocation3 + $0x530] sm:$0xff] }
 0xf68   :  { %6770 = vmatprep.subr.bf16.mxu1 %v6769_v55  ;;  %v6847_v19 = vpack.c.bf16 %v5154_v53, %v5153_v9 }
 0xf6a   :  { %6369 = vmatmul.mubr.msk.f32.vlgmr.msra.gmra.mrb[38].mxu1 %vm356_vm0, %v4573_v59  ;;  %v6805_v59 = vpack.c.bf16 %v4878_v49, %v4877_v56 }
 0xf6b   :  { %6772 = vmatpush3.bf16.msra.mxu1 %v6769_v55  ;;  %6387 = vmatprep.mubr.msk.f32.mxu1 %vm356_vm0, %v4672_v32  ;;  %v4882_v32 = vld [vmem:[#allocation3 + $0x4b8] sm:$0xff]  ;;  %v5068_v55 = vld [vmem:[%s8903_s3 + $0x12] ss:$0 sm:$0xff] }
 0xf6c   :  { %6774 = vmatprep.subr.bf16.mxu1 %v6773_v18  ;;  %v6813_v40 = vpack.c.bf16 %v4882_v32, %v4881_v11 }
 0xf6f   :  { %6776 = vmatpush3.bf16.msra.mxu1 %v6773_v18 }
 0xf70   :  { %6778 = vmatprep.subr.bf16.mxu1 %v6777_v62 }
 0xf73   :  { %6780 = vmatpush3.bf16.msra.mxu1 %v6777_v62 }
 0xf74   :  { %6782 = vmatprep.subr.bf16.mxu1 %v6781_v16 }
 0xf77   :  { %6784 = vmatpush3.bf16.msra.mxu1 %v6781_v16 }
 0xf78   :  { %6786 = vmatprep.subr.bf16.mxu1 %v6785_v4 }
 0xf7a   :  { %6388 = vmatmul.mubr.msk.f32.vlgmr.msra.gmra.mrb[38].mxu1 %vm356_vm0, %v8828_v58  ;;  %v4879_v58 = vld [vmem:[#allocation3 + $0x4a0] sm:$0xff] }
 0xf7b   :  { %6788 = vmatpush3.bf16.msra.mxu1 %v6785_v4  ;;  %6406 = vmatprep.mubr.msk.f32.mxu1 %vm356_vm0, %v8835_v45  ;;  %v6809_v29 = vpack.c.bf16 %v4880_v33, %v4879_v58  ;;  %v4976_v45 = vld [vmem:[#allocation3 + $0x4c8] sm:$0xff] }
 0xf7c   :  { %6790 = vmatprep.subr.bf16.mxu1 %v6789_v6  ;;  %v6817_v46 = vpack.c.bf16 %v4976_v45, %v4975_v35 }
 0xf7f   :  { %6792 = vmatpush3.bf16.msra.mxu1 %v6789_v6 }
 0xf80   :  { %6794 = vmatprep.subr.bf16.mxu1 %v6793_v20 }
 0xf83   :  { %6796 = vmatpush3.bf16.msra.mxu1 %v6793_v20 }
 0xf84   :  { %6798 = vmatprep.subr.bf16.mxu1 %v6797_v39 }
 0xf87   :  { %6800 = vmatpush3.bf16.msra.mxu1 %v6797_v39 }
 0xf88   :  { %6802 = vmatprep.subr.bf16.mxu1 %v6801_v25 }
 0xf8a   :  { %6407 = vmatmul.mubr.msk.f32.vlgmr.msra.gmra.mrb[38].mxu1 %vm356_vm0, %v8838_v10  ;;  %v6821_v10 = vpack.c.bf16 %v4978_v50, %v4977_v26 }
 0xf8b   :  { %6804 = vmatpush3.bf16.msra.mxu1 %v6801_v25  ;;  %6425 = vmatprep.mubr.msk.f32.mxu1 %vm356_vm0, %v8841_v12  ;;  %v6825_v12 = vpack.c.bf16 %v4980_v5, %v4979_v52 }
 0xf8c   :  { %6806 = vmatprep.subr.bf16.mxu1 %v6805_v59 }
 0xf8f   :  { %6808 = vmatpush3.bf16.msra.mxu1 %v6805_v59 }
 0xf90   :  { %6810 = vmatprep.subr.bf16.mxu1 %v6809_v29 }
 0xf93   :  { %6812 = vmatpush3.bf16.msra.mxu1 %v6809_v29 }
 0xf94   :  { %6814 = vmatprep.subr.bf16.mxu1 %v6813_v40 }
 0xf97   :  { %6816 = vmatpush3.bf16.msra.mxu1 %v6813_v40 }
 0xf98   :  { %6818 = vmatprep.subr.bf16.mxu1 %v6817_v46 }
 0xf9a   :  { %6426 = vmatmul.mubr.msk.f32.vlgmr.msra.gmra.mrb[38].mxu1 %vm356_vm0, %v8844_v31  ;;  %v5147_v31 = vld [vmem:[#allocation3 + $0x500] sm:$0xff] }
 0xf9b   :  { %6820 = vmatpush3.bf16.msra.mxu1 %v6817_v46  ;;  %6444 = vmatprep.mubr.msk.f32.mxu1 %vm356_vm0, %v8848_v14  ;;  %v5148_v14 = vld [vmem:[#allocation3 + $0x508] sm:$0xff] }
 0xf9c   :  { %6822 = vmatprep.subr.bf16.mxu1 %v6821_v10  ;;  %v6838_v44 = vpack.c.bf16 %v5148_v14, %v5147_v31 }
 0xf9f   :  { %6824 = vmatpush3.bf16.msra.mxu1 %v6821_v10 }
 0xfa0   :  { %6826 = vmatprep.subr.bf16.mxu1 %v6825_v12 }
 0xfa3   :  { %6828 = vmatpush3.bf16.msra.mxu1 %v6825_v12 }
 0xfa4   :  { %6830 = vmatprep.subr.bf16.mxu1 %v6829_v60 }
 0xfa7   :  { %6832 = vmatpush3.bf16.msra.mxu1 %v6829_v60 }
 0xfaa   :  { %6445 = vmatmul.mubr.msk.f32.vlgmr.msra.gmra.mrb[38].mxu1 %vm356_vm0, %v8851_v57  ;;  %v6841_v57 = vpack.c.bf16 %v5150_v61, %v5149_v8 }
0x107d   :  { %v6446_v34 = vpop.f32.mrb[38].mxu1 }
0x107e   :  { %v5055_v17 = vpop.f32.mrb[39].mxu1 }
0x107f   :  { %v6834_v13 = vpack.c.bf16 %v6446_v34, %v5055_v17 }
0x1081   :  { %6836 = vmatpush3.bf16.msk.msra.mxu0 %vm8676_vm10, %v6834_v13  ;;  %vm5232_vm10 = vcmask 517120  }
0x1082   :  { %6837 = vmatprep.subr.bf16.mxu0 %v7153_v43 }
0x1084   :  { %6452 = vmatmul.mubr.msk.f32.vlgmr.msra.gmra.mrb[62].mxu0 %vm8977_vm5, %v5067_v38 }
0x1085   :  { %6839 = vmatpush3.bf16.msra.mxu0 %v6838_v44  ;;  %6470 = vmatprep.mubr.msk.f32.mxu0 %vm8978_vm6, %v7155_v24 }
0x1086   :  { %6840 = vmatprep.subr.bf16.mxu0 %v7153_v43 }
0x1089   :  { %6842 = vmatpush3.bf16.msra.mxu0 %v6841_v57 }
0x108a   :  { %6843 = vmatprep.subr.bf16.mxu0 %v7153_v43 }
0x108d   :  { %6845 = vmatpush3.bf16.msra.mxu0 %v6844_v47 }
0x108e   :  { %6846 = vmatprep.subr.bf16.mxu0 %v7153_v43 }
0x1091   :  { %6848 = vmatpush3.bf16.msra.mxu0 %v6847_v19 }
0x1157   :  { %v5141_v24 = vpop.f32.mrb[62].mxu0 }
0x1158   :  { %v5142_v3 = vadd.f32 %v5141_v24, %v5068_v55  ;;  %v6453_v30 = vpop.f32.mrb[63].mxu0 }
0x115a   :  { %v5145_v18 = vmax.f32 %v5142_v3, 0.0 }
0x115c   :  { %6471 = vmatmul.mubr.msk.f32.vlgmr.msra.gmra.mrb[64].mxu0 %vm356_vm0, %v5145_v18  ;;  %vm5244_vm0 = vcmask 1024  }
0x122f   :  { %v5225_v28 = vpop.f32.mrb[64].mxu0 }
0x1230   :  { %v5226_v43 = vadd.f32 %v5225_v28, %v5155_v54  ;;  %v6472_v62 = vpop.f32.mrb[65].mxu0 }
0x1232   :  { %v5229_v48 = vmax.f32 %v5226_v43, 0.0 }
0x1234   :  { %v5231_v16 = vmul.f32 %v5230_v15, %v5229_v48 }
0x1236   :  { %v5233_v21 = vsel %vm5232_vm10, %v5231_v16, 0.0 }
0x1237   :  { %5234 = vadd.xlane.f32.xlu0 %v5233_v21 }
0x12c4   :  { %v5235_v4 = vpop.xlane.xlu0 %5234 }
0x12c5   :  { %v5237_v63 = vadd.f32 %v5236_v23, %v5235_v4 }
0x12c7   :  { %v5433_v51 = vmul.f32 -1.442695, %v5237_v63 }
0x12c9   :  { %7122 = vpow2.f32 %v5433_v51 }
0x12d3   :  { %v7123_v6 = vpop.eup %7122 }
0x12d4   :  { %v5241_v7 = vadd.f32 1.0, %v7123_v6 }
0x12d6   :  { %7124 = vrcp.f32 %v5241_v7 }
0x12e0   :  { %v7125_v42 = vpop.eup %7124 }
0x12e1   :  { %5245 = vst.msk [vmem:[%s8904_s4] sm:$0x3] %vm5244_vm0, %v7125_v42 }
0x12e2   :  { %5250 = vsyncpa [#allocation4], 1 }

</bundles_post_ra>
